<compile_context>
chip_gen: v6e
topology: v6e:2x2x1
jax: 0.10.0
libtpu: 0.0.40
codegen_flags: <defaults>
</compile_context>

<pallas_src>
import jax
import jax.numpy as jnp
from jax.experimental import pallas as pl
from jax.experimental.pallas import tpu as pltpu

IN_DIM = 20
H1_DIM = 512
H2_DIM = 1024
OUT_DIM = 4
OUT_PAD = 128  # minimum lane-dense output width; do NOT raise (see perf review)


def _round_up(n, m):
    return ((n + m - 1) // m) * m


def _mlp_kernel(x_ref, w1_ref, b1_ref, w2_ref, b2_ref, w3_ref, b3_ref, o_ref):
    # Layer 1: (TB, 20) @ (20, 512) + b1 -> ReLU   (f32 accumulate)
    # NOTE: K=20 pads to the MXU systolic depth (~10-15% of MXU pushes); a VPU
    # broadcast-MAC variant is a possible further win but only after measuring.
    x = x_ref[...].astype(jnp.bfloat16)
    h1 = jnp.dot(x, w1_ref[...], preferred_element_type=jnp.float32)
    h1 = jnp.maximum(h1 + b1_ref[...], 0.0)
    # Layer 2: (TB, 512) @ (512, 1024) + b2 -> ReLU
    h2 = jnp.dot(h1.astype(jnp.bfloat16), w2_ref[...],
                 preferred_element_type=jnp.float32)
    h2 = jnp.maximum(h2 + b2_ref[...], 0.0)
    # Layer 3: (TB, 1024) @ (1024, 128) + b3   (no activation, lane-dense pad)
    out = jnp.dot(h2.astype(jnp.bfloat16), w3_ref[...],
                  preferred_element_type=jnp.float32)
    o_ref[...] = (out + b3_ref[...]).astype(o_ref.dtype)


def prepare_params(params):
    """One-time parameter prep, hoisted out of the per-call path."""
    w3p = jnp.zeros((H2_DIM, OUT_PAD), jnp.float32).at[:, :OUT_DIM].set(params["w3"])
    b3p = jnp.zeros((1, OUT_PAD), jnp.float32).at[:, :OUT_DIM].set(
        params["b3"].reshape(1, OUT_DIM))
    return dict(
        w1=params["w1"].astype(jnp.bfloat16),
        b1=params["b1"].reshape(1, H1_DIM).astype(jnp.float32),
        w2=params["w2"].astype(jnp.bfloat16),
        b2=params["b2"].reshape(1, H2_DIM).astype(jnp.float32),
        w3=w3p.astype(jnp.bfloat16),
        b3=b3p,
    )


def _choose_batch_tiling(B, tb_max):
    """Balanced, 8-aligned batch tiles that minimize padding, with >=2 (and
    preferably an even number of) grid steps when B >= 16 so 2-TC chips (v7x)
    shard the batch across both TensorCores."""
    def plan(n):
        TB = _round_up(max(1, -(-B // n)), 8)
        B_pad = _round_up(B, TB)
        return TB, B_pad, B_pad // TB

    n = max(1, -(-B // tb_max))
    if B >= 16:
        n = max(n, 2)
    TB, B_pad, steps = plan(n)
    if steps > 1 and steps % 2:
        TB2, B_pad2, _ = plan(steps + 1)
        if (B_pad2 - B) <= (B_pad - B):  # even steps only if not more wasteful
            TB, B_pad = TB2, B_pad2
    return TB, B_pad


def phone_price_model(x, prepared_params, *, tb=1024,
                      vmem_limit_bytes=40 * 1024 * 1024):
    """Forward pass of PhonePriceModel as one fused, batch-tiled Pallas kernel.

    x: (B, 20) float32
    prepared_params: output of prepare_params() (bf16 weights, padded layer 3)
    returns: (B, 4) float32
    """
    p = prepared_params
    B = x.shape[0]
    TB, B_pad = _choose_batch_tiling(B, tb)

    x_p = x.astype(jnp.float32)
    if B_pad != B:
        x_p = jnp.pad(x_p, ((0, B_pad - B), (0, 0)))
    grid = (B_pad // TB,)

    weight_bytes = ((p["w1"].size + p["w2"].size + p["w3"].size) * 2
                    + (p["b1"].size + p["b2"].size + p["b3"].size) * 4)
    cost = pl.CostEstimate(
        flops=2 * B * (IN_DIM * H1_DIM + H1_DIM * H2_DIM + H2_DIM * OUT_DIM),
        transcendentals=0,
        bytes_accessed=B * IN_DIM * 4 + B * OUT_DIM * 4 + weight_bytes,
    )

    def run(single_buffer_weights):
        const_map = lambda i: (0, 0)
        kw = {"pipeline_mode": pl.Buffered(1)} if single_buffer_weights else {}
        in_specs = [
            pl.BlockSpec((TB, IN_DIM), lambda i: (i, 0)),        # x tile (pipelined)
            pl.BlockSpec((IN_DIM, H1_DIM), const_map, **kw),     # w1 (resident)
            pl.BlockSpec((1, H1_DIM), const_map, **kw),          # b1
            pl.BlockSpec((H1_DIM, H2_DIM), const_map, **kw),     # w2
            pl.BlockSpec((1, H2_DIM), const_map, **kw),          # b2
            pl.BlockSpec((H2_DIM, OUT_PAD), const_map, **kw),    # w3 (lane-padded)
            pl.BlockSpec((1, OUT_PAD), const_map, **kw),         # b3 (lane-padded)
        ]
        return pl.pallas_call(
            _mlp_kernel,
            out_shape=jax.ShapeDtypeStruct((B_pad, OUT_PAD), jnp.float32),
            grid=grid,
            in_specs=in_specs,
            out_specs=pl.BlockSpec((TB, OUT_PAD), lambda i: (i, 0)),
            compiler_params=pltpu.CompilerParams(
                dimension_semantics=("parallel",),
                vmem_limit_bytes=vmem_limit_bytes,
            ),
            cost_estimate=cost,
        )(x_p, p["w1"], p["b1"], p["w2"], p["b2"], p["w3"], p["b3"])

    try:
        out = run(True)
    except Exception:
        # Fallback for jax versions that reject pipeline_mode / Buffered(1);
        # identical structure, weights just double-buffered by default.
        out = run(False)

    return out[:B, :OUT_DIM]


def init_params(key):
    """Deterministic init mimicking PyTorch nn.Linear default
    (U[-1/sqrt(fan_in), 1/sqrt(fan_in)]). Weights stored (in_features, out_features)."""
    dims = [(IN_DIM, H1_DIM), (H1_DIM, H2_DIM), (H2_DIM, OUT_DIM)]
    params = {}
    keys = jax.random.split(key, 2 * len(dims))
    for i, (fin, fout) in enumerate(dims):
        bound = 1.0 / (fin ** 0.5)
        params[f"w{i + 1}"] = jax.random.uniform(
            keys[2 * i], (fin, fout), jnp.float32, minval=-bound, maxval=bound)
        params[f"b{i + 1}"] = jax.random.uniform(
            keys[2 * i + 1], (1, fout), jnp.float32, minval=-bound, maxval=bound)
    return params


def _reference(x, params):
    """JAX reference using the same bf16 weight/activation quantization as the kernel."""
    def q(w):
        return w.astype(jnp.bfloat16).astype(jnp.float32)
    xb = x.astype(jnp.bfloat16).astype(jnp.float32)
    h1 = jax.nn.relu(xb @ q(params["w1"]) + params["b1"])
    h2 = jax.nn.relu(h1.astype(jnp.bfloat16).astype(jnp.float32) @ q(params["w2"])
                     + params["b2"])
    return (h2.astype(jnp.bfloat16).astype(jnp.float32) @ q(params["w3"])
            + params["b3"])


if __name__ == "__main__":
    key = jax.random.PRNGKey(0)
    pkey, xkey, x2key = jax.random.split(key, 3)
    params = init_params(pkey)
    prepared = prepare_params(params)  # one-time prep, outside the per-call path

    # Small batch (single grid step).
    B = 8
    x = jax.random.normal(xkey, (B, IN_DIM), dtype=jnp.float32)
    out = jax.block_until_ready(phone_price_model(x, prepared))
    ref = _reference(x, params)
    assert out.shape == (B, OUT_DIM)
    assert jnp.allclose(out, ref, atol=1e-2, rtol=1e-2), "mismatch vs JAX reference (B=8)"

    # Non-multiple batch exercising the balanced multi-step tiling path.
    B2 = 40
    x2 = jax.random.normal(x2key, (B2, IN_DIM), dtype=jnp.float32)
    out2 = jax.block_until_ready(phone_price_model(x2, prepared))
    ref2 = _reference(x2, params)
    assert out2.shape == (B2, OUT_DIM)
    assert jnp.allclose(out2, ref2, atol=1e-2, rtol=1e-2), "mismatch vs JAX reference (B=40)"

    print("KERNEL_OK")
</pallas_src>

<mosaic_0001>
module attributes {stable_mosaic.version = 11 : i64} {
  func.func @_mlp_kernel(%arg0: i32, %arg1: memref<8x20xf32, #tpu.memory_space<vmem>>, %arg2: memref<20x512xbf16, #tpu.memory_space<vmem>>, %arg3: memref<1x512xf32, #tpu.memory_space<vmem>>, %arg4: memref<512x1024xbf16, #tpu.memory_space<vmem>>, %arg5: memref<1x1024xf32, #tpu.memory_space<vmem>>, %arg6: memref<1024x128xbf16, #tpu.memory_space<vmem>>, %arg7: memref<1x128xf32, #tpu.memory_space<vmem>>, %arg8: memref<8x128xf32, #tpu.memory_space<vmem>>) attributes {dimension_semantics = [#tpu.dimension_semantics<parallel>], iteration_bounds = array<i64: 1>, scalar_prefetch = 0 : i64, scratch_operands = 0 : i64, tpu.core_type = #tpu.core_type<tc>, window_params = [{transform_indices = @transform_0, window_bounds = array<i64: 8, 20>}, {pipeline_mode = #tpu.pipeline_mode<synchronous>, transform_indices = @transform_1, window_bounds = array<i64: 20, 512>}, {pipeline_mode = #tpu.pipeline_mode<synchronous>, transform_indices = @transform_2, window_bounds = array<i64: 1, 512>}, {pipeline_mode = #tpu.pipeline_mode<synchronous>, transform_indices = @transform_3, window_bounds = array<i64: 512, 1024>}, {pipeline_mode = #tpu.pipeline_mode<synchronous>, transform_indices = @transform_4, window_bounds = array<i64: 1, 1024>}, {pipeline_mode = #tpu.pipeline_mode<synchronous>, transform_indices = @transform_5, window_bounds = array<i64: 1024, 128>}, {pipeline_mode = #tpu.pipeline_mode<synchronous>, transform_indices = @transform_6, window_bounds = array<i64: 1, 128>}, {transform_indices = @transform_7, window_bounds = array<i64: 8, 128>}]} {
    %c0 = arith.constant 0 : index
    %c0_0 = arith.constant 0 : index
    %0 = vector.load %arg1[%c0, %c0_0] : memref<8x20xf32, #tpu.memory_space<vmem>>, vector<8x20xf32>
    %1 = arith.truncf %0 : vector<8x20xf32> to vector<8x20xbf16>
    %c0_1 = arith.constant 0 : index
    %c0_2 = arith.constant 0 : index
    %2 = vector.load %arg2[%c0_1, %c0_2] : memref<20x512xbf16, #tpu.memory_space<vmem>>, vector<20x512xbf16>
    %cst = arith.constant dense<0.000000e+00> : vector<8x512xf32>
    %3 = tpu.matmul %1, %2, %cst {dimension_numbers = #tpu.dot_dimension_numbers<[1], [0], [0], [1], [0, 0, 1, 1], [], []>} : vector<8x20xbf16>, vector<20x512xbf16>, vector<8x512xf32> -> vector<8x512xf32>
    %c0_3 = arith.constant 0 : index
    %c0_4 = arith.constant 0 : index
    %4 = vector.load %arg3[%c0_3, %c0_4] : memref<1x512xf32, #tpu.memory_space<vmem>>, vector<1x512xf32>
    %5 = vector.broadcast %4 : vector<1x512xf32> to vector<8x512xf32>
    %6 = arith.addf %3, %5 : vector<8x512xf32>
    %cst_5 = arith.constant 0.000000e+00 : f32
    %7 = vector.broadcast %cst_5 : f32 to vector<8x512xf32>
    %8 = arith.maximumf %6, %7 : vector<8x512xf32>
    %9 = arith.truncf %8 : vector<8x512xf32> to vector<8x512xbf16>
    %c0_6 = arith.constant 0 : index
    %c0_7 = arith.constant 0 : index
    %10 = vector.load %arg4[%c0_6, %c0_7] : memref<512x1024xbf16, #tpu.memory_space<vmem>>, vector<512x1024xbf16>
    %cst_8 = arith.constant dense<0.000000e+00> : vector<8x1024xf32>
    %11 = tpu.matmul %9, %10, %cst_8 {dimension_numbers = #tpu.dot_dimension_numbers<[1], [0], [0], [1], [0, 0, 1, 1], [], []>} : vector<8x512xbf16>, vector<512x1024xbf16>, vector<8x1024xf32> -> vector<8x1024xf32>
    %c0_9 = arith.constant 0 : index
    %c0_10 = arith.constant 0 : index
    %12 = vector.load %arg5[%c0_9, %c0_10] : memref<1x1024xf32, #tpu.memory_space<vmem>>, vector<1x1024xf32>
    %13 = vector.broadcast %12 : vector<1x1024xf32> to vector<8x1024xf32>
    %14 = arith.addf %11, %13 : vector<8x1024xf32>
    %cst_11 = arith.constant 0.000000e+00 : f32
    %15 = vector.broadcast %cst_11 : f32 to vector<8x1024xf32>
    %16 = arith.maximumf %14, %15 : vector<8x1024xf32>
    %17 = arith.truncf %16 : vector<8x1024xf32> to vector<8x1024xbf16>
    %c0_12 = arith.constant 0 : index
    %c0_13 = arith.constant 0 : index
    %18 = vector.load %arg6[%c0_12, %c0_13] : memref<1024x128xbf16, #tpu.memory_space<vmem>>, vector<1024x128xbf16>
    %cst_14 = arith.constant dense<0.000000e+00> : vector<8x128xf32>
    %19 = tpu.matmul %17, %18, %cst_14 {dimension_numbers = #tpu.dot_dimension_numbers<[1], [0], [0], [1], [0, 0, 1, 1], [], []>} : vector<8x1024xbf16>, vector<1024x128xbf16>, vector<8x128xf32> -> vector<8x128xf32>
    %c0_15 = arith.constant 0 : index
    %c0_16 = arith.constant 0 : index
    %20 = vector.load %arg7[%c0_15, %c0_16] : memref<1x128xf32, #tpu.memory_space<vmem>>, vector<1x128xf32>
    %21 = vector.broadcast %20 : vector<1x128xf32> to vector<8x128xf32>
    %22 = arith.addf %19, %21 : vector<8x128xf32>
    %c0_17 = arith.constant 0 : index
    %c0_18 = arith.constant 0 : index
    %23 = vector.load %arg8[%c0_17, %c0_18] : memref<8x128xf32, #tpu.memory_space<vmem>>, vector<8x128xf32>
    tpu.vector_store %arg8[%c0_17, %c0_18], %22 {strides = array<i32>} : memref<8x128xf32, #tpu.memory_space<vmem>>, vector<8x128xf32>,
    return
  }
  func.func @transform_0(%arg0: i32) -> (i32, i32) {
    %c0_i32 = arith.constant 0 : i32
    %c0_i32_0 = arith.constant 0 : i32
    return %arg0, %c0_i32 : i32, i32
  }
  func.func @transform_1(%arg0: i32) -> (i32, i32) {
    %c0_i32 = arith.constant 0 : i32
    %c0_i32_0 = arith.constant 0 : i32
    %c0_i32_1 = arith.constant 0 : i32
    return %c0_i32, %c0_i32_0 : i32, i32
  }
  func.func @transform_2(%arg0: i32) -> (i32, i32) {
    %c0_i32 = arith.constant 0 : i32
    %c0_i32_0 = arith.constant 0 : i32
    %c0_i32_1 = arith.constant 0 : i32
    return %c0_i32, %c0_i32_0 : i32, i32
  }
  func.func @transform_3(%arg0: i32) -> (i32, i32) {
    %c0_i32 = arith.constant 0 : i32
    %c0_i32_0 = arith.constant 0 : i32
    %c0_i32_1 = arith.constant 0 : i32
    return %c0_i32, %c0_i32_0 : i32, i32
  }
  func.func @transform_4(%arg0: i32) -> (i32, i32) {
    %c0_i32 = arith.constant 0 : i32
    %c0_i32_0 = arith.constant 0 : i32
    %c0_i32_1 = arith.constant 0 : i32
    return %c0_i32, %c0_i32_0 : i32, i32
  }
  func.func @transform_5(%arg0: i32) -> (i32, i32) {
    %c0_i32 = arith.constant 0 : i32
    %c0_i32_0 = arith.constant 0 : i32
    %c0_i32_1 = arith.constant 0 : i32
    return %c0_i32, %c0_i32_0 : i32, i32
  }
  func.func @transform_6(%arg0: i32) -> (i32, i32) {
    %c0_i32 = arith.constant 0 : i32
    %c0_i32_0 = arith.constant 0 : i32
    %c0_i32_1 = arith.constant 0 : i32
    return %c0_i32, %c0_i32_0 : i32, i32
  }
  func.func @transform_7(%arg0: i32) -> (i32, i32) {
    %c0_i32 = arith.constant 0 : i32
    %c0_i32_0 = arith.constant 0 : i32
    return %arg0, %c0_i32 : i32, i32
  }
}

module attributes {stable_mosaic.version = 11 : i64} {
  func.func @_mlp_kernel(%arg0: i32, %arg1: memref<8x20xf32, #tpu.memory_space<vmem>>, %arg2: memref<20x512xbf16, #tpu.memory_space<vmem>>, %arg3: memref<1x512xf32, #tpu.memory_space<vmem>>, %arg4: memref<512x1024xbf16, #tpu.memory_space<vmem>>, %arg5: memref<1x1024xf32, #tpu.memory_space<vmem>>, %arg6: memref<1024x128xbf16, #tpu.memory_space<vmem>>, %arg7: memref<1x128xf32, #tpu.memory_space<vmem>>, %arg8: memref<8x128xf32, #tpu.memory_space<vmem>>) attributes {dimension_semantics = [#tpu.dimension_semantics<parallel>], iteration_bounds = array<i64: 1>, scalar_prefetch = 0 : i64, scratch_operands = 0 : i64, tpu.core_type = #tpu.core_type<tc>, window_params = [{transform_indices = @transform_0, window_bounds = array<i64: 8, 20>}, {pipeline_mode = #tpu.pipeline_mode<synchronous>, transform_indices = @transform_1, window_bounds = array<i64: 20, 512>}, {pipeline_mode = #tpu.pipeline_mode<synchronous>, transform_indices = @transform_2, window_bounds = array<i64: 1, 512>}, {pipeline_mode = #tpu.pipeline_mode<synchronous>, transform_indices = @transform_3, window_bounds = array<i64: 512, 1024>}, {pipeline_mode = #tpu.pipeline_mode<synchronous>, transform_indices = @transform_4, window_bounds = array<i64: 1, 1024>}, {pipeline_mode = #tpu.pipeline_mode<synchronous>, transform_indices = @transform_5, window_bounds = array<i64: 1024, 128>}, {pipeline_mode = #tpu.pipeline_mode<synchronous>, transform_indices = @transform_6, window_bounds = array<i64: 1, 128>}, {transform_indices = @transform_7, window_bounds = array<i64: 8, 128>}]} {
    %c0 = arith.constant 0 : index
    %c0_0 = arith.constant 0 : index
    %0 = vector.load %arg1[%c0, %c0_0] : memref<8x20xf32, #tpu.memory_space<vmem>>, vector<8x20xf32>
    %1 = arith.truncf %0 : vector<8x20xf32> to vector<8x20xbf16>
    %c0_1 = arith.constant 0 : index
    %c0_2 = arith.constant 0 : index
    %2 = vector.load %arg2[%c0_1, %c0_2] : memref<20x512xbf16, #tpu.memory_space<vmem>>, vector<20x512xbf16>
    %cst = arith.constant dense<0.000000e+00> : vector<8x512xf32>
    %3 = tpu.matmul %1, %2, %cst {dimension_numbers = #tpu.dot_dimension_numbers<[1], [0], [0], [1], [0, 0, 1, 1], [], []>} : vector<8x20xbf16>, vector<20x512xbf16>, vector<8x512xf32> -> vector<8x512xf32>
    %c0_3 = arith.constant 0 : index
    %c0_4 = arith.constant 0 : index
    %4 = vector.load %arg3[%c0_3, %c0_4] : memref<1x512xf32, #tpu.memory_space<vmem>>, vector<1x512xf32>
    %5 = vector.broadcast %4 : vector<1x512xf32> to vector<8x512xf32>
    %6 = arith.addf %3, %5 : vector<8x512xf32>
    %cst_5 = arith.constant 0.000000e+00 : f32
    %7 = vector.broadcast %cst_5 : f32 to vector<8x512xf32>
    %8 = arith.maximumf %6, %7 : vector<8x512xf32>
    %9 = arith.truncf %8 : vector<8x512xf32> to vector<8x512xbf16>
    %c0_6 = arith.constant 0 : index
    %c0_7 = arith.constant 0 : index
    %10 = vector.load %arg4[%c0_6, %c0_7] : memref<512x1024xbf16, #tpu.memory_space<vmem>>, vector<512x1024xbf16>
    %cst_8 = arith.constant dense<0.000000e+00> : vector<8x1024xf32>
    %11 = tpu.matmul %9, %10, %cst_8 {dimension_numbers = #tpu.dot_dimension_numbers<[1], [0], [0], [1], [0, 0, 1, 1], [], []>} : vector<8x512xbf16>, vector<512x1024xbf16>, vector<8x1024xf32> -> vector<8x1024xf32>
    %c0_9 = arith.constant 0 : index
    %c0_10 = arith.constant 0 : index
    %12 = vector.load %arg5[%c0_9, %c0_10] : memref<1x1024xf32, #tpu.memory_space<vmem>>, vector<1x1024xf32>
    %13 = vector.broadcast %12 : vector<1x1024xf32> to vector<8x1024xf32>
    %14 = arith.addf %11, %13 : vector<8x1024xf32>
    %cst_11 = arith.constant 0.000000e+00 : f32
    %15 = vector.broadcast %cst_11 : f32 to vector<8x1024xf32>
    %16 = arith.maximumf %14, %15 : vector<8x1024xf32>
    %17 = arith.truncf %16 : vector<8x1024xf32> to vector<8x1024xbf16>
    %c0_12 = arith.constant 0 : index
    %c0_13 = arith.constant 0 : index
    %18 = vector.load %arg6[%c0_12, %c0_13] : memref<1024x128xbf16, #tpu.memory_space<vmem>>, vector<1024x128xbf16>
    %cst_14 = arith.constant dense<0.000000e+00> : vector<8x128xf32>
    %19 = tpu.matmul %17, %18, %cst_14 {dimension_numbers = #tpu.dot_dimension_numbers<[1], [0], [0], [1], [0, 0, 1, 1], [], []>} : vector<8x1024xbf16>, vector<1024x128xbf16>, vector<8x128xf32> -> vector<8x128xf32>
    %c0_15 = arith.constant 0 : index
    %c0_16 = arith.constant 0 : index
    %20 = vector.load %arg7[%c0_15, %c0_16] : memref<1x128xf32, #tpu.memory_space<vmem>>, vector<1x128xf32>
    %21 = vector.broadcast %20 : vector<1x128xf32> to vector<8x128xf32>
    %22 = arith.addf %19, %21 : vector<8x128xf32>
    %c0_17 = arith.constant 0 : index
    %c0_18 = arith.constant 0 : index
    %23 = vector.load %arg8[%c0_17, %c0_18] : memref<8x128xf32, #tpu.memory_space<vmem>>, vector<8x128xf32>
    tpu.vector_store %arg8[%c0_17, %c0_18], %22 {strides = array<i32>} : memref<8x128xf32, #tpu.memory_space<vmem>>, vector<8x128xf32>,
    return
  }
  func.func @transform_0(%arg0: i32) -> (i32, i32) {
    %c0_i32 = arith.constant 0 : i32
    %c0_i32_0 = arith.constant 0 : i32
    return %arg0, %c0_i32 : i32, i32
  }
  func.func @transform_1(%arg0: i32) -> (i32, i32) {
    %c0_i32 = arith.constant 0 : i32
    %c0_i32_0 = arith.constant 0 : i32
    %c0_i32_1 = arith.constant 0 : i32
    return %c0_i32, %c0_i32_0 : i32, i32
  }
  func.func @transform_2(%arg0: i32) -> (i32, i32) {
    %c0_i32 = arith.constant 0 : i32
    %c0_i32_0 = arith.constant 0 : i32
    %c0_i32_1 = arith.constant 0 : i32
    return %c0_i32, %c0_i32_0 : i32, i32
  }
  func.func @transform_3(%arg0: i32) -> (i32, i32) {
    %c0_i32 = arith.constant 0 : i32
    %c0_i32_0 = arith.constant 0 : i32
    %c0_i32_1 = arith.constant 0 : i32
    return %c0_i32, %c0_i32_0 : i32, i32
  }
  func.func @transform_4(%arg0: i32) -> (i32, i32) {
    %c0_i32 = arith.constant 0 : i32
    %c0_i32_0 = arith.constant 0 : i32
    %c0_i32_1 = arith.constant 0 : i32
    return %c0_i32, %c0_i32_0 : i32, i32
  }
  func.func @transform_5(%arg0: i32) -> (i32, i32) {
    %c0_i32 = arith.constant 0 : i32
    %c0_i32_0 = arith.constant 0 : i32
    %c0_i32_1 = arith.constant 0 : i32
    return %c0_i32, %c0_i32_0 : i32, i32
  }
  func.func @transform_6(%arg0: i32) -> (i32, i32) {
    %c0_i32 = arith.constant 0 : i32
    %c0_i32_0 = arith.constant 0 : i32
    %c0_i32_1 = arith.constant 0 : i32
    return %c0_i32, %c0_i32_0 : i32, i32
  }
  func.func @transform_7(%arg0: i32) -> (i32, i32) {
    %c0_i32 = arith.constant 0 : i32
    %c0_i32_0 = arith.constant 0 : i32
    return %arg0, %c0_i32 : i32, i32
  }
}

</mosaic_0001>

<bundles_post_ra>
// kernel: tpu_custom_call.1
= control target key start
LH: loop header
LB: loop body
LE: loop exit
PB: predicated region body
PF: predicated region fallthrough
CT: control target
= control target key end

     0   :  { %12 = vsyncpa [#allocation3], 0  ;;  %s3688_s0 = inlined_call_operand.hbm [shape: f32[8,20], index: 0, kind: input, shape index: {}]   ;;  %s3689_s1 = inlined_call_operand.hbm [shape: bf16[20,512], index: 1, kind: input, shape index: {}]   ;;  %s3690_s2 = inlined_call_operand.hbm [shape: f32[1,512], index: 2, kind: input, shape index: {}]   ;;  %s3691_s3 = inlined_call_operand.hbm [shape: bf16[512,1024], index: 3, kind: input, shape index: {}]   ;;  %s3692_s4 = inlined_call_operand.hbm [shape: f32[1,1024], index: 4, kind: input, shape index: {}]   ;;  %s3693_s5 = inlined_call_operand.hbm [shape: bf16[1024,128], index: 5, kind: input, shape index: {}]   ;;  %s3694_s6 = inlined_call_operand.vmem [shape: f32[1,128], index: 6, kind: input, shape index: {}]   ;;  %s3695_s7 = inlined_call_operand.hbm [shape: f32[8,128], index: 7, kind: output, shape index: {}]  }
   0x1   :  { %13 = vsyncpa [#allocation6], 0 }
   0x2   :  { %14 = vsyncpa [#allocation9], 0 }
   0x3   :  { %15 = vsyncpa [#allocation12], 0 }
   0x4   :  { %16 = vsyncpa [#allocation4], 0  ;;  %s3550_s24 = smov [#allocation5]  }
   0x5   :  { %s32_s25 = sshll.u32 %s3550_s24, 4  ;;  %s33_s25 = int_to_ptr.vmem [resolvable:$true] %s32_s25 }
   0x6   :  { %s3408_s26 = scalar_lea.vmem %s33_s25, 768  ;;  %p3413_p1 = scmp.lt.s32.totalorder %s33_s25, %s33_s25 }
   0x7   :  { %p3409_p0 = scmp.ne.s32.totalorder %s33_s25, %s3408_s26  ;;  %p3414_p2 = scmp.lt.s32.totalorder %s3408_s26, %s3408_s26 }
   0x9   :  { %p3415_p3 = por %p3414_p2, %p3413_p1 }
   0xb   :  { %p3416_p4 = pnand %p3415_p3, %p3409_p0 }
   0xd   :  { %3419 = shalt.err (!%p3416_p4)
}
   0xe   :  { %s3551_s27 = smov 256   ;;  %s3552_s28 = smov 16  }
   0xf   :  { %38 = dma.hbm_to_vmem [thread:$0]  %s3689_s1, 768, %s33_s25, [#allocation6], %s3551_s27, %s3551_s27, %s3552_s28  }
  0x10   :  { %s3553_s8 = smov [#allocation8]  }
  0x11   :  { %s54_s9 = sshll.u32 %s3553_s8, 4  ;;  %s55_s9 = int_to_ptr.vmem [resolvable:$true] %s54_s9 }
  0x12   :  { %s3428_s10 = scalar_lea.vmem %s55_s9, 32768  ;;  %p3433_p6 = scmp.lt.s32.totalorder %s55_s9, %s55_s9 }
  0x13   :  { %p3429_p5 = scmp.ne.s32.totalorder %s55_s9, %s3428_s10  ;;  %p3434_p7 = scmp.lt.s32.totalorder %s3428_s10, %s3428_s10 }
  0x15   :  { %p3435_p8 = por %p3434_p7, %p3433_p6 }
  0x17   :  { %p3436_p9 = pnand %p3435_p8, %p3429_p5 }
  0x19   :  { %3439 = shalt.err (!%p3436_p9)
}
  0x1a   :  { %s3554_s11 = smov 512   ;;  %s3555_s12 = smov 32  }
  0x1b   :  { %60 = dma.hbm_to_vmem [thread:$0]  %s3691_s3, 32768, %s55_s9, [#allocation9], %s3554_s11, %s3554_s11, %s3555_s12  }
  0x1c   :  { %s3556_s15 = smov [#allocation2]   ;;  %s3557_s17 = smov [#allocation7]  }
  0x1d   :  { %s23_s16 = sshll.u32 %s3556_s15, 4  ;;  %s45_s1 = sshll.u32 %s3557_s17, 4  ;;  %s24_s16 = int_to_ptr.vmem [resolvable:$true] %s23_s16  ;;  %s46_s1 = int_to_ptr.vmem [resolvable:$true] %s45_s1 }
  0x1e   :  { %s3448_s18 = scalar_lea.vmem %s24_s16, 128  ;;  %p3453_p11 = scmp.lt.s32.totalorder %s24_s16, %s24_s16 }
  0x1f   :  { %p3449_p10 = scmp.ne.s32.totalorder %s24_s16, %s3448_s18  ;;  %p3454_p12 = scmp.lt.s32.totalorder %s3448_s18, %s3448_s18 }
  0x21   :  { %p3455_p13 = por %p3454_p12, %p3453_p11 }
  0x23   :  { %p3456_p0 = pnand %p3455_p13, %p3449_p10 }
  0x25   :  { %3459 = shalt.err (!%p3456_p0)
}
  0x26   :  { %26 = dma.hbm_to_vmem [thread:$0]  %s3688_s0, 128, %s24_s16, [#allocation3]  }
  0x27   :  { %s3468_s21 = scalar_lea.vmem %s46_s1, 64  ;;  %p3473_p2 = scmp.lt.s32.totalorder %s46_s1, %s46_s1 }
  0x28   :  { %p3469_p1 = scmp.ne.s32.totalorder %s46_s1, %s3468_s21  ;;  %p3474_p3 = scmp.lt.s32.totalorder %s3468_s21, %s3468_s21 }
  0x2a   :  { %p3475_p4 = por %p3474_p3, %p3473_p2 }
  0x2c   :  { %p3476_p5 = pnand %p3475_p4, %p3469_p1 }
  0x2e   :  { %3479 = shalt.err (!%p3476_p5)
}
  0x2f   :  { %48 = dma.hbm_to_vmem [thread:$0]  %s3690_s2, 64, %s46_s1, [#allocation6]  }
  0x30   :  { %s3558_s23 = smov [#allocation10]   ;;  %s3559_s25 = smov [#allocation11]  }
  0x31   :  { %s67_s24 = sshll.u32 %s3558_s23, 4  ;;  %s76_s26 = sshll.u32 %s3559_s25, 4  ;;  %s68_s24 = int_to_ptr.vmem [resolvable:$true] %s67_s24  ;;  %s77_s26 = int_to_ptr.vmem [resolvable:$true] %s76_s26 }
  0x32   :  { %s3488_s27 = scalar_lea.vmem %s68_s24, 128  ;;  %p3493_p7 = scmp.lt.s32.totalorder %s68_s24, %s68_s24 }
  0x33   :  { %p3489_p6 = scmp.ne.s32.totalorder %s68_s24, %s3488_s27  ;;  %p3494_p8 = scmp.lt.s32.totalorder %s3488_s27, %s3488_s27 }
  0x35   :  { %p3495_p9 = por %p3494_p8, %p3493_p7 }
  0x37   :  { %p3496_p10 = pnand %p3495_p9, %p3489_p6 }
  0x39   :  { %3499 = shalt.err (!%p3496_p10)
}
  0x3a   :  { %70 = dma.hbm_to_vmem [thread:$0]  %s3692_s4, 128, %s68_s24, [#allocation9]  }
  0x3b   :  { %s3508_s29 = scalar_lea.vmem %s77_s26, 8192  ;;  %p3513_p12 = scmp.lt.s32.totalorder %s77_s26, %s77_s26 }
  0x3c   :  { %p3509_p11 = scmp.ne.s32.totalorder %s77_s26, %s3508_s29  ;;  %p3514_p13 = scmp.lt.s32.totalorder %s3508_s29, %s3508_s29 }
  0x3e   :  { %p3515_p0 = por %p3514_p13, %p3513_p12 }
  0x40   :  { %p3516_p1 = pnand %p3515_p0, %p3509_p11 }
  0x42   :  { %3519 = shalt.err (!%p3516_p1)
}
  0x43   :  { %s3560_s2 = smov 64   ;;  %s3561_s30 = smov 4  }
  0x44   :  { %82 = dma.hbm_to_vmem [thread:$0]  %s3693_s5, 8192, %s77_s26, [#allocation12], %s3560_s2, %s3560_s2, %s3561_s30  }
  0x45   :  { %3540 = dma.done.wait [#allocation3], 128  }
  0x46   :  { %3541 = vsyncadd [#allocation3], 4294967168 }
  0x47   :  { %3542 = dma.done.wait [#allocation6], 832  }
  0x48   :  { %3543 = vsyncadd [#allocation6], 4294966464 }
  0x49   :  { %3544 = dma.done.wait [#allocation9], 32896  }
  0x4a   :  { %3545 = vsyncadd [#allocation9], 4294934400 }
  0x4b   :  { %3546 = dma.done.wait [#allocation12], 8192  }
  0x4c   :  { %3547 = vsyncadd [#allocation12], 4294959104  ;;  %v3562_v0 = vmov 0   ;;  %v110_v1 = vld [vmem:[#allocation5 + $0x20] sm:$0x33]  ;;  %vm168_vm0 = vcmask 1041408  }
  0x4d   :  { %213 = vmatprep.mubr.bf16.mxu0 %v3562_v0  ;;  %254 = vmatprep.mubr.bf16.mxu1 %v3562_v0  ;;  %v111_v2 = vld [vmem:[#allocation5 + $0x28] sm:$0x33]  ;;  %v2896_v3 = vcombine.high %v110_v1, %v110_v1  ;;  %v2895_v5 = vcombine.low %v110_v1, %v110_v1  ;;  %v3330_v7 = vld [vmem:[#allocation5 + $0x4] ss:$16 sps:$4 sm:$0xff]   ;;  %v3334_v9 = vld [vmem:[#allocation5] ss:$16 sps:$4 sm:$0xff]  }
  0x4e   :  { %v2898_v4 = vcombine.high %v111_v2, %v111_v2  ;;  %v2897_v6 = vcombine.low %v111_v2, %v111_v2  ;;  %v3332_v8 = vld [vmem:[#allocation5 + $0xc] ss:$16 sps:$4 sm:$0xff]   ;;  %v3335_v12 = vld [vmem:[#allocation5 + $0x8] ss:$16 sps:$4 sm:$0xff]   ;;  %vm164_vm1 = vcmask 162816   ;;  %s3563_s10 = smov [#allocation13]  }
  0x4f   :  { %2899 = vmatprep.subr.msk.bf16.mxu0 %vm168_vm0, %v2896_v3  ;;  %v170_v10 = vsel %vm168_vm0, %v2895_v5, 0  ;;  %v104_v13 = vld [vmem:[#allocation2] sm:$0xff]  ;;  %s2879_s11 = sshll.u32 %s3563_s10, 4  ;;  %s2880_s11 = int_to_ptr.vmem [resolvable:$true] %s2879_s11 }
  0x50   :  { %2901 = vmatprep.subr.msk.bf16.mxu1 %vm168_vm0, %v2898_v4  ;;  %v176_v11 = vsel %vm168_vm0, %v2897_v6, 0  ;;  %v327_v14 = vld [vmem:[#allocation8 + $0x1c0] sm:$0xff]  ;;  %194 = vmatpush1.bf16.msra.mxu0 %v170_v10  ;;  %v105_v24 = vpack.c.bf16 %v104_v13, %v104_v13  ;;  %p3525_p3 = scmp.lt.s32.totalorder %s2880_s11, %s2880_s11 }
  0x51   :  { %235 = vmatpush1.bf16.msra.mxu1 %v176_v11  ;;  %v331_v15 = vld [vmem:[#allocation8 + $0x1e0] sm:$0xff]  ;;  %195 = vmatprep.subr.bf16.mxu0 %v3330_v7 }
  0x52   :  { %v455_v16 = vld [vmem:[#allocation8 + $0x5c0] sm:$0xff]  ;;  %236 = vmatprep.subr.bf16.mxu1 %v3332_v8  ;;  %v2960_v18 = vcombine.high %v327_v14, %v331_v15  ;;  %v2959_v25 = vcombine.low %v327_v14, %v331_v15 }
  0x53   :  { %v459_v17 = vld [vmem:[#allocation8 + $0x5e0] sm:$0xff] }
  0x54   :  { %v319_v19 = vld [vmem:[#allocation8 + $0x180] sm:$0xff]  ;;  %v3088_v20 = vcombine.high %v455_v16, %v459_v17  ;;  %196 = vmatpush1.bf16.msra.mxu0 %v3334_v9  ;;  %v3087_v26 = vcombine.low %v455_v16, %v459_v17 }
  0x55   :  { %v323_v21 = vld [vmem:[#allocation8 + $0x1a0] sm:$0xff]  ;;  %237 = vmatpush1.bf16.msra.mxu1 %v3335_v12  ;;  %1849 = vmatprep.subr.bf16.mxu0 %v2960_v18 }
  0x56   :  { %v447_v22 = vld [vmem:[#allocation8 + $0x580] sm:$0xff]  ;;  %1890 = vmatprep.subr.bf16.mxu1 %v3088_v20  ;;  %v2952_v27 = vcombine.high %v319_v19, %v323_v21  ;;  %v2951_v33 = vcombine.low %v319_v19, %v323_v21 }
  0x57   :  { %v451_v23 = vld [vmem:[#allocation8 + $0x5a0] sm:$0xff]  ;;  %2900 = vmatmul.mubr.msk.bf16.vlgmr.msra.gmra.mxu0 %vm164_vm1, %v105_v24 }
  0x58   :  { %v3080_v28 = vcombine.high %v447_v22, %v451_v23  ;;  %v311_v29 = vld [vmem:[#allocation8 + $0x140] sm:$0xff]  ;;  %2902 = vmatmul.mubr.msk.bf16.vlgmr.msra.gmra.mxu1 %vm164_vm1, %v105_v24  ;;  %1850 = vmatpush1.bf16.msra.mxu0 %v2959_v25  ;;  %v3079_v34 = vcombine.low %v447_v22, %v451_v23 }
  0x59   :  { %v315_v30 = vld [vmem:[#allocation8 + $0x160] sm:$0xff]  ;;  %1891 = vmatpush1.bf16.msra.mxu1 %v3087_v26  ;;  %1851 = vmatprep.subr.bf16.mxu0 %v2952_v27 }
  0x5a   :  { %v439_v31 = vld [vmem:[#allocation8 + $0x540] sm:$0xff]  ;;  %1892 = vmatprep.subr.bf16.mxu1 %v3080_v28  ;;  %v2944_v35 = vcombine.high %v311_v29, %v315_v30  ;;  %v2943_v41 = vcombine.low %v311_v29, %v315_v30 }
  0x5b   :  { %v443_v32 = vld [vmem:[#allocation8 + $0x560] sm:$0xff] }
  0x5c   :  { %v3072_v36 = vcombine.high %v439_v31, %v443_v32  ;;  %v303_v37 = vld [vmem:[#allocation8 + $0x100] sm:$0xff]  ;;  %1852 = vmatpush1.bf16.msra.mxu0 %v2951_v33  ;;  %v3071_v42 = vcombine.low %v439_v31, %v443_v32 }
  0x5d   :  { %v307_v38 = vld [vmem:[#allocation8 + $0x120] sm:$0xff]  ;;  %1893 = vmatpush1.bf16.msra.mxu1 %v3079_v34  ;;  %1853 = vmatprep.subr.bf16.mxu0 %v2944_v35 }
  0x5e   :  { %v431_v39 = vld [vmem:[#allocation8 + $0x500] sm:$0xff]  ;;  %1894 = vmatprep.subr.bf16.mxu1 %v3072_v36  ;;  %v2936_v43 = vcombine.high %v303_v37, %v307_v38  ;;  %v2935_v49 = vcombine.low %v303_v37, %v307_v38 }
  0x5f   :  { %v435_v40 = vld [vmem:[#allocation8 + $0x520] sm:$0xff] }
  0x60   :  { %v3064_v44 = vcombine.high %v431_v39, %v435_v40  ;;  %v295_v45 = vld [vmem:[#allocation8 + $0xc0] sm:$0xff]  ;;  %1854 = vmatpush1.bf16.msra.mxu0 %v2943_v41  ;;  %v3063_v50 = vcombine.low %v431_v39, %v435_v40 }
  0x61   :  { %v299_v46 = vld [vmem:[#allocation8 + $0xe0] sm:$0xff]  ;;  %1895 = vmatpush1.bf16.msra.mxu1 %v3071_v42  ;;  %1855 = vmatprep.subr.bf16.mxu0 %v2936_v43 }
  0x62   :  { %v423_v47 = vld [vmem:[#allocation8 + $0x4c0] sm:$0xff]  ;;  %1896 = vmatprep.subr.bf16.mxu1 %v3064_v44  ;;  %v2928_v51 = vcombine.high %v295_v45, %v299_v46  ;;  %v2927_v57 = vcombine.low %v295_v45, %v299_v46 }
  0x63   :  { %v427_v48 = vld [vmem:[#allocation8 + $0x4e0] sm:$0xff] }
  0x64   :  { %v3056_v52 = vcombine.high %v423_v47, %v427_v48  ;;  %v287_v53 = vld [vmem:[#allocation8 + $0x80] sm:$0xff]  ;;  %1856 = vmatpush1.bf16.msra.mxu0 %v2935_v49  ;;  %v3055_v58 = vcombine.low %v423_v47, %v427_v48 }
  0x65   :  { %v291_v54 = vld [vmem:[#allocation8 + $0xa0] sm:$0xff]  ;;  %1897 = vmatpush1.bf16.msra.mxu1 %v3063_v50  ;;  %1857 = vmatprep.subr.bf16.mxu0 %v2928_v51 }
  0x66   :  { %v415_v55 = vld [vmem:[#allocation8 + $0x480] sm:$0xff]  ;;  %1898 = vmatprep.subr.bf16.mxu1 %v3056_v52  ;;  %v2920_v63 = vcombine.high %v287_v53, %v291_v54  ;;  %v2919_v1 = vcombine.low %v287_v53, %v291_v54 }
  0x67   :  { %v419_v56 = vld [vmem:[#allocation8 + $0x4a0] sm:$0xff] }
  0x68   :  { %v279_v59 = vld [vmem:[#allocation8 + $0x40] sm:$0xff]  ;;  %v3048_v0 = vcombine.high %v415_v55, %v419_v56  ;;  %1858 = vmatpush1.bf16.msra.mxu0 %v2927_v57  ;;  %v3047_v2 = vcombine.low %v415_v55, %v419_v56 }
  0x69   :  { %v283_v60 = vld [vmem:[#allocation8 + $0x60] sm:$0xff]  ;;  %1899 = vmatpush1.bf16.msra.mxu1 %v3055_v58  ;;  %1859 = vmatprep.subr.bf16.mxu0 %v2920_v63 }
  0x6a   :  { %v407_v61 = vld [vmem:[#allocation8 + $0x440] sm:$0xff]  ;;  %1900 = vmatprep.subr.bf16.mxu1 %v3048_v0  ;;  %v2912_v7 = vcombine.high %v279_v59, %v283_v60  ;;  %v2911_v9 = vcombine.low %v279_v59, %v283_v60 }
  0x6b   :  { %v411_v62 = vld [vmem:[#allocation8 + $0x460] sm:$0xff] }
  0x6c   :  { %v271_v3 = vld [vmem:[#allocation8] sm:$0xff]  ;;  %v3040_v8 = vcombine.high %v407_v61, %v411_v62  ;;  %1860 = vmatpush1.bf16.msra.mxu0 %v2919_v1  ;;  %v3039_v10 = vcombine.low %v407_v61, %v411_v62 }
  0x6d   :  { %v275_v4 = vld [vmem:[#allocation8 + $0x20] sm:$0xff]  ;;  %1901 = vmatpush1.bf16.msra.mxu1 %v3047_v2  ;;  %1861 = vmatprep.subr.bf16.mxu0 %v2912_v7 }
  0x6e   :  { %v399_v5 = vld [vmem:[#allocation8 + $0x400] sm:$0xff]  ;;  %1902 = vmatprep.subr.bf16.mxu1 %v3040_v8  ;;  %v2904_v15 = vcombine.high %v271_v3, %v275_v4  ;;  %v2903_v17 = vcombine.low %v271_v3, %v275_v4 }
  0x6f   :  { %v403_v6 = vld [vmem:[#allocation8 + $0x420] sm:$0xff] }
  0x70   :  { %v391_v11 = vld [vmem:[#allocation8 + $0x3c0] sm:$0xff]  ;;  %v3032_v16 = vcombine.high %v399_v5, %v403_v6  ;;  %1862 = vmatpush1.bf16.msra.mxu0 %v2911_v9  ;;  %v3031_v18 = vcombine.low %v399_v5, %v403_v6 }
  0x71   :  { %v395_v12 = vld [vmem:[#allocation8 + $0x3e0] sm:$0xff]  ;;  %1903 = vmatpush1.bf16.msra.mxu1 %v3039_v10  ;;  %1863 = vmatprep.subr.bf16.mxu0 %v2904_v15  ;;  %v328_v15 = vld [vmem:[#allocation8 + $0x1c8] sm:$0xff] }
  0x72   :  { %v519_v13 = vld [vmem:[#allocation8 + $0x7c0] sm:$0xff]  ;;  %1904 = vmatprep.subr.bf16.mxu1 %v3032_v16  ;;  %v3024_v23 = vcombine.high %v391_v11, %v395_v12  ;;  %v3023_v25 = vcombine.low %v391_v11, %v395_v12  ;;  %v332_v16 = vld [vmem:[#allocation8 + $0x1e8] sm:$0xff] }
  0x73   :  { %v523_v14 = vld [vmem:[#allocation8 + $0x7e0] sm:$0xff] }
  0x74   :  { %v383_v19 = vld [vmem:[#allocation8 + $0x380] sm:$0xff]  ;;  %v3152_v24 = vcombine.high %v519_v13, %v523_v14  ;;  %1864 = vmatpush1.bf16.msra.mxu0 %v2903_v17  ;;  %v3151_v26 = vcombine.low %v519_v13, %v523_v14  ;;  %v456_v17 = vld [vmem:[#allocation8 + $0x5c8] sm:$0xff] }
  0x75   :  { %v387_v20 = vld [vmem:[#allocation8 + $0x3a0] sm:$0xff]  ;;  %1905 = vmatpush1.bf16.msra.mxu1 %v3031_v18  ;;  %1865 = vmatprep.subr.bf16.mxu0 %v3024_v23  ;;  %v2962_v18 = vcombine.high %v328_v15, %v332_v16  ;;  %v114_v23 = vlaneseq }
  0x76   :  { %v511_v21 = vld [vmem:[#allocation8 + $0x780] sm:$0xff]  ;;  %1906 = vmatprep.subr.bf16.mxu1 %v3152_v24  ;;  %v3016_v31 = vcombine.high %v383_v19, %v387_v20  ;;  %v3015_v33 = vcombine.low %v383_v19, %v387_v20  ;;  %v460_v19 = vld [vmem:[#allocation8 + $0x5e8] sm:$0xff]  ;;  %v2961_v20 = vcombine.low %v328_v15, %v332_v16 }
  0x77   :  { %v515_v22 = vld [vmem:[#allocation8 + $0x7a0] sm:$0xff]  ;;  %v3622_v24 = vshrl.u32 %v114_v23, 7  ;;  %v428_v15 = vld [vmem:[#allocation8 + $0x4e8] sm:$0xff] }
  0x78   :  { %v375_v27 = vld [vmem:[#allocation8 + $0x340] sm:$0xff]  ;;  %v3144_v32 = vcombine.high %v511_v21, %v515_v22  ;;  %1866 = vmatpush2.bf16.msra.mxu0 %v3023_v25  ;;  %v3143_v34 = vcombine.low %v511_v21, %v515_v22  ;;  %v3089_v21 = vcombine.low %v456_v17, %v460_v19  ;;  %v3090_v22 = vcombine.high %v456_v17, %v460_v19  ;;  %v420_v23 = vld [vmem:[#allocation8 + $0x4a8] sm:$0xff] }
  0x79   :  { %v379_v28 = vld [vmem:[#allocation8 + $0x360] sm:$0xff]  ;;  %1907 = vmatpush2.bf16.msra.mxu1 %v3151_v26  ;;  %1867 = vmatprep.subr.bf16.mxu0 %v3016_v31  ;;  %v116_v25 = vsub.s32 0, %v3622_v24  ;;  %v124_v26 = vsub.s32 2, %v3622_v24 }
  0x7a   :  { %v503_v29 = vld [vmem:[#allocation8 + $0x740] sm:$0xff]  ;;  %1908 = vmatprep.subr.bf16.mxu1 %v3144_v32  ;;  %v3008_v39 = vcombine.high %v375_v27, %v379_v28  ;;  %v3007_v41 = vcombine.low %v375_v27, %v379_v28  ;;  %v112_v27 = vld [vmem:[#allocation7] sm:$0xf]  ;;  %v120_v28 = vsub.s32 1, %v3622_v24 }
  0x7b   :  { %v507_v30 = vld [vmem:[#allocation8 + $0x760] sm:$0xff]  ;;  %v125_v31 = vrot.slane %v112_v27, %v124_v26 }
  0x7c   :  { %v367_v35 = vld [vmem:[#allocation8 + $0x300] sm:$0xff]  ;;  %v3136_v40 = vcombine.high %v503_v29, %v507_v30  ;;  %1868 = vmatpush2.bf16.msra.mxu0 %v3015_v33  ;;  %v3135_v42 = vcombine.low %v503_v29, %v507_v30  ;;  %v128_v29 = vsub.s32 3, %v3622_v24  ;;  %v117_v30 = vrot.slane %v112_v27, %v116_v25 }
  0x7d   :  { %v371_v36 = vld [vmem:[#allocation8 + $0x320] sm:$0xff]  ;;  %1909 = vmatpush2.bf16.msra.mxu1 %v3143_v34  ;;  %1869 = vmatprep.subr.bf16.mxu0 %v3008_v39  ;;  %v121_v32 = vrot.slane %v112_v27, %v120_v28 }
  0x7e   :  { %v495_v37 = vld [vmem:[#allocation8 + $0x700] sm:$0xff]  ;;  %1910 = vmatprep.subr.bf16.mxu1 %v3136_v40  ;;  %v3000_v47 = vcombine.high %v367_v35, %v371_v36  ;;  %v2999_v49 = vcombine.low %v367_v35, %v371_v36  ;;  %v129_v33 = vrot.slane %v112_v27, %v128_v29 }
  0x7f   :  { %v499_v38 = vld [vmem:[#allocation8 + $0x720] sm:$0xff] }
  0x80   :  { %v359_v43 = vld [vmem:[#allocation8 + $0x2c0] sm:$0xff]  ;;  %v3128_v48 = vcombine.high %v495_v37, %v499_v38  ;;  %1870 = vmatpush2.bf16.msra.mxu0 %v3007_v41  ;;  %v3127_v50 = vcombine.low %v495_v37, %v499_v38 }
  0x81   :  { %v363_v44 = vld [vmem:[#allocation8 + $0x2e0] sm:$0xff]  ;;  %1911 = vmatpush2.bf16.msra.mxu1 %v3135_v42  ;;  %1871 = vmatprep.subr.bf16.mxu0 %v3000_v47 }
  0x82   :  { %v487_v45 = vld [vmem:[#allocation8 + $0x6c0] sm:$0xff]  ;;  %1912 = vmatprep.subr.bf16.mxu1 %v3128_v48  ;;  %v2992_v55 = vcombine.high %v359_v43, %v363_v44  ;;  %v2991_v57 = vcombine.low %v359_v43, %v363_v44  ;;  %v320_v48 = vld [vmem:[#allocation8 + $0x188] sm:$0xff] }
  0x83   :  { %v491_v46 = vld [vmem:[#allocation8 + $0x6e0] sm:$0xff] }
  0x84   :  { %v351_v51 = vld [vmem:[#allocation8 + $0x280] sm:$0xff]  ;;  %v3120_v56 = vcombine.high %v487_v45, %v491_v46  ;;  %1872 = vmatpush2.bf16.msra.mxu0 %v2999_v49  ;;  %v3119_v58 = vcombine.low %v487_v45, %v491_v46 }
  0x85   :  { %v355_v52 = vld [vmem:[#allocation8 + $0x2a0] sm:$0xff]  ;;  %1913 = vmatpush2.bf16.msra.mxu1 %v3127_v50  ;;  %1873 = vmatprep.subr.bf16.mxu0 %v2992_v55 }
  0x86   :  { %v479_v53 = vld [vmem:[#allocation8 + $0x680] sm:$0xff]  ;;  %1914 = vmatprep.subr.bf16.mxu1 %v3120_v56  ;;  %v2984_v59 = vcombine.high %v351_v51, %v355_v52  ;;  %v2983_v61 = vcombine.low %v351_v51, %v355_v52  ;;  %v324_v52 = vld [vmem:[#allocation8 + $0x1a8] sm:$0xff] }
  0x87   :  { %v483_v54 = vld [vmem:[#allocation8 + $0x6a0] sm:$0xff] }
  0x88   :  { %v3112_v60 = vcombine.high %v479_v53, %v483_v54  ;;  %1874 = vmatpush2.bf16.msra.mxu0 %v2991_v57  ;;  %v3111_v62 = vcombine.low %v479_v53, %v483_v54  ;;  %v343_v63 = vld [vmem:[#allocation8 + $0x240] sm:$0xff]  ;;  %v448_v53 = vld [vmem:[#allocation8 + $0x588] sm:$0xff] }
  0x89   :  { %1915 = vmatpush2.bf16.msra.mxu1 %v3119_v58  ;;  %1875 = vmatprep.subr.bf16.mxu0 %v2984_v59  ;;  %v347_v0 = vld [vmem:[#allocation8 + $0x260] sm:$0xff]  ;;  %v452_v54 = vld [vmem:[#allocation8 + $0x5a8] sm:$0xff]  ;;  %v2954_v59 = vcombine.high %v320_v48, %v324_v52 }
  0x8a   :  { %1916 = vmatprep.subr.bf16.mxu1 %v3112_v60  ;;  %v471_v1 = vld [vmem:[#allocation8 + $0x640] sm:$0xff]  ;;  %v2976_v2 = vcombine.high %v343_v63, %v347_v0  ;;  %v2975_v4 = vcombine.low %v343_v63, %v347_v0  ;;  %v312_v58 = vld [vmem:[#allocation8 + $0x148] sm:$0xff]  ;;  %v3082_v60 = vcombine.high %v448_v53, %v452_v54  ;;  %v2953_v0 = vcombine.low %v320_v48, %v324_v52 }
  0x8b   :  { %v475_v3 = vld [vmem:[#allocation8 + $0x660] sm:$0xff]  ;;  %v444_v63 = vld [vmem:[#allocation8 + $0x568] sm:$0xff] }
  0x8c   :  { %1876 = vmatpush2.bf16.msra.mxu0 %v2983_v61  ;;  %v3103_v5 = vcombine.low %v471_v1, %v475_v3  ;;  %v3104_v6 = vcombine.high %v471_v1, %v475_v3  ;;  %v335_v7 = vld [vmem:[#allocation8 + $0x200] sm:$0xff]  ;;  %v316_v61 = vld [vmem:[#allocation8 + $0x168] sm:$0xff]  ;;  %v3081_v1 = vcombine.low %v448_v53, %v452_v54 }
  0x8d   :  { %1917 = vmatpush2.bf16.msra.mxu1 %v3111_v62  ;;  %1877 = vmatprep.subr.bf16.mxu0 %v2976_v2  ;;  %v339_v8 = vld [vmem:[#allocation8 + $0x220] sm:$0xff]  ;;  %v440_v62 = vld [vmem:[#allocation8 + $0x548] sm:$0xff]  ;;  %v2946_v2 = vcombine.high %v312_v58, %v316_v61 }
  0x8e   :  { %1918 = vmatprep.subr.bf16.mxu1 %v3104_v6  ;;  %v463_v9 = vld [vmem:[#allocation8 + $0x600] sm:$0xff]  ;;  %v2968_v10 = vcombine.high %v335_v7, %v339_v8  ;;  %v2967_v12 = vcombine.low %v335_v7, %v339_v8  ;;  %v3074_v3 = vcombine.high %v440_v62, %v444_v63  ;;  %v432_v6 = vld [vmem:[#allocation8 + $0x508] sm:$0xff]  ;;  %v2945_v8 = vcombine.low %v312_v58, %v316_v61 }
  0x8f   :  { %v467_v11 = vld [vmem:[#allocation8 + $0x620] sm:$0xff]  ;;  %v436_v7 = vld [vmem:[#allocation8 + $0x528] sm:$0xff] }
  0x90   :  { %1878 = vmatpush2.bf16.msra.mxu0 %v2975_v4  ;;  %v3095_v13 = vcombine.low %v463_v9, %v467_v11  ;;  %v3096_v14 = vcombine.high %v463_v9, %v467_v11  ;;  %v304_v4 = vld [vmem:[#allocation8 + $0x108] sm:$0xff]  ;;  %v3073_v9 = vcombine.low %v440_v62, %v444_v63  ;;  %v3066_v11 = vcombine.high %v432_v6, %v436_v7 }
  0x91   :  { %1919 = vmatpush2.bf16.msra.mxu1 %v3103_v5  ;;  %1879 = vmatprep.subr.bf16.mxu0 %v2968_v10  ;;  %v308_v5 = vld [vmem:[#allocation8 + $0x128] sm:$0xff]  ;;  %v3065_v17 = vcombine.low %v432_v6, %v436_v7 }
  0x92   :  { %1920 = vmatprep.subr.bf16.mxu1 %v3096_v14  ;;  %v2938_v10 = vcombine.high %v304_v4, %v308_v5  ;;  %v424_v14 = vld [vmem:[#allocation8 + $0x4c8] sm:$0xff]  ;;  %v2937_v16 = vcombine.low %v304_v4, %v308_v5 }
  0x93   :  { %v3058_v19 = vcombine.high %v424_v14, %v428_v15  ;;  %v520_v52 = vld [vmem:[#allocation8 + $0x7c8] sm:$0xff] }
  0x94   :  { %1880 = vmatpush2.bf16.msra.mxu0 %v2967_v12  ;;  %v296_v12 = vld [vmem:[#allocation8 + $0xc8] sm:$0xff] }
  0x95   :  { %1921 = vmatpush2.bf16.msra.mxu1 %v3095_v13  ;;  %1931 = vmatprep.subr.bf16.mxu0 %v2962_v18  ;;  %v300_v13 = vld [vmem:[#allocation8 + $0xe8] sm:$0xff] }
  0x96   :  { %1972 = vmatprep.subr.bf16.mxu1 %v3090_v22  ;;  %v2930_v18 = vcombine.high %v296_v12, %v300_v13  ;;  %v416_v22 = vld [vmem:[#allocation8 + $0x488] sm:$0xff]  ;;  %v2929_v27 = vcombine.low %v296_v12, %v300_v13 }
  0x97   :  { %v524_v53 = vld [vmem:[#allocation8 + $0x7e8] sm:$0xff] }
  0x98   :  { %v384_v61 = vld [vmem:[#allocation8 + $0x388] sm:$0xff] }
  0x99   :  { %v388_v62 = vld [vmem:[#allocation8 + $0x3a8] sm:$0xff] }
  0x9a   :  { %v512_v63 = vld [vmem:[#allocation8 + $0x788] sm:$0xff] }
  0x9b   :  { %v376_v5 = vld [vmem:[#allocation8 + $0x348] sm:$0xff] }
  0x9c   :  { %v380_v6 = vld [vmem:[#allocation8 + $0x368] sm:$0xff] }
  0x9d   :  { %v504_v7 = vld [vmem:[#allocation8 + $0x748] sm:$0xff] }
  0x9e   :  { %v368_v13 = vld [vmem:[#allocation8 + $0x308] sm:$0xff] }
 0x117   :  { %v215_v34 = vpop.f32.mrf.mxu0 }
 0x118   :  { %v256_v35 = vpop.f32.mrf.mxu1  ;;  %v216_v36 = vadd.f32 %v215_v34, %v117_v30  ;;  %v3057_v30 = vcombine.low %v424_v14, %v428_v15  ;;  %v284_v34 = vld [vmem:[#allocation8 + $0x68] sm:$0xff] }
 0x119   :  { %v257_v37 = vadd.f32 %v256_v35, %v125_v31  ;;  %v217_v38 = vpop.f32.mrf.mxu0  ;;  %v408_v35 = vld [vmem:[#allocation8 + $0x448] sm:$0xff] }
 0x11a   :  { %v258_v39 = vpop.f32.mrf.mxu1  ;;  %v218_v41 = vadd.f32 %v217_v38, %v121_v32  ;;  %v263_v43 = vmax.f32 %v216_v36, 0.0  ;;  %v3050_v32 = vcombine.high %v416_v22, %v420_v23  ;;  %v412_v36 = vld [vmem:[#allocation8 + $0x468] sm:$0xff]  ;;  %v3049_v38 = vcombine.low %v416_v22, %v420_v23 }
 0x11b   :  { %v265_v40 = vmax.f32 %v257_v37, 0.0  ;;  %v259_v42 = vadd.f32 %v258_v39, %v129_v33  ;;  %v219_v44 = vpop.f32.mrf.mxu0  ;;  %v280_v33 = vld [vmem:[#allocation8 + $0x48] sm:$0xff] }
 0x11c   :  { %v260_v45 = vpop.f32.mrf.mxu1  ;;  %v264_v46 = vmax.f32 %v218_v41, 0.0  ;;  %v3642_v57 = vpack.c.bf16 %v263_v43, %v263_v43  ;;  %v2914_v39 = vcombine.high %v280_v33, %v284_v34  ;;  %v272_v41 = vld [vmem:[#allocation8 + $0x8] sm:$0xff] }
 0x11d   :  { %v266_v47 = vmax.f32 %v259_v42, 0.0  ;;  %v3636_v49 = vpack.c.bf16 %v265_v40, %v265_v40  ;;  %v220_v50 = vpop.f32.mrf.mxu0  ;;  %v3042_v40 = vcombine.high %v408_v35, %v412_v36  ;;  %v276_v42 = vld [vmem:[#allocation8 + $0x28] sm:$0xff]  ;;  %v2913_v45 = vcombine.low %v280_v33, %v284_v34 }
 0x11e   :  { %v261_v51 = vpop.f32.mrf.mxu1  ;;  %v3638_v55 = vpack.c.bf16 %v264_v46, %v264_v46  ;;  %v400_v43 = vld [vmem:[#allocation8 + $0x408] sm:$0xff]  ;;  %v3041_v46 = vcombine.low %v408_v35, %v412_v36  ;;  %v2905_v54 = vcombine.low %v272_v41, %v276_v42 }
 0x11f   :  { %v3640_v56 = vpack.c.bf16 %v266_v47, %v266_v47  ;;  %v404_v44 = vld [vmem:[#allocation8 + $0x428] sm:$0xff]  ;;  %v2906_v47 = vcombine.high %v272_v41, %v276_v42 }
 0x120   :  { %1881 = vmatprep.mubr.bf16.mxu0 %v3638_v55  ;;  %v3034_v48 = vcombine.high %v400_v43, %v404_v44  ;;  %v392_v50 = vld [vmem:[#allocation8 + $0x3c8] sm:$0xff]  ;;  %v3033_v58 = vcombine.low %v400_v43, %v404_v44 }
 0x121   :  { %1922 = vmatprep.mubr.bf16.mxu1 %v3640_v56  ;;  %1882 = vmatmul.mubr.bf16.vlgmr.msra.gmra.mxu0 %v3642_v57  ;;  %v396_v51 = vld [vmem:[#allocation8 + $0x3e8] sm:$0xff] }
 0x122   :  { %1923 = vmatmul.mubr.bf16.vlgmr.msra.gmra.mxu1 %v3636_v49  ;;  %1932 = vmatpush1.bf16.msra.mxu0 %v2961_v20  ;;  %v288_v20 = vld [vmem:[#allocation8 + $0x88] sm:$0xff] }
 0x123   :  { %1973 = vmatpush1.bf16.msra.mxu1 %v3089_v21  ;;  %1963 = vmatprep.mubr.bf16.mxu0 %v3638_v55  ;;  %v292_v21 = vld [vmem:[#allocation8 + $0xa8] sm:$0xff] }
 0x124   :  { %2004 = vmatprep.mubr.bf16.mxu1 %v3640_v56  ;;  %1933 = vmatprep.subr.bf16.mxu0 %v2954_v59  ;;  %v2922_v31 = vcombine.high %v288_v20, %v292_v21  ;;  %v2921_v37 = vcombine.low %v288_v20, %v292_v21  ;;  %v3026_v59 = vcombine.high %v392_v50, %v396_v51  ;;  %v372_v14 = vld [vmem:[#allocation8 + $0x328] sm:$0xff] }
 0x125   :  { %1974 = vmatprep.subr.bf16.mxu1 %v3082_v60  ;;  %v3154_v60 = vcombine.high %v520_v52, %v524_v53  ;;  %v496_v15 = vld [vmem:[#allocation8 + $0x708] sm:$0xff] }
 0x126   :  { %1934 = vmatpush1.bf16.msra.mxu0 %v2953_v0  ;;  %v516_v0 = vld [vmem:[#allocation8 + $0x7a8] sm:$0xff] }
 0x127   :  { %1975 = vmatpush1.bf16.msra.mxu1 %v3081_v1  ;;  %1935 = vmatprep.subr.bf16.mxu0 %v2946_v2  ;;  %v3025_v1 = vcombine.low %v392_v50, %v396_v51  ;;  %v3153_v2 = vcombine.low %v520_v52, %v524_v53  ;;  %v3146_v4 = vcombine.high %v512_v63, %v516_v0  ;;  %v360_v21 = vld [vmem:[#allocation8 + $0x2c8] sm:$0xff] }
 0x128   :  { %1976 = vmatprep.subr.bf16.mxu1 %v3074_v3  ;;  %v3018_v3 = vcombine.high %v384_v61, %v388_v62  ;;  %v364_v22 = vld [vmem:[#allocation8 + $0x2e8] sm:$0xff] }
 0x129   :  { %v488_v23 = vld [vmem:[#allocation8 + $0x6c8] sm:$0xff] }
 0x12a   :  { %1936 = vmatpush1.bf16.msra.mxu0 %v2945_v8  ;;  %v508_v8 = vld [vmem:[#allocation8 + $0x768] sm:$0xff] }
 0x12b   :  { %1977 = vmatpush1.bf16.msra.mxu1 %v3073_v9  ;;  %1937 = vmatprep.subr.bf16.mxu0 %v2938_v10  ;;  %v3017_v9 = vcombine.low %v384_v61, %v388_v62  ;;  %v3145_v10 = vcombine.low %v512_v63, %v516_v0  ;;  %v3138_v12 = vcombine.high %v504_v7, %v508_v8  ;;  %v352_v34 = vld [vmem:[#allocation8 + $0x288] sm:$0xff]  ;;  %v329_v62 = vld [vmem:[#allocation8 + $0x1d0] sm:$0xff] }
 0x12c   :  { %1978 = vmatprep.subr.bf16.mxu1 %v3066_v11  ;;  %v3010_v11 = vcombine.high %v376_v5, %v380_v6  ;;  %v356_v35 = vld [vmem:[#allocation8 + $0x2a8] sm:$0xff]  ;;  %v333_v63 = vld [vmem:[#allocation8 + $0x1f0] sm:$0xff] }
 0x12d   :  { %v480_v36 = vld [vmem:[#allocation8 + $0x688] sm:$0xff]  ;;  %v457_v0 = vld [vmem:[#allocation8 + $0x5d0] sm:$0xff] }
 0x12e   :  { %1938 = vmatpush1.bf16.msra.mxu0 %v2937_v16  ;;  %v500_v16 = vld [vmem:[#allocation8 + $0x728] sm:$0xff] }
 0x12f   :  { %1979 = vmatpush1.bf16.msra.mxu1 %v3065_v17  ;;  %1939 = vmatprep.subr.bf16.mxu0 %v2930_v18  ;;  %v3009_v17 = vcombine.low %v376_v5, %v380_v6  ;;  %v3137_v18 = vcombine.low %v504_v7, %v508_v8  ;;  %v3130_v20 = vcombine.high %v496_v15, %v500_v16  ;;  %v344_v42 = vld [vmem:[#allocation8 + $0x248] sm:$0xff]  ;;  %v321_v6 = vld [vmem:[#allocation8 + $0x190] sm:$0xff] }
 0x130   :  { %1980 = vmatprep.subr.bf16.mxu1 %v3058_v19  ;;  %v3002_v19 = vcombine.high %v368_v13, %v372_v14  ;;  %v348_v43 = vld [vmem:[#allocation8 + $0x268] sm:$0xff]  ;;  %v325_v7 = vld [vmem:[#allocation8 + $0x1b0] sm:$0xff] }
 0x131   :  { %v472_v44 = vld [vmem:[#allocation8 + $0x648] sm:$0xff]  ;;  %v449_v8 = vld [vmem:[#allocation8 + $0x590] sm:$0xff] }
 0x132   :  { %1940 = vmatpush1.bf16.msra.mxu0 %v2929_v27  ;;  %v492_v27 = vld [vmem:[#allocation8 + $0x6e8] sm:$0xff] }
 0x133   :  { %1981 = vmatpush1.bf16.msra.mxu1 %v3057_v30  ;;  %1941 = vmatprep.subr.bf16.mxu0 %v2922_v31  ;;  %v3001_v30 = vcombine.low %v368_v13, %v372_v14  ;;  %v3129_v31 = vcombine.low %v496_v15, %v500_v16  ;;  %v3122_v33 = vcombine.high %v488_v23, %v492_v27  ;;  %v336_v51 = vld [vmem:[#allocation8 + $0x208] sm:$0xff]  ;;  %v313_v14 = vld [vmem:[#allocation8 + $0x150] sm:$0xff] }
 0x134   :  { %1982 = vmatprep.subr.bf16.mxu1 %v3050_v32  ;;  %v2994_v32 = vcombine.high %v360_v21, %v364_v22  ;;  %v340_v52 = vld [vmem:[#allocation8 + $0x228] sm:$0xff]  ;;  %v317_v15 = vld [vmem:[#allocation8 + $0x170] sm:$0xff] }
 0x135   :  { %v464_v53 = vld [vmem:[#allocation8 + $0x608] sm:$0xff]  ;;  %v441_v16 = vld [vmem:[#allocation8 + $0x550] sm:$0xff] }
 0x136   :  { %1942 = vmatpush1.bf16.msra.mxu0 %v2921_v37  ;;  %v484_v37 = vld [vmem:[#allocation8 + $0x6a8] sm:$0xff] }
 0x137   :  { %1983 = vmatpush1.bf16.msra.mxu1 %v3049_v38  ;;  %1943 = vmatprep.subr.bf16.mxu0 %v2914_v39  ;;  %v2993_v38 = vcombine.low %v360_v21, %v364_v22  ;;  %v3121_v39 = vcombine.low %v488_v23, %v492_v27  ;;  %v3114_v41 = vcombine.high %v480_v36, %v484_v37  ;;  %v305_v22 = vld [vmem:[#allocation8 + $0x110] sm:$0xff] }
 0x138   :  { %1984 = vmatprep.subr.bf16.mxu1 %v3042_v40  ;;  %v2986_v40 = vcombine.high %v352_v34, %v356_v35  ;;  %v309_v23 = vld [vmem:[#allocation8 + $0x130] sm:$0xff] }
 0x139   :  { %v433_v27 = vld [vmem:[#allocation8 + $0x510] sm:$0xff] }
 0x13a   :  { %1944 = vmatpush1.bf16.msra.mxu0 %v2913_v45  ;;  %v476_v45 = vld [vmem:[#allocation8 + $0x668] sm:$0xff] }
 0x13b   :  { %1985 = vmatpush1.bf16.msra.mxu1 %v3041_v46  ;;  %1945 = vmatprep.subr.bf16.mxu0 %v2906_v47  ;;  %v2985_v46 = vcombine.low %v352_v34, %v356_v35  ;;  %v3113_v47 = vcombine.low %v480_v36, %v484_v37  ;;  %v3106_v50 = vcombine.high %v472_v44, %v476_v45  ;;  %v297_v35 = vld [vmem:[#allocation8 + $0xd0] sm:$0xff] }
 0x13c   :  { %1986 = vmatprep.subr.bf16.mxu1 %v3034_v48  ;;  %v2978_v48 = vcombine.high %v344_v42, %v348_v43  ;;  %v301_v36 = vld [vmem:[#allocation8 + $0xf0] sm:$0xff] }
 0x13d   :  { %v425_v37 = vld [vmem:[#allocation8 + $0x4d0] sm:$0xff] }
 0x13e   :  { %1946 = vmatpush1.bf16.msra.mxu0 %v2905_v54  ;;  %v468_v54 = vld [vmem:[#allocation8 + $0x628] sm:$0xff] }
 0x13f   :  { %1987 = vmatpush1.bf16.msra.mxu1 %v3033_v58  ;;  %1947 = vmatprep.subr.bf16.mxu0 %v3026_v59  ;;  %v2977_v58 = vcombine.low %v344_v42, %v348_v43  ;;  %v3105_v59 = vcombine.low %v472_v44, %v476_v45  ;;  %v3098_v61 = vcombine.high %v464_v53, %v468_v54  ;;  %v289_v43 = vld [vmem:[#allocation8 + $0x90] sm:$0xff] }
 0x140   :  { %1988 = vmatprep.subr.bf16.mxu1 %v3154_v60  ;;  %v2970_v60 = vcombine.high %v336_v51, %v340_v52  ;;  %v293_v44 = vld [vmem:[#allocation8 + $0xb0] sm:$0xff] }
 0x141   :  { %v417_v45 = vld [vmem:[#allocation8 + $0x490] sm:$0xff] }
 0x142   :  { %1948 = vmatpush2.bf16.msra.mxu0 %v3025_v1  ;;  %v461_v1 = vld [vmem:[#allocation8 + $0x5f0] sm:$0xff] }
 0x143   :  { %1989 = vmatpush2.bf16.msra.mxu1 %v3153_v2  ;;  %1949 = vmatprep.subr.bf16.mxu0 %v3018_v3  ;;  %v2969_v2 = vcombine.low %v336_v51, %v340_v52  ;;  %v3097_v3 = vcombine.low %v464_v53, %v468_v54  ;;  %v3092_v5 = vcombine.high %v457_v0, %v461_v1  ;;  %v281_v52 = vld [vmem:[#allocation8 + $0x50] sm:$0xff] }
 0x144   :  { %1990 = vmatprep.subr.bf16.mxu1 %v3146_v4  ;;  %v2964_v4 = vcombine.high %v329_v62, %v333_v63  ;;  %v285_v53 = vld [vmem:[#allocation8 + $0x70] sm:$0xff] }
 0x145   :  { %v409_v54 = vld [vmem:[#allocation8 + $0x450] sm:$0xff] }
 0x146   :  { %1950 = vmatpush2.bf16.msra.mxu0 %v3017_v9  ;;  %v453_v9 = vld [vmem:[#allocation8 + $0x5b0] sm:$0xff] }
 0x147   :  { %1991 = vmatpush2.bf16.msra.mxu1 %v3145_v10  ;;  %1951 = vmatprep.subr.bf16.mxu0 %v3010_v11  ;;  %v2963_v10 = vcombine.low %v329_v62, %v333_v63  ;;  %v3091_v11 = vcombine.low %v457_v0, %v461_v1  ;;  %v3084_v13 = vcombine.high %v449_v8, %v453_v9  ;;  %v273_v63 = vld [vmem:[#allocation8 + $0x10] sm:$0xff] }
 0x148   :  { %1992 = vmatprep.subr.bf16.mxu1 %v3138_v12  ;;  %v2956_v12 = vcombine.high %v321_v6, %v325_v7  ;;  %v277_v0 = vld [vmem:[#allocation8 + $0x30] sm:$0xff] }
 0x149   :  { %v401_v1 = vld [vmem:[#allocation8 + $0x410] sm:$0xff] }
 0x14a   :  { %1952 = vmatpush2.bf16.msra.mxu0 %v3009_v17  ;;  %v445_v17 = vld [vmem:[#allocation8 + $0x570] sm:$0xff] }
 0x14b   :  { %1993 = vmatpush2.bf16.msra.mxu1 %v3137_v18  ;;  %1953 = vmatprep.subr.bf16.mxu0 %v3002_v19  ;;  %v2955_v18 = vcombine.low %v321_v6, %v325_v7  ;;  %v3083_v19 = vcombine.low %v449_v8, %v453_v9  ;;  %v3076_v21 = vcombine.high %v441_v16, %v445_v17  ;;  %v393_v7 = vld [vmem:[#allocation8 + $0x3d0] sm:$0xff] }
 0x14c   :  { %1994 = vmatprep.subr.bf16.mxu1 %v3130_v20  ;;  %v2948_v20 = vcombine.high %v313_v14, %v317_v15  ;;  %v397_v8 = vld [vmem:[#allocation8 + $0x3f0] sm:$0xff] }
 0x14d   :  { %v521_v9 = vld [vmem:[#allocation8 + $0x7d0] sm:$0xff] }
 0x14e   :  { %1954 = vmatpush2.bf16.msra.mxu0 %v3001_v30  ;;  %v437_v30 = vld [vmem:[#allocation8 + $0x530] sm:$0xff] }
 0x14f   :  { %1995 = vmatpush2.bf16.msra.mxu1 %v3129_v31  ;;  %1955 = vmatprep.subr.bf16.mxu0 %v2994_v32  ;;  %v2947_v31 = vcombine.low %v313_v14, %v317_v15  ;;  %v3075_v32 = vcombine.low %v441_v16, %v445_v17  ;;  %v3068_v34 = vcombine.high %v433_v27, %v437_v30  ;;  %v385_v15 = vld [vmem:[#allocation8 + $0x390] sm:$0xff] }
 0x150   :  { %1996 = vmatprep.subr.bf16.mxu1 %v3122_v33  ;;  %v2940_v33 = vcombine.high %v305_v22, %v309_v23  ;;  %v389_v16 = vld [vmem:[#allocation8 + $0x3b0] sm:$0xff] }
 0x151   :  { %v513_v17 = vld [vmem:[#allocation8 + $0x790] sm:$0xff] }
 0x152   :  { %1956 = vmatpush2.bf16.msra.mxu0 %v2993_v38  ;;  %v429_v38 = vld [vmem:[#allocation8 + $0x4f0] sm:$0xff] }
 0x153   :  { %1997 = vmatpush2.bf16.msra.mxu1 %v3121_v39  ;;  %1957 = vmatprep.subr.bf16.mxu0 %v2986_v40  ;;  %v2939_v39 = vcombine.low %v305_v22, %v309_v23  ;;  %v3067_v40 = vcombine.low %v433_v27, %v437_v30  ;;  %v3060_v42 = vcombine.high %v425_v37, %v429_v38  ;;  %v377_v23 = vld [vmem:[#allocation8 + $0x350] sm:$0xff] }
 0x154   :  { %1998 = vmatprep.subr.bf16.mxu1 %v3114_v41  ;;  %v2932_v41 = vcombine.high %v297_v35, %v301_v36  ;;  %v381_v27 = vld [vmem:[#allocation8 + $0x370] sm:$0xff] }
 0x155   :  { %v505_v30 = vld [vmem:[#allocation8 + $0x750] sm:$0xff] }
 0x156   :  { %1958 = vmatpush2.bf16.msra.mxu0 %v2985_v46  ;;  %v421_v46 = vld [vmem:[#allocation8 + $0x4b0] sm:$0xff] }
 0x157   :  { %1999 = vmatpush2.bf16.msra.mxu1 %v3113_v47  ;;  %1959 = vmatprep.subr.bf16.mxu0 %v2978_v48  ;;  %v2931_v47 = vcombine.low %v297_v35, %v301_v36  ;;  %v3059_v48 = vcombine.low %v425_v37, %v429_v38  ;;  %v3052_v51 = vcombine.high %v417_v45, %v421_v46  ;;  %v369_v36 = vld [vmem:[#allocation8 + $0x310] sm:$0xff] }
 0x158   :  { %2000 = vmatprep.subr.bf16.mxu1 %v3106_v50  ;;  %v2924_v50 = vcombine.high %v289_v43, %v293_v44  ;;  %v373_v37 = vld [vmem:[#allocation8 + $0x330] sm:$0xff] }
 0x159   :  { %v497_v38 = vld [vmem:[#allocation8 + $0x710] sm:$0xff] }
 0x15a   :  { %1960 = vmatpush2.bf16.msra.mxu0 %v2977_v58  ;;  %v413_v58 = vld [vmem:[#allocation8 + $0x470] sm:$0xff] }
 0x15b   :  { %2001 = vmatpush2.bf16.msra.mxu1 %v3105_v59  ;;  %1961 = vmatprep.subr.bf16.mxu0 %v2970_v60  ;;  %v2923_v59 = vcombine.low %v289_v43, %v293_v44  ;;  %v3051_v60 = vcombine.low %v417_v45, %v421_v46  ;;  %v3044_v62 = vcombine.high %v409_v54, %v413_v58  ;;  %v361_v44 = vld [vmem:[#allocation8 + $0x2d0] sm:$0xff] }
 0x15c   :  { %2002 = vmatprep.subr.bf16.mxu1 %v3098_v61  ;;  %v2916_v61 = vcombine.high %v281_v52, %v285_v53  ;;  %v365_v45 = vld [vmem:[#allocation8 + $0x2f0] sm:$0xff] }
 0x15d   :  { %v489_v46 = vld [vmem:[#allocation8 + $0x6d0] sm:$0xff] }
 0x15e   :  { %1962 = vmatpush2.bf16.msra.mxu0 %v2969_v2  ;;  %v405_v2 = vld [vmem:[#allocation8 + $0x430] sm:$0xff] }
 0x15f   :  { %2003 = vmatpush2.bf16.msra.mxu1 %v3097_v3  ;;  %2013 = vmatprep.subr.bf16.mxu0 %v2964_v4  ;;  %v2915_v3 = vcombine.low %v281_v52, %v285_v53  ;;  %v3043_v4 = vcombine.low %v409_v54, %v413_v58  ;;  %v3036_v6 = vcombine.high %v401_v1, %v405_v2  ;;  %v353_v53 = vld [vmem:[#allocation8 + $0x290] sm:$0xff] }
 0x160   :  { %2054 = vmatprep.subr.bf16.mxu1 %v3092_v5  ;;  %v2908_v5 = vcombine.high %v273_v63, %v277_v0  ;;  %v357_v54 = vld [vmem:[#allocation8 + $0x2b0] sm:$0xff] }
 0x161   :  { %1964 = vmatmul.mubr.bf16.vlgmr.msra.gmra.mxu0 %v3642_v57  ;;  %v481_v58 = vld [vmem:[#allocation8 + $0x690] sm:$0xff] }
 0x162   :  { %2005 = vmatmul.mubr.bf16.vlgmr.msra.gmra.mxu1 %v3636_v49  ;;  %2014 = vmatpush1.bf16.msra.mxu0 %v2963_v10  ;;  %v525_v10 = vld [vmem:[#allocation8 + $0x7f0] sm:$0xff] }
 0x163   :  { %2045 = vmatprep.mubr.bf16.mxu0 %v3638_v55  ;;  %2055 = vmatpush1.bf16.msra.mxu1 %v3091_v11  ;;  %v2907_v11 = vcombine.low %v273_v63, %v277_v0  ;;  %v3156_v14 = vcombine.high %v521_v9, %v525_v10  ;;  %v345_v0 = vld [vmem:[#allocation8 + $0x250] sm:$0xff] }
 0x164   :  { %2086 = vmatprep.mubr.bf16.mxu1 %v3640_v56  ;;  %2015 = vmatprep.subr.bf16.mxu0 %v2956_v12  ;;  %v3035_v12 = vcombine.low %v401_v1, %v405_v2  ;;  %v349_v1 = vld [vmem:[#allocation8 + $0x270] sm:$0xff] }
 0x165   :  { %2056 = vmatprep.subr.bf16.mxu1 %v3084_v13  ;;  %v3028_v13 = vcombine.high %v393_v7, %v397_v8  ;;  %v473_v2 = vld [vmem:[#allocation8 + $0x650] sm:$0xff] }
 0x166   :  { %2016 = vmatpush1.bf16.msra.mxu0 %v2955_v18  ;;  %v517_v18 = vld [vmem:[#allocation8 + $0x7b0] sm:$0xff] }
 0x167   :  { %2057 = vmatpush1.bf16.msra.mxu1 %v3083_v19  ;;  %2017 = vmatprep.subr.bf16.mxu0 %v2948_v20  ;;  %v3027_v19 = vcombine.low %v393_v7, %v397_v8  ;;  %v3155_v20 = vcombine.low %v521_v9, %v525_v10  ;;  %v3148_v22 = vcombine.high %v513_v17, %v517_v18  ;;  %v337_v8 = vld [vmem:[#allocation8 + $0x210] sm:$0xff] }
 0x168   :  { %2058 = vmatprep.subr.bf16.mxu1 %v3076_v21  ;;  %v3020_v21 = vcombine.high %v385_v15, %v389_v16  ;;  %v341_v9 = vld [vmem:[#allocation8 + $0x230] sm:$0xff] }
 0x169   :  { %v465_v10 = vld [vmem:[#allocation8 + $0x610] sm:$0xff] }
 0x16a   :  { %2018 = vmatpush1.bf16.msra.mxu0 %v2947_v31  ;;  %v509_v31 = vld [vmem:[#allocation8 + $0x770] sm:$0xff] }
 0x16b   :  { %2059 = vmatpush1.bf16.msra.mxu1 %v3075_v32  ;;  %2019 = vmatprep.subr.bf16.mxu0 %v2940_v33  ;;  %v3019_v32 = vcombine.low %v385_v15, %v389_v16  ;;  %v3147_v33 = vcombine.low %v513_v17, %v517_v18  ;;  %v3140_v35 = vcombine.high %v505_v30, %v509_v31  ;;  %v330_v16 = vld [vmem:[#allocation8 + $0x1d8] sm:$0xff] }
 0x16c   :  { %2060 = vmatprep.subr.bf16.mxu1 %v3068_v34  ;;  %v3012_v34 = vcombine.high %v377_v23, %v381_v27  ;;  %v334_v17 = vld [vmem:[#allocation8 + $0x1f8] sm:$0xff] }
 0x16d   :  { %v458_v18 = vld [vmem:[#allocation8 + $0x5d8] sm:$0xff] }
 0x16e   :  { %2020 = vmatpush1.bf16.msra.mxu0 %v2939_v39  ;;  %v501_v39 = vld [vmem:[#allocation8 + $0x730] sm:$0xff] }
 0x16f   :  { %2061 = vmatpush1.bf16.msra.mxu1 %v3067_v40  ;;  %2021 = vmatprep.subr.bf16.mxu0 %v2932_v41  ;;  %v3011_v40 = vcombine.low %v377_v23, %v381_v27  ;;  %v3139_v41 = vcombine.low %v505_v30, %v509_v31  ;;  %v3132_v43 = vcombine.high %v497_v38, %v501_v39  ;;  %v322_v27 = vld [vmem:[#allocation8 + $0x198] sm:$0xff] }
 0x170   :  { %2062 = vmatprep.subr.bf16.mxu1 %v3060_v42  ;;  %v3004_v42 = vcombine.high %v369_v36, %v373_v37  ;;  %v326_v30 = vld [vmem:[#allocation8 + $0x1b8] sm:$0xff]  ;;  %v2965_v31 = vcombine.low %v330_v16, %v334_v17 }
 0x172   :  { %2022 = vmatpush1.bf16.msra.mxu0 %v2931_v47  ;;  %v493_v47 = vld [vmem:[#allocation8 + $0x6f0] sm:$0xff] }
 0x173   :  { %2063 = vmatpush1.bf16.msra.mxu1 %v3059_v48  ;;  %2023 = vmatprep.subr.bf16.mxu0 %v2924_v50  ;;  %v3003_v48 = vcombine.low %v369_v36, %v373_v37  ;;  %v3131_v50 = vcombine.low %v497_v38, %v501_v39  ;;  %v3124_v52 = vcombine.high %v489_v46, %v493_v47  ;;  %v314_v36 = vld [vmem:[#allocation8 + $0x158] sm:$0xff] }
 0x174   :  { %2064 = vmatprep.subr.bf16.mxu1 %v3052_v51  ;;  %v2996_v51 = vcombine.high %v361_v44, %v365_v45  ;;  %v318_v37 = vld [vmem:[#allocation8 + $0x178] sm:$0xff] }
 0x175   :  { %v442_v39 = vld [vmem:[#allocation8 + $0x558] sm:$0xff] }
 0x176   :  { %2024 = vmatpush1.bf16.msra.mxu0 %v2923_v59  ;;  %v485_v59 = vld [vmem:[#allocation8 + $0x6b0] sm:$0xff] }
 0x177   :  { %2065 = vmatpush1.bf16.msra.mxu1 %v3051_v60  ;;  %2025 = vmatprep.subr.bf16.mxu0 %v2916_v61  ;;  %v2995_v60 = vcombine.low %v361_v44, %v365_v45  ;;  %v3123_v61 = vcombine.low %v489_v46, %v493_v47  ;;  %v3116_v63 = vcombine.high %v481_v58, %v485_v59  ;;  %v306_v45 = vld [vmem:[#allocation8 + $0x118] sm:$0xff] }
 0x178   :  { %2066 = vmatprep.subr.bf16.mxu1 %v3044_v62  ;;  %v2988_v62 = vcombine.high %v353_v53, %v357_v54  ;;  %v310_v46 = vld [vmem:[#allocation8 + $0x138] sm:$0xff] }
 0x179   :  { %v434_v47 = vld [vmem:[#allocation8 + $0x518] sm:$0xff] }
 0x17a   :  { %2026 = vmatpush1.bf16.msra.mxu0 %v2915_v3  ;;  %v477_v3 = vld [vmem:[#allocation8 + $0x670] sm:$0xff] }
 0x17b   :  { %2067 = vmatpush1.bf16.msra.mxu1 %v3043_v4  ;;  %2027 = vmatprep.subr.bf16.mxu0 %v2908_v5  ;;  %v2987_v4 = vcombine.low %v353_v53, %v357_v54  ;;  %v3115_v5 = vcombine.low %v481_v58, %v485_v59  ;;  %v3108_v7 = vcombine.high %v473_v2, %v477_v3  ;;  %v298_v53 = vld [vmem:[#allocation8 + $0xd8] sm:$0xff] }
 0x17c   :  { %2068 = vmatprep.subr.bf16.mxu1 %v3036_v6  ;;  %v2980_v6 = vcombine.high %v345_v0, %v349_v1  ;;  %v302_v54 = vld [vmem:[#allocation8 + $0xf8] sm:$0xff] }
 0x17d   :  { %v426_v58 = vld [vmem:[#allocation8 + $0x4d8] sm:$0xff] }
 0x17e   :  { %2028 = vmatpush1.bf16.msra.mxu0 %v2907_v11  ;;  %v469_v11 = vld [vmem:[#allocation8 + $0x630] sm:$0xff]  ;;  %v430_v59 = vld [vmem:[#allocation8 + $0x4f8] sm:$0xff] }
 0x17f   :  { %2069 = vmatpush1.bf16.msra.mxu1 %v3035_v12  ;;  %2029 = vmatprep.subr.bf16.mxu0 %v3028_v13  ;;  %v2979_v12 = vcombine.low %v345_v0, %v349_v1  ;;  %v3107_v13 = vcombine.low %v473_v2, %v477_v3  ;;  %v3100_v15 = vcombine.high %v465_v10, %v469_v11  ;;  %v294_v0 = vld [vmem:[#allocation8 + $0xb8] sm:$0xff] }
 0x180   :  { %2070 = vmatprep.subr.bf16.mxu1 %v3156_v14  ;;  %v2972_v14 = vcombine.high %v337_v8, %v341_v9  ;;  %v418_v1 = vld [vmem:[#allocation8 + $0x498] sm:$0xff]  ;;  %v2933_v3 = vcombine.low %v298_v53, %v302_v54 }
 0x181   :  { %v422_v2 = vld [vmem:[#allocation8 + $0x4b8] sm:$0xff] }
 0x182   :  { %2030 = vmatpush2.bf16.msra.mxu0 %v3027_v19  ;;  %v462_v19 = vld [vmem:[#allocation8 + $0x5f8] sm:$0xff] }
 0x183   :  { %2071 = vmatpush2.bf16.msra.mxu1 %v3155_v20  ;;  %2031 = vmatprep.subr.bf16.mxu0 %v3020_v21  ;;  %v2971_v20 = vcombine.low %v337_v8, %v341_v9  ;;  %v3099_v21 = vcombine.low %v465_v10, %v469_v11  ;;  %v3094_v23 = vcombine.high %v458_v18, %v462_v19  ;;  %v286_v8 = vld [vmem:[#allocation8 + $0x78] sm:$0xff] }
 0x184   :  { %2072 = vmatprep.subr.bf16.mxu1 %v3148_v22  ;;  %v2966_v22 = vcombine.high %v330_v16, %v334_v17  ;;  %v410_v9 = vld [vmem:[#allocation8 + $0x458] sm:$0xff] }
 0x185   :  { %v414_v10 = vld [vmem:[#allocation8 + $0x478] sm:$0xff] }
 0x186   :  { %2032 = vmatpush2.bf16.msra.mxu0 %v3019_v32  ;;  %v450_v32 = vld [vmem:[#allocation8 + $0x598] sm:$0xff] }
 0x187   :  { %2073 = vmatpush2.bf16.msra.mxu1 %v3147_v33  ;;  %2033 = vmatprep.subr.bf16.mxu0 %v3012_v34  ;;  %v454_v33 = vld [vmem:[#allocation8 + $0x5b8] sm:$0xff]  ;;  %v3093_v34 = vcombine.low %v458_v18, %v462_v19 }
 0x188   :  { %2074 = vmatprep.subr.bf16.mxu1 %v3140_v35  ;;  %v2958_v35 = vcombine.high %v322_v27, %v326_v30  ;;  %v3086_v38 = vcombine.high %v450_v32, %v454_v33  ;;  %v278_v16 = vld [vmem:[#allocation8 + $0x38] sm:$0xff] }
 0x189   :  { %v402_v17 = vld [vmem:[#allocation8 + $0x418] sm:$0xff] }
 0x18a   :  { %2034 = vmatpush2.bf16.msra.mxu0 %v3011_v40  ;;  %v446_v40 = vld [vmem:[#allocation8 + $0x578] sm:$0xff] }
 0x18b   :  { %2075 = vmatpush2.bf16.msra.mxu1 %v3139_v41  ;;  %2035 = vmatprep.subr.bf16.mxu0 %v3004_v42  ;;  %v2957_v41 = vcombine.low %v322_v27, %v326_v30  ;;  %v3085_v42 = vcombine.low %v450_v32, %v454_v33  ;;  %v3078_v44 = vcombine.high %v442_v39, %v446_v40  ;;  %v406_v18 = vld [vmem:[#allocation8 + $0x438] sm:$0xff] }
 0x18c   :  { %2076 = vmatprep.subr.bf16.mxu1 %v3132_v43  ;;  %v2950_v43 = vcombine.high %v314_v36, %v318_v37  ;;  %v398_v27 = vld [vmem:[#allocation8 + $0x3f8] sm:$0xff]  ;;  %v3037_v33 = vcombine.low %v402_v17, %v406_v18 }
 0x18d   :  { %v522_v30 = vld [vmem:[#allocation8 + $0x7d8] sm:$0xff] }
 0x18e   :  { %2036 = vmatpush2.bf16.msra.mxu0 %v3003_v48  ;;  %v438_v48 = vld [vmem:[#allocation8 + $0x538] sm:$0xff] }
 0x18f   :  { %2077 = vmatpush2.bf16.msra.mxu1 %v3131_v50  ;;  %2037 = vmatprep.subr.bf16.mxu0 %v2996_v51  ;;  %v2949_v50 = vcombine.low %v314_v36, %v318_v37  ;;  %v3077_v51 = vcombine.low %v442_v39, %v446_v40  ;;  %v386_v36 = vld [vmem:[#allocation8 + $0x398] sm:$0xff] }
 0x190   :  { %2078 = vmatprep.subr.bf16.mxu1 %v3124_v52  ;;  %v2942_v52 = vcombine.high %v306_v45, %v310_v46  ;;  %v390_v37 = vld [vmem:[#allocation8 + $0x3b8] sm:$0xff] }
 0x191   :  { %v518_v39 = vld [vmem:[#allocation8 + $0x7b8] sm:$0xff] }
 0x192   :  { %2038 = vmatpush2.bf16.msra.mxu0 %v2995_v60  ;;  %v3069_v60 = vcombine.low %v434_v47, %v438_v48 }
 0x193   :  { %2079 = vmatpush2.bf16.msra.mxu1 %v3123_v61  ;;  %2039 = vmatprep.subr.bf16.mxu0 %v2988_v62  ;;  %v2934_v61 = vcombine.high %v298_v53, %v302_v54  ;;  %v3062_v62 = vcombine.high %v426_v58, %v430_v59  ;;  %v374_v53 = vld [vmem:[#allocation8 + $0x338] sm:$0xff] }
 0x194   :  { %2080 = vmatprep.subr.bf16.mxu1 %v3116_v63  ;;  %v290_v63 = vld [vmem:[#allocation8 + $0x98] sm:$0xff] }
 0x195   :  { %v2925_v11 = vcombine.low %v290_v63, %v294_v0  ;;  %v498_v54 = vld [vmem:[#allocation8 + $0x718] sm:$0xff] }
 0x196   :  { %2040 = vmatpush2.bf16.msra.mxu0 %v2987_v4  ;;  %v3061_v4 = vcombine.low %v426_v58, %v430_v59  ;;  %v502_v58 = vld [vmem:[#allocation8 + $0x738] sm:$0xff] }
 0x197   :  { %2081 = vmatpush2.bf16.msra.mxu1 %v3115_v5  ;;  %2041 = vmatprep.subr.bf16.mxu0 %v2980_v6  ;;  %v2926_v5 = vcombine.high %v290_v63, %v294_v0  ;;  %v3054_v6 = vcombine.high %v418_v1, %v422_v2  ;;  %v366_v63 = vld [vmem:[#allocation8 + $0x2f8] sm:$0xff] }
 0x198   :  { %2082 = vmatprep.subr.bf16.mxu1 %v3108_v7  ;;  %v282_v7 = vld [vmem:[#allocation8 + $0x58] sm:$0xff] }
 0x199   :  { %v2917_v19 = vcombine.low %v282_v7, %v286_v8  ;;  %v490_v0 = vld [vmem:[#allocation8 + $0x6d8] sm:$0xff] }
 0x19a   :  { %2042 = vmatpush2.bf16.msra.mxu0 %v2979_v12  ;;  %v3053_v12 = vcombine.low %v418_v1, %v422_v2  ;;  %v494_v1 = vld [vmem:[#allocation8 + $0x6f8] sm:$0xff] }
 0x19b   :  { %2083 = vmatpush2.bf16.msra.mxu1 %v3107_v13  ;;  %2043 = vmatprep.subr.bf16.mxu0 %v2972_v14  ;;  %v2918_v13 = vcombine.high %v282_v7, %v286_v8  ;;  %v3046_v14 = vcombine.high %v410_v9, %v414_v10  ;;  %v358_v7 = vld [vmem:[#allocation8 + $0x2b8] sm:$0xff] }
 0x19c   :  { %2084 = vmatprep.subr.bf16.mxu1 %v3100_v15  ;;  %v274_v15 = vld [vmem:[#allocation8 + $0x18] sm:$0xff] }
 0x19d   :  { %v2909_v32 = vcombine.low %v274_v15, %v278_v16  ;;  %v482_v8 = vld [vmem:[#allocation8 + $0x698] sm:$0xff] }
 0x19e   :  { %2044 = vmatpush2.bf16.msra.mxu0 %v2971_v20  ;;  %v3045_v20 = vcombine.low %v410_v9, %v414_v10  ;;  %v486_v9 = vld [vmem:[#allocation8 + $0x6b8] sm:$0xff] }
 0x19f   :  { %2085 = vmatpush2.bf16.msra.mxu1 %v3099_v21  ;;  %2095 = vmatprep.subr.bf16.mxu0 %v2966_v22  ;;  %v2910_v21 = vcombine.high %v274_v15, %v278_v16  ;;  %v3038_v22 = vcombine.high %v402_v17, %v406_v18  ;;  %v350_v15 = vld [vmem:[#allocation8 + $0x278] sm:$0xff] }
 0x1a0   :  { %2136 = vmatprep.subr.bf16.mxu1 %v3094_v23  ;;  %v394_v23 = vld [vmem:[#allocation8 + $0x3d8] sm:$0xff] }
 0x1a1   :  { %2046 = vmatmul.mubr.bf16.vlgmr.msra.gmra.mxu0 %v3642_v57  ;;  %v3029_v40 = vcombine.low %v394_v23, %v398_v27  ;;  %v474_v16 = vld [vmem:[#allocation8 + $0x658] sm:$0xff] }
 0x1a2   :  { %2087 = vmatmul.mubr.bf16.vlgmr.msra.gmra.mxu1 %v3636_v49  ;;  %2096 = vmatpush1.bf16.msra.mxu0 %v2965_v31  ;;  %v526_v31 = vld [vmem:[#allocation8 + $0x7f8] sm:$0xff] }
 0x1a3   :  { %2127 = vmatprep.mubr.bf16.mxu0 %v3638_v55  ;;  %2137 = vmatpush1.bf16.msra.mxu1 %v3093_v34  ;;  %v3070_v55 = vcombine.high %v434_v47, %v438_v48  ;;  %v3030_v34 = vcombine.high %v394_v23, %v398_v27  ;;  %v510_v47 = vld [vmem:[#allocation8 + $0x778] sm:$0xff]  ;;  %v3021_v48 = vcombine.low %v386_v36, %v390_v37 }
 0x1a4   :  { %2168 = vmatprep.mubr.bf16.mxu1 %v3640_v56  ;;  %2097 = vmatprep.subr.bf16.mxu0 %v2958_v35  ;;  %v2941_v56 = vcombine.low %v306_v45, %v310_v46  ;;  %v3158_v35 = vcombine.high %v522_v30, %v526_v31  ;;  %v382_v45 = vld [vmem:[#allocation8 + $0x378] sm:$0xff] }
 0x1a5   :  { %2138 = vmatprep.subr.bf16.mxu1 %v3086_v38  ;;  %v514_v38 = vld [vmem:[#allocation8 + $0x798] sm:$0xff] }
 0x1a6   :  { %2098 = vmatpush1.bf16.msra.mxu0 %v2957_v41  ;;  %v3157_v41 = vcombine.low %v522_v30, %v526_v31  ;;  %v506_v46 = vld [vmem:[#allocation8 + $0x758] sm:$0xff] }
 0x1a7   :  { %2139 = vmatpush1.bf16.msra.mxu1 %v3085_v42  ;;  %2099 = vmatprep.subr.bf16.mxu0 %v2950_v43  ;;  %v3022_v42 = vcombine.high %v386_v36, %v390_v37  ;;  %v3150_v43 = vcombine.high %v514_v38, %v518_v39  ;;  %v478_v17 = vld [vmem:[#allocation8 + $0x678] sm:$0xff]  ;;  %v3336_v37 = vld [vmem:[#allocation11 + $0x78] sm:$0xff]  }
 0x1a8   :  { %2140 = vmatprep.subr.bf16.mxu1 %v3078_v44  ;;  %v378_v44 = vld [vmem:[#allocation8 + $0x358] sm:$0xff] }
 0x1a9   :  { %v3013_v59 = vcombine.low %v378_v44, %v382_v45  ;;  %v342_v23 = vld [vmem:[#allocation8 + $0x238] sm:$0xff] }
 0x1aa   :  { %2100 = vmatpush1.bf16.msra.mxu0 %v2949_v50  ;;  %v3149_v50 = vcombine.low %v514_v38, %v518_v39  ;;  %v466_v27 = vld [vmem:[#allocation8 + $0x618] sm:$0xff]  ;;  %v3352_v38 = vld [vmem:[#allocation11 + $0xf8] sm:$0xff]  }
 0x1ab   :  { %2141 = vmatpush1.bf16.msra.mxu1 %v3077_v51  ;;  %2101 = vmatprep.subr.bf16.mxu0 %v2942_v52  ;;  %v3014_v51 = vcombine.high %v378_v44, %v382_v45  ;;  %v3142_v52 = vcombine.high %v506_v46, %v510_v47  ;;  %v470_v30 = vld [vmem:[#allocation8 + $0x638] sm:$0xff]  ;;  %v3337_v39 = vld [vmem:[#allocation11 + $0x38] sm:$0xff]  }
 0x1ac   :  { %2142 = vmatprep.subr.bf16.mxu1 %v3070_v55  ;;  %v370_v55 = vld [vmem:[#allocation8 + $0x318] sm:$0xff]  ;;  %v3101_v36 = vcombine.low %v466_v27, %v470_v30 }
 0x1ad   :  { %v3005_v2 = vcombine.low %v370_v55, %v374_v53  ;;  %v3354_v44 = vld [vmem:[#allocation11 + $0xf0] sm:$0xff]  }
 0x1ae   :  { %2102 = vmatpush1.bf16.msra.mxu0 %v2941_v56  ;;  %v3141_v56 = vcombine.low %v506_v46, %v510_v47  ;;  %v3339_v47 = vld [vmem:[#allocation11 + $0x30] sm:$0xff]  }
 0x1af   :  { %2143 = vmatpush1.bf16.msra.mxu1 %v3069_v60  ;;  %2103 = vmatprep.subr.bf16.mxu0 %v2934_v61  ;;  %v3006_v60 = vcombine.high %v370_v55, %v374_v53  ;;  %v3134_v61 = vcombine.high %v498_v54, %v502_v58  ;;  %v3356_v53 = vld [vmem:[#allocation11 + $0xe8] sm:$0xff]  }
 0x1b0   :  { %2144 = vmatprep.subr.bf16.mxu1 %v3062_v62  ;;  %v362_v62 = vld [vmem:[#allocation8 + $0x2d8] sm:$0xff] }
 0x1b1   :  { %v2997_v10 = vcombine.low %v362_v62, %v366_v63 }
 0x1b2   :  { %2104 = vmatpush1.bf16.msra.mxu0 %v2933_v3  ;;  %v3133_v3 = vcombine.low %v498_v54, %v502_v58 }
 0x1b3   :  { %2145 = vmatpush1.bf16.msra.mxu1 %v3061_v4  ;;  %2105 = vmatprep.subr.bf16.mxu0 %v2926_v5  ;;  %v2998_v4 = vcombine.high %v362_v62, %v366_v63  ;;  %v3126_v5 = vcombine.high %v490_v0, %v494_v1  ;;  %v3358_v62 = vld [vmem:[#allocation11 + $0xe0] sm:$0xff]  }
 0x1b4   :  { %2146 = vmatprep.subr.bf16.mxu1 %v3054_v6  ;;  %v354_v6 = vld [vmem:[#allocation8 + $0x298] sm:$0xff] }
 0x1b5   :  { %v2989_v18 = vcombine.low %v354_v6, %v358_v7 }
 0x1b6   :  { %2106 = vmatpush1.bf16.msra.mxu0 %v2925_v11  ;;  %v3125_v11 = vcombine.low %v490_v0, %v494_v1  ;;  %v3343_v0 = vld [vmem:[#allocation11 + $0x20] sm:$0xff]   ;;  %v3344_v1 = vld [vmem:[#allocation11 + $0x58] sm:$0xff]  }
 0x1b7   :  { %2147 = vmatpush1.bf16.msra.mxu1 %v3053_v12  ;;  %2107 = vmatprep.subr.bf16.mxu0 %v2918_v13  ;;  %v2990_v12 = vcombine.high %v354_v6, %v358_v7  ;;  %v3118_v13 = vcombine.high %v482_v8, %v486_v9  ;;  %v3346_v6 = vld [vmem:[#allocation11 + $0x50] sm:$0xff]   ;;  %v3361_v7 = vld [vmem:[#allocation11 + $0x98] sm:$0xff]  }
 0x1b8   :  { %2148 = vmatprep.subr.bf16.mxu1 %v3046_v14  ;;  %v346_v14 = vld [vmem:[#allocation8 + $0x258] sm:$0xff] }
 0x1b9   :  { %v2981_v31 = vcombine.low %v346_v14, %v350_v15 }
 0x1ba   :  { %2108 = vmatpush1.bf16.msra.mxu0 %v2917_v19  ;;  %v3117_v19 = vcombine.low %v482_v8, %v486_v9  ;;  %v3362_v8 = vld [vmem:[#allocation11 + $0xd0] sm:$0xff]  }
 0x1bb   :  { %2149 = vmatpush1.bf16.msra.mxu1 %v3045_v20  ;;  %2109 = vmatprep.subr.bf16.mxu0 %v2910_v21  ;;  %v2982_v20 = vcombine.high %v346_v14, %v350_v15  ;;  %v3110_v21 = vcombine.high %v474_v16, %v478_v17  ;;  %v3347_v9 = vld [vmem:[#allocation11 + $0x10] sm:$0xff]   ;;  %v3349_v14 = vld [vmem:[#allocation11 + $0x8] sm:$0xff]  }
 0x1bc   :  { %2150 = vmatprep.subr.bf16.mxu1 %v3038_v22  ;;  %v338_v22 = vld [vmem:[#allocation8 + $0x218] sm:$0xff] }
 0x1be   :  { %2110 = vmatpush1.bf16.msra.mxu0 %v2909_v32  ;;  %v3109_v32 = vcombine.low %v474_v16, %v478_v17  ;;  %v3365_v16 = vld [vmem:[#allocation11 + $0x88] sm:$0xff]   ;;  %v3366_v17 = vld [vmem:[#allocation11 + $0xc0] sm:$0xff]  }
 0x1bf   :  { %2151 = vmatpush1.bf16.msra.mxu1 %v3037_v33  ;;  %2111 = vmatprep.subr.bf16.mxu0 %v3030_v34  ;;  %v2974_v33 = vcombine.high %v338_v22, %v342_v23  ;;  %v3102_v34 = vcombine.high %v466_v27, %v470_v30  ;;  %v3370_v30 = vld [vmem:[#allocation11 + $0x170] sm:$0xff]  }
 0x1c0   :  { %2152 = vmatprep.subr.bf16.mxu1 %v3158_v35  ;;  %v2973_v35 = vcombine.low %v338_v22, %v342_v23  ;;  %v3384_v22 = vld [vmem:[#allocation11 + $0x1f8] sm:$0xff]  }
 0x1c1   :  { %v3369_v23 = vld [vmem:[#allocation11 + $0x138] sm:$0xff]  }
 0x1c2   :  { %2112 = vmatpush2.bf16.msra.mxu0 %v3029_v40  ;;  %v3658_v40 = vld [vmem:[#allocation10] sm:$0xff] }
 0x1c3   :  { %2153 = vmatpush2.bf16.msra.mxu1 %v3157_v41  ;;  %2113 = vmatprep.subr.bf16.mxu0 %v3022_v42  ;;  %v3338_v41 = vld [vmem:[#allocation11 + $0x70] sm:$0xff]   ;;  %v3353_v42 = vld [vmem:[#allocation11 + $0xb8] sm:$0xff]  }
 0x1c4   :  { %2154 = vmatprep.subr.bf16.mxu1 %v3150_v43  ;;  %v536_v43 = vrot.slane %v3658_v40, %v120_v28 }
 0x1c6   :  { %2114 = vmatpush2.bf16.msra.mxu0 %v3021_v48 }
 0x1c7   :  { %2155 = vmatpush2.bf16.msra.mxu1 %v3149_v50  ;;  %2115 = vmatprep.subr.bf16.mxu0 %v3014_v51  ;;  %v3340_v51 = vld [vmem:[#allocation11 + $0x68] sm:$0xff]  }
 0x1c8   :  { %2156 = vmatprep.subr.bf16.mxu1 %v3142_v52  ;;  %v3355_v52 = vld [vmem:[#allocation11 + $0xb0] sm:$0xff]  }
 0x1ca   :  { %2116 = vmatpush2.bf16.msra.mxu0 %v3013_v59 }
 0x1cb   :  { %2157 = vmatpush2.bf16.msra.mxu1 %v3141_v56  ;;  %2117 = vmatprep.subr.bf16.mxu0 %v3006_v60  ;;  %v3357_v60 = vld [vmem:[#allocation11 + $0xa8] sm:$0xff]  }
 0x1cc   :  { %2158 = vmatprep.subr.bf16.mxu1 %v3134_v61 }
 0x1ce   :  { %2118 = vmatpush2.bf16.msra.mxu0 %v3005_v2  ;;  %v3359_v2 = vld [vmem:[#allocation11 + $0xa0] sm:$0xff]  }
 0x1cf   :  { %2159 = vmatpush2.bf16.msra.mxu1 %v3133_v3  ;;  %2119 = vmatprep.subr.bf16.mxu0 %v2998_v4  ;;  %v3360_v3 = vld [vmem:[#allocation11 + $0xd8] sm:$0xff]  }
 0x1d0   :  { %2160 = vmatprep.subr.bf16.mxu1 %v3126_v5  ;;  %v3345_v4 = vld [vmem:[#allocation11 + $0x18] sm:$0xff]   ;;  %v532_v5 = vrot.slane %v3658_v40, %v116_v25  ;;  %v3350_v25 = vld [vmem:[#allocation11 + $0x40] sm:$0xff]  }
 0x1d2   :  { %2120 = vmatpush2.bf16.msra.mxu0 %v2997_v10 }
 0x1d3   :  { %2161 = vmatpush2.bf16.msra.mxu1 %v3125_v11  ;;  %2121 = vmatprep.subr.bf16.mxu0 %v2990_v12  ;;  %v3348_v11 = vld [vmem:[#allocation11 + $0x48] sm:$0xff]   ;;  %v3363_v12 = vld [vmem:[#allocation11 + $0x90] sm:$0xff]  }
 0x1d4   :  { %2162 = vmatprep.subr.bf16.mxu1 %v3118_v13  ;;  %v3364_v13 = vld [vmem:[#allocation11 + $0xc8] sm:$0xff]  }
 0x1d6   :  { %2122 = vmatpush2.bf16.msra.mxu0 %v2989_v18  ;;  %v3351_v18 = vld [vmem:[#allocation11] sm:$0xff]  }
 0x1d7   :  { %2163 = vmatpush2.bf16.msra.mxu1 %v3117_v19  ;;  %2123 = vmatprep.subr.bf16.mxu0 %v2982_v20  ;;  %v3367_v20 = vld [vmem:[#allocation11 + $0x80] sm:$0xff]  }
 0x1d8   :  { %2164 = vmatprep.subr.bf16.mxu1 %v3110_v21  ;;  %v3368_v21 = vld [vmem:[#allocation11 + $0x178] sm:$0xff]  }
 0x1da   :  { %2124 = vmatpush2.bf16.msra.mxu0 %v2981_v31  ;;  %v3371_v31 = vld [vmem:[#allocation11 + $0x130] sm:$0xff]  }
 0x1db   :  { %2165 = vmatpush2.bf16.msra.mxu1 %v3109_v32  ;;  %2125 = vmatprep.subr.bf16.mxu0 %v2974_v33  ;;  %v3372_v32 = vld [vmem:[#allocation11 + $0x168] sm:$0xff]  }
 0x1dc   :  { %2166 = vmatprep.subr.bf16.mxu1 %v3102_v34  ;;  %v3373_v33 = vld [vmem:[#allocation11 + $0x128] sm:$0xff]   ;;  %v3374_v34 = vld [vmem:[#allocation11 + $0x160] sm:$0xff]  }
 0x1de   :  { %2126 = vmatpush2.bf16.msra.mxu0 %v2973_v35  ;;  %v3375_v35 = vld [vmem:[#allocation11 + $0x120] sm:$0xff]  }
 0x1df   :  { %2167 = vmatpush2.bf16.msra.mxu1 %v3101_v36  ;;  %3224 = vmatprep.subr.bf16.mxu0 %v3336_v37  ;;  %v3376_v36 = vld [vmem:[#allocation11 + $0x158] sm:$0xff]  }
 0x1e0   :  { %3246 = vmatprep.subr.bf16.mxu1 %v3352_v38  ;;  %v3377_v37 = vld [vmem:[#allocation11 + $0x118] sm:$0xff]   ;;  %v3378_v38 = vld [vmem:[#allocation11 + $0x150] sm:$0xff]  }
 0x1e1   :  { %2128 = vmatmul.mubr.bf16.vlgmr.msra.gmra.mxu0 %v3642_v57  ;;  %v1883_v45 = vpop.f32.mrf.mxu0  ;;  %v3341_v57 = vld [vmem:[#allocation11 + $0x28] sm:$0xff]  }
 0x1e2   :  { %v1924_v46 = vpop.f32.mrf.mxu1  ;;  %2169 = vmatmul.mubr.bf16.vlgmr.msra.gmra.mxu1 %v3636_v49  ;;  %3225 = vmatpush3.bf16.msra.mxu0 %v3337_v39  ;;  %v3342_v49 = vld [vmem:[#allocation11 + $0x60] sm:$0xff]   ;;  %v1884_v10 = vadd.f32 %v1883_v45, %v532_v5  ;;  %v3379_v39 = vld [vmem:[#allocation11 + $0x110] sm:$0xff]   ;;  %v540_v45 = vrot.slane %v3658_v40, %v124_v26 }
 0x1e3   :  { %v1885_v48 = vpop.f32.mrf.mxu0  ;;  %3226 = vmatprep.subr.bf16.mxu0 %v3338_v41  ;;  %3247 = vmatpush3.bf16.msra.mxu1 %v3353_v42  ;;  %v3380_v41 = vld [vmem:[#allocation11 + $0x148] sm:$0xff]   ;;  %v3394_v5 = vld [vmem:[#allocation11 + $0x1d0] sm:$0xff]  }
 0x1e4   :  { %v1926_v50 = vpop.f32.mrf.mxu1  ;;  %v1886_v55 = vadd.f32 %v1885_v48, %v536_v43  ;;  %3248 = vmatprep.subr.bf16.mxu1 %v3354_v44  ;;  %v1925_v15 = vadd.f32 %v1924_v46, %v1884_v10  ;;  %v3381_v42 = vld [vmem:[#allocation11 + $0x108] sm:$0xff]   ;;  %v3382_v43 = vld [vmem:[#allocation11 + $0x140] sm:$0xff]   ;;  %v544_v46 = vrot.slane %v3658_v40, %v128_v29  ;;  %v3387_v29 = vld [vmem:[#allocation11 + $0x1b0] sm:$0xff]  }
 0x1e5   :  { %v1887_v28 = vpop.f32.mrf.mxu0  ;;  %v3383_v44 = vld [vmem:[#allocation11 + $0x100] sm:$0xff]  }
 0x1e6   :  { %v1928_v54 = vpop.f32.mrf.mxu1  ;;  %v1927_v58 = vadd.f32 %v1926_v50, %v1886_v55  ;;  %3227 = vmatpush3.bf16.msra.mxu0 %v3339_v47  ;;  %v2177_v19 = vmax.f32 %v1925_v15, 0.0  ;;  %v3399_v10 = vld [vmem:[#allocation11 + $0x180] sm:$0xff]  }
 0x1e7   :  { %v1888_v59 = vpop.f32.mrf.mxu0  ;;  %3228 = vmatprep.subr.bf16.mxu0 %v3340_v51  ;;  %3249 = vmatpush3.bf16.msra.mxu1 %v3355_v52 }
 0x1e8   :  { %v1929_v56 = vpop.f32.mrf.mxu1  ;;  %v2178_v61 = vmax.f32 %v1927_v58, 0.0  ;;  %3250 = vmatprep.subr.bf16.mxu1 %v3356_v53  ;;  %v2185_v27 = vpack.c.bf16 %v2177_v19, %v2177_v19 }
 0x1ea   :  { %v2186_v63 = vpack.c.bf16 %v2178_v61, %v2178_v61  ;;  %3229 = vmatpush3.bf16.msra.mxu0 %v3341_v57 }
 0x1eb   :  { %3230 = vmatprep.subr.bf16.mxu0 %v3342_v49  ;;  %3251 = vmatpush3.bf16.msra.mxu1 %v3357_v60  ;;  %v3385_v60 = vld [vmem:[#allocation11 + $0x1b8] sm:$0xff]  }
 0x1ec   :  { %2744 = vmatprep.mubr.bf16.mxu0 %v2186_v63  ;;  %3252 = vmatprep.subr.bf16.mxu1 %v3358_v62  ;;  %v3386_v62 = vld [vmem:[#allocation11 + $0x1f0] sm:$0xff]   ;;  %v3388_v63 = vld [vmem:[#allocation11 + $0x1e8] sm:$0xff]  }
 0x1ee   :  { %3231 = vmatpush3.bf16.msra.mxu0 %v3343_v0  ;;  %v3389_v0 = vld [vmem:[#allocation11 + $0x1a8] sm:$0xff]  }
 0x1ef   :  { %3232 = vmatprep.subr.bf16.mxu0 %v3344_v1  ;;  %3253 = vmatpush3.bf16.msra.mxu1 %v3359_v2  ;;  %v3390_v1 = vld [vmem:[#allocation11 + $0x1e0] sm:$0xff]  }
 0x1f0   :  { %3254 = vmatprep.subr.bf16.mxu1 %v3360_v3  ;;  %v3391_v2 = vld [vmem:[#allocation11 + $0x1a0] sm:$0xff]   ;;  %v3392_v3 = vld [vmem:[#allocation11 + $0x1d8] sm:$0xff]  }
 0x1f2   :  { %3233 = vmatpush3.bf16.msra.mxu0 %v3345_v4  ;;  %v3393_v4 = vld [vmem:[#allocation11 + $0x198] sm:$0xff]  }
 0x1f3   :  { %3234 = vmatprep.subr.bf16.mxu0 %v3346_v6  ;;  %3255 = vmatpush3.bf16.msra.mxu1 %v3361_v7  ;;  %v3395_v6 = vld [vmem:[#allocation11 + $0x190] sm:$0xff]   ;;  %v3396_v7 = vld [vmem:[#allocation11 + $0x1c8] sm:$0xff]  }
 0x1f4   :  { %3256 = vmatprep.subr.bf16.mxu1 %v3362_v8  ;;  %v3397_v8 = vld [vmem:[#allocation11 + $0x188] sm:$0xff]  }
 0x1f6   :  { %3235 = vmatpush3.bf16.msra.mxu0 %v3347_v9  ;;  %v3398_v9 = vld [vmem:[#allocation11 + $0x1c0] sm:$0xff]  }
 0x1f7   :  { %3236 = vmatprep.subr.bf16.mxu0 %v3348_v11  ;;  %3257 = vmatpush3.bf16.msra.mxu1 %v3363_v12  ;;  %v547_v11 = vsub.s32 4, %v3622_v24  ;;  %v551_v12 = vsub.s32 5, %v3622_v24 }
 0x1f8   :  { %3258 = vmatprep.subr.bf16.mxu1 %v3364_v13 }
 0x1f9   :  { %v548_v13 = vrot.slane %v3658_v40, %v547_v11 }
 0x1fa   :  { %3237 = vmatpush3.bf16.msra.mxu0 %v3349_v14  ;;  %v552_v14 = vrot.slane %v3658_v40, %v551_v12 }
 0x1fb   :  { %3238 = vmatprep.subr.bf16.mxu0 %v3350_v25  ;;  %3259 = vmatpush3.bf16.msra.mxu1 %v3365_v16 }
 0x1fc   :  { %3260 = vmatprep.subr.bf16.mxu1 %v3366_v17 }
 0x1fe   :  { %3239 = vmatpush3.bf16.msra.mxu0 %v3351_v18 }
 0x1ff   :  { %3261 = vmatpush3.bf16.msra.mxu1 %v3367_v20  ;;  %3268 = vmatprep.subr.bf16.mxu0 %v3368_v21 }
 0x200   :  { %3290 = vmatprep.subr.bf16.mxu1 %v3384_v22 }
 0x201   :  { %2745 = vmatmul.mubr.bf16.vlgmr.msra.gmra.mxu0 %v2185_v27 }
 0x202   :  { %3269 = vmatpush3.bf16.msra.mxu0 %v3369_v23 }
 0x203   :  { %3270 = vmatprep.subr.bf16.mxu0 %v3370_v30 }
 0x206   :  { %3271 = vmatpush3.bf16.msra.mxu0 %v3371_v31 }
 0x207   :  { %3272 = vmatprep.subr.bf16.mxu0 %v3372_v32 }
 0x20a   :  { %3273 = vmatpush3.bf16.msra.mxu0 %v3373_v33 }
 0x20b   :  { %3274 = vmatprep.subr.bf16.mxu0 %v3374_v34 }
 0x20e   :  { %3275 = vmatpush3.bf16.msra.mxu0 %v3375_v35  ;;  %v555_v35 = vsub.s32 6, %v3622_v24 }
 0x20f   :  { %3276 = vmatprep.subr.bf16.mxu0 %v3376_v36  ;;  %v559_v36 = vsub.s32 7, %v3622_v24 }
 0x212   :  { %3277 = vmatpush3.bf16.msra.mxu0 %v3377_v37  ;;  %v556_v37 = vrot.slane %v3658_v40, %v555_v35 }
 0x213   :  { %3278 = vmatprep.subr.bf16.mxu0 %v3378_v38  ;;  %v560_v38 = vrot.slane %v3658_v40, %v559_v36 }
 0x216   :  { %3279 = vmatpush3.bf16.msra.mxu0 %v3379_v39 }
 0x217   :  { %3280 = vmatprep.subr.bf16.mxu0 %v3380_v41 }
 0x21a   :  { %3281 = vmatpush3.bf16.msra.mxu0 %v3381_v42 }
 0x21b   :  { %3282 = vmatprep.subr.bf16.mxu0 %v3382_v43 }
 0x21e   :  { %3283 = vmatpush3.bf16.msra.mxu0 %v3383_v44 }
 0x221   :  { %v1965_v47 = vpop.f32.mrf.mxu0 }
 0x222   :  { %v2006_v48 = vpop.f32.mrf.mxu1  ;;  %v1966_v50 = vadd.f32 %v1965_v47, %v540_v45 }
 0x223   :  { %v1967_v51 = vpop.f32.mrf.mxu0 }
 0x224   :  { %v2008_v52 = vpop.f32.mrf.mxu1  ;;  %v2007_v55 = vadd.f32 %v2006_v48, %v1966_v50  ;;  %v1968_v53 = vadd.f32 %v1967_v51, %v544_v46 }
 0x225   :  { %v1969_v28 = vpop.f32.mrf.mxu0 }
 0x226   :  { %v2010_v54 = vpop.f32.mrf.mxu1  ;;  %v2009_v58 = vadd.f32 %v2008_v52, %v1968_v53  ;;  %v2179_v57 = vmax.f32 %v2007_v55, 0.0 }
 0x227   :  { %v1970_v59 = vpop.f32.mrf.mxu0 }
 0x228   :  { %v2011_v56 = vpop.f32.mrf.mxu1  ;;  %v2180_v49 = vmax.f32 %v2009_v58, 0.0  ;;  %v2187_v61 = vpack.c.bf16 %v2179_v57, %v2179_v57 }
 0x229   :  { %v3159_v56 = vld [vmem:[%s3694_s6] ss:$0 sm:$0xff]  ;;  %s3520_s6 = scalar_lea.vmem %s2880_s11, 128 }
 0x22a   :  { %v2188_v26 = vpack.c.bf16 %v2180_v49, %v2180_v49  ;;  %p3521_p2 = scmp.ne.s32.totalorder %s2880_s11, %s3520_s6  ;;  %p3526_p4 = scmp.lt.s32.totalorder %s3520_s6, %s3520_s6 }
 0x22c   :  { %2784 = vmatprep.mubr.bf16.mxu1 %v2188_v26  ;;  %p3527_p5 = por %p3526_p4, %p3525_p3 }
 0x22d   :  { %2785 = vmatmul.mubr.bf16.vlgmr.msra.gmra.mxu1 %v2187_v61 }
 0x22e   :  { %3291 = vmatpush3.bf16.msra.mxu1 %v3385_v60  ;;  %p3528_p6 = pnand %p3527_p5, %p3521_p2 }
 0x22f   :  { %3292 = vmatprep.subr.bf16.mxu1 %v3386_v62 }
 0x232   :  { %3293 = vmatpush3.bf16.msra.mxu1 %v3387_v29 }
 0x233   :  { %3294 = vmatprep.subr.bf16.mxu1 %v3388_v63 }
 0x236   :  { %3295 = vmatpush3.bf16.msra.mxu1 %v3389_v0 }
 0x237   :  { %3296 = vmatprep.subr.bf16.mxu1 %v3390_v1 }
 0x23a   :  { %3297 = vmatpush3.bf16.msra.mxu1 %v3391_v2 }
 0x23b   :  { %3298 = vmatprep.subr.bf16.mxu1 %v3392_v3 }
 0x23e   :  { %3299 = vmatpush3.bf16.msra.mxu1 %v3393_v4 }
 0x23f   :  { %3300 = vmatprep.subr.bf16.mxu1 %v3394_v5 }
 0x242   :  { %3301 = vmatpush3.bf16.msra.mxu1 %v3395_v6 }
 0x243   :  { %3302 = vmatprep.subr.bf16.mxu1 %v3396_v7 }
 0x246   :  { %3303 = vmatpush3.bf16.msra.mxu1 %v3397_v8 }
 0x247   :  { %3304 = vmatprep.subr.bf16.mxu1 %v3398_v9 }
 0x24a   :  { %3305 = vmatpush3.bf16.msra.mxu1 %v3399_v10 }
 0x261   :  { %v2047_v15 = vpop.f32.mrf.mxu0 }
 0x262   :  { %v2048_v25 = vadd.f32 %v2047_v15, %v548_v13  ;;  %v2088_v16 = vpop.f32.mrf.mxu1 }
 0x263   :  { %v2049_v17 = vpop.f32.mrf.mxu0 }
 0x264   :  { %v2089_v18 = vadd.f32 %v2088_v16, %v2048_v25  ;;  %v2050_v19 = vadd.f32 %v2049_v17, %v552_v14  ;;  %v2090_v20 = vpop.f32.mrf.mxu1 }
 0x265   :  { %v2051_v21 = vpop.f32.mrf.mxu0 }
 0x266   :  { %v2091_v22 = vadd.f32 %v2090_v20, %v2050_v19  ;;  %v2092_v23 = vpop.f32.mrf.mxu1  ;;  %v2181_v27 = vmax.f32 %v2089_v18, 0.0 }
 0x267   :  { %v2052_v30 = vpop.f32.mrf.mxu0 }
 0x268   :  { %v2182_v31 = vmax.f32 %v2091_v22, 0.0  ;;  %v2093_v32 = vpop.f32.mrf.mxu1  ;;  %v2189_v34 = vpack.c.bf16 %v2181_v27, %v2181_v27 }
 0x26a   :  { %v2190_v33 = vpack.c.bf16 %v2182_v31, %v2182_v31 }
 0x26c   :  { %2824 = vmatprep.mubr.bf16.mxu0 %v2190_v33 }
 0x26d   :  { %2825 = vmatmul.mubr.bf16.vlgmr.msra.gmra.mxu0 %v2189_v34 }
 0x2a1   :  { %v2129_v39 = vpop.f32.mrf.mxu0 }
 0x2a2   :  { %v2130_v41 = vadd.f32 %v2129_v39, %v556_v37  ;;  %v2170_v42 = vpop.f32.mrf.mxu1 }
 0x2a3   :  { %v2131_v43 = vpop.f32.mrf.mxu0 }
 0x2a4   :  { %v2171_v44 = vadd.f32 %v2170_v42, %v2130_v41  ;;  %v2132_v45 = vadd.f32 %v2131_v43, %v560_v38  ;;  %v2172_v46 = vpop.f32.mrf.mxu1 }
 0x2a5   :  { %v2133_v47 = vpop.f32.mrf.mxu0 }
 0x2a6   :  { %v2173_v48 = vadd.f32 %v2172_v46, %v2132_v45  ;;  %v2174_v50 = vpop.f32.mrf.mxu1  ;;  %v2183_v51 = vmax.f32 %v2171_v44, 0.0 }
 0x2a7   :  { %v2134_v52 = vpop.f32.mrf.mxu0 }
 0x2a8   :  { %v2184_v55 = vmax.f32 %v2173_v48, 0.0  ;;  %v2175_v53 = vpop.f32.mrf.mxu1  ;;  %v2191_v24 = vpack.c.bf16 %v2183_v51, %v2183_v51 }
 0x2aa   :  { %v2192_v28 = vpack.c.bf16 %v2184_v55, %v2184_v55 }
 0x2ac   :  { %2864 = vmatprep.mubr.bf16.mxu1 %v2192_v28 }
 0x2ad   :  { %2865 = vmatmul.mubr.bf16.vlgmr.msra.gmra.mxu1 %v2191_v24 }
 0x2c1   :  { %v3240_v54 = vpop.f32.mrf.mxu0 }
 0x2c3   :  { %v3241_v40 = vpop.f32.mrf.mxu0 }
 0x2c4   :  { %v3242_v58 = vadd.f32 %v3241_v40, %v3240_v54 }
 0x2c5   :  { %v3243_v57 = vpop.f32.mrf.mxu0 }
 0x2c6   :  { %v2747_v60 = vadd.f32 %v3242_v58, %v3159_v56 }
 0x2c7   :  { %v3244_v59 = vpop.f32.mrf.mxu0 }
 0x2ed   :  { %v3262_v49 = vpop.f32.mrf.mxu1 }
 0x2ef   :  { %v3263_v26 = vpop.f32.mrf.mxu1 }
 0x2f0   :  { %v3264_v61 = vadd.f32 %v3263_v26, %v3262_v49 }
 0x2f1   :  { %v3265_v62 = vpop.f32.mrf.mxu1 }
 0x2f2   :  { %v2787_v29 = vadd.f32 %v3264_v61, %v2747_v60 }
 0x2f3   :  { %v3266_v63 = vpop.f32.mrf.mxu1 }
 0x32d   :  { %v3284_v0 = vpop.f32.mrf.mxu0 }
 0x32f   :  { %v3285_v1 = vpop.f32.mrf.mxu0 }
 0x330   :  { %v3286_v2 = vadd.f32 %v3285_v1, %v3284_v0 }
 0x331   :  { %v3287_v3 = vpop.f32.mrf.mxu0 }
 0x332   :  { %v2827_v4 = vadd.f32 %v3286_v2, %v2787_v29 }
 0x333   :  { %v3288_v5 = vpop.f32.mrf.mxu0 }
 0x36d   :  { %v3306_v6 = vpop.f32.mrf.mxu1 }
 0x36f   :  { %v3307_v7 = vpop.f32.mrf.mxu1 }
 0x370   :  { %v3308_v8 = vadd.f32 %v3307_v7, %v3306_v6 }
 0x371   :  { %v3309_v9 = vpop.f32.mrf.mxu1 }
 0x372   :  { %v2867_v10 = vadd.f32 %v3308_v8, %v2827_v4 }
 0x373   :  { %v3310_v11 = vpop.f32.mrf.mxu1 }
 0x374   :  { %2872 = vst [vmem:[#allocation13] sm:$0xff] %v2867_v10 }
 0x375   :  { %3531 = shalt.err (!%p3528_p6)
}
 0x376   :  { %2882 = dma.vmem_to_hbm [thread:$0]  %s2880_s11, 128, %s3695_s7, [#allocation4]  }
 0x377   :  { %3548 = dma.done.wait [#allocation4], 128  }
 0x378   :  { %3549 = vsyncadd [#allocation4], 4294967168 }
 0x379   :  { %2886 = vsyncpa [#allocation3], 1 }
 0x37a   :  { %2887 = vsyncpa [#allocation6], 1 }
 0x37b   :  { %2888 = vsyncpa [#allocation9], 1 }
 0x37c   :  { %2889 = vsyncpa [#allocation12], 1 }
 0x37d   :  { %2890 = vsyncpa [#allocation4], 1 }

// kernel: tpu_custom_call.1
= control target key start
LH: loop header
LB: loop body
LE: loop exit
PB: predicated region body
PF: predicated region fallthrough
CT: control target
= control target key end

     0   :  { %12 = vsyncpa [#allocation3], 0  ;;  %s3688_s0 = inlined_call_operand.hbm [shape: f32[8,20], index: 0, kind: input, shape index: {}]   ;;  %s3689_s1 = inlined_call_operand.hbm [shape: bf16[20,512], index: 1, kind: input, shape index: {}]   ;;  %s3690_s2 = inlined_call_operand.hbm [shape: f32[1,512], index: 2, kind: input, shape index: {}]   ;;  %s3691_s3 = inlined_call_operand.hbm [shape: bf16[512,1024], index: 3, kind: input, shape index: {}]   ;;  %s3692_s4 = inlined_call_operand.hbm [shape: f32[1,1024], index: 4, kind: input, shape index: {}]   ;;  %s3693_s5 = inlined_call_operand.hbm [shape: bf16[1024,128], index: 5, kind: input, shape index: {}]   ;;  %s3694_s6 = inlined_call_operand.vmem [shape: f32[1,128], index: 6, kind: input, shape index: {}]   ;;  %s3695_s7 = inlined_call_operand.hbm [shape: f32[8,128], index: 7, kind: output, shape index: {}]  }
   0x1   :  { %13 = vsyncpa [#allocation6], 0 }
   0x2   :  { %14 = vsyncpa [#allocation9], 0 }
   0x3   :  { %15 = vsyncpa [#allocation12], 0 }
   0x4   :  { %16 = vsyncpa [#allocation4], 0  ;;  %s3550_s24 = smov [#allocation5]  }
   0x5   :  { %s32_s25 = sshll.u32 %s3550_s24, 4  ;;  %s33_s25 = int_to_ptr.vmem [resolvable:$true] %s32_s25 }
   0x6   :  { %s3408_s26 = scalar_lea.vmem %s33_s25, 768  ;;  %p3413_p1 = scmp.lt.s32.totalorder %s33_s25, %s33_s25 }
   0x7   :  { %p3409_p0 = scmp.ne.s32.totalorder %s33_s25, %s3408_s26  ;;  %p3414_p2 = scmp.lt.s32.totalorder %s3408_s26, %s3408_s26 }
   0x9   :  { %p3415_p3 = por %p3414_p2, %p3413_p1 }
   0xb   :  { %p3416_p4 = pnand %p3415_p3, %p3409_p0 }
   0xd   :  { %3419 = shalt.err (!%p3416_p4)
}
   0xe   :  { %s3551_s27 = smov 256   ;;  %s3552_s28 = smov 16  }
   0xf   :  { %38 = dma.hbm_to_vmem [thread:$0]  %s3689_s1, 768, %s33_s25, [#allocation6], %s3551_s27, %s3551_s27, %s3552_s28  }
  0x10   :  { %s3553_s8 = smov [#allocation8]  }
  0x11   :  { %s54_s9 = sshll.u32 %s3553_s8, 4  ;;  %s55_s9 = int_to_ptr.vmem [resolvable:$true] %s54_s9 }
  0x12   :  { %s3428_s10 = scalar_lea.vmem %s55_s9, 32768  ;;  %p3433_p6 = scmp.lt.s32.totalorder %s55_s9, %s55_s9 }
  0x13   :  { %p3429_p5 = scmp.ne.s32.totalorder %s55_s9, %s3428_s10  ;;  %p3434_p7 = scmp.lt.s32.totalorder %s3428_s10, %s3428_s10 }
  0x15   :  { %p3435_p8 = por %p3434_p7, %p3433_p6 }
  0x17   :  { %p3436_p9 = pnand %p3435_p8, %p3429_p5 }
  0x19   :  { %3439 = shalt.err (!%p3436_p9)
}
  0x1a   :  { %s3554_s11 = smov 512   ;;  %s3555_s12 = smov 32  }
  0x1b   :  { %60 = dma.hbm_to_vmem [thread:$0]  %s3691_s3, 32768, %s55_s9, [#allocation9], %s3554_s11, %s3554_s11, %s3555_s12  }
  0x1c   :  { %s3556_s15 = smov [#allocation2]   ;;  %s3557_s17 = smov [#allocation7]  }
  0x1d   :  { %s23_s16 = sshll.u32 %s3556_s15, 4  ;;  %s45_s1 = sshll.u32 %s3557_s17, 4  ;;  %s24_s16 = int_to_ptr.vmem [resolvable:$true] %s23_s16  ;;  %s46_s1 = int_to_ptr.vmem [resolvable:$true] %s45_s1 }
  0x1e   :  { %s3448_s18 = scalar_lea.vmem %s24_s16, 128  ;;  %p3453_p11 = scmp.lt.s32.totalorder %s24_s16, %s24_s16 }
  0x1f   :  { %p3449_p10 = scmp.ne.s32.totalorder %s24_s16, %s3448_s18  ;;  %p3454_p12 = scmp.lt.s32.totalorder %s3448_s18, %s3448_s18 }
  0x21   :  { %p3455_p13 = por %p3454_p12, %p3453_p11 }
  0x23   :  { %p3456_p0 = pnand %p3455_p13, %p3449_p10 }
  0x25   :  { %3459 = shalt.err (!%p3456_p0)
}
  0x26   :  { %26 = dma.hbm_to_vmem [thread:$0]  %s3688_s0, 128, %s24_s16, [#allocation3]  }
  0x27   :  { %s3468_s21 = scalar_lea.vmem %s46_s1, 64  ;;  %p3473_p2 = scmp.lt.s32.totalorder %s46_s1, %s46_s1 }
  0x28   :  { %p3469_p1 = scmp.ne.s32.totalorder %s46_s1, %s3468_s21  ;;  %p3474_p3 = scmp.lt.s32.totalorder %s3468_s21, %s3468_s21 }
  0x2a   :  { %p3475_p4 = por %p3474_p3, %p3473_p2 }
  0x2c   :  { %p3476_p5 = pnand %p3475_p4, %p3469_p1 }
  0x2e   :  { %3479 = shalt.err (!%p3476_p5)
}
  0x2f   :  { %48 = dma.hbm_to_vmem [thread:$0]  %s3690_s2, 64, %s46_s1, [#allocation6]  }
  0x30   :  { %s3558_s23 = smov [#allocation10]   ;;  %s3559_s25 = smov [#allocation11]  }
  0x31   :  { %s67_s24 = sshll.u32 %s3558_s23, 4  ;;  %s76_s26 = sshll.u32 %s3559_s25, 4  ;;  %s68_s24 = int_to_ptr.vmem [resolvable:$true] %s67_s24  ;;  %s77_s26 = int_to_ptr.vmem [resolvable:$true] %s76_s26 }
  0x32   :  { %s3488_s27 = scalar_lea.vmem %s68_s24, 128  ;;  %p3493_p7 = scmp.lt.s32.totalorder %s68_s24, %s68_s24 }
  0x33   :  { %p3489_p6 = scmp.ne.s32.totalorder %s68_s24, %s3488_s27  ;;  %p3494_p8 = scmp.lt.s32.totalorder %s3488_s27, %s3488_s27 }
  0x35   :  { %p3495_p9 = por %p3494_p8, %p3493_p7 }
  0x37   :  { %p3496_p10 = pnand %p3495_p9, %p3489_p6 }
  0x39   :  { %3499 = shalt.err (!%p3496_p10)
}
  0x3a   :  { %70 = dma.hbm_to_vmem [thread:$0]  %s3692_s4, 128, %s68_s24, [#allocation9]  }
  0x3b   :  { %s3508_s29 = scalar_lea.vmem %s77_s26, 8192  ;;  %p3513_p12 = scmp.lt.s32.totalorder %s77_s26, %s77_s26 }
  0x3c   :  { %p3509_p11 = scmp.ne.s32.totalorder %s77_s26, %s3508_s29  ;;  %p3514_p13 = scmp.lt.s32.totalorder %s3508_s29, %s3508_s29 }
  0x3e   :  { %p3515_p0 = por %p3514_p13, %p3513_p12 }
  0x40   :  { %p3516_p1 = pnand %p3515_p0, %p3509_p11 }
  0x42   :  { %3519 = shalt.err (!%p3516_p1)
}
  0x43   :  { %s3560_s2 = smov 64   ;;  %s3561_s30 = smov 4  }
  0x44   :  { %82 = dma.hbm_to_vmem [thread:$0]  %s3693_s5, 8192, %s77_s26, [#allocation12], %s3560_s2, %s3560_s2, %s3561_s30  }
  0x45   :  { %3540 = dma.done.wait [#allocation3], 128  }
  0x46   :  { %3541 = vsyncadd [#allocation3], 4294967168 }
  0x47   :  { %3542 = dma.done.wait [#allocation6], 832  }
  0x48   :  { %3543 = vsyncadd [#allocation6], 4294966464 }
  0x49   :  { %3544 = dma.done.wait [#allocation9], 32896  }
  0x4a   :  { %3545 = vsyncadd [#allocation9], 4294934400 }
  0x4b   :  { %3546 = dma.done.wait [#allocation12], 8192  }
  0x4c   :  { %3547 = vsyncadd [#allocation12], 4294959104  ;;  %v3562_v0 = vmov 0   ;;  %v110_v1 = vld [vmem:[#allocation5 + $0x20] sm:$0x33]  ;;  %vm168_vm0 = vcmask 1041408  }
  0x4d   :  { %213 = vmatprep.mubr.bf16.mxu0 %v3562_v0  ;;  %254 = vmatprep.mubr.bf16.mxu1 %v3562_v0  ;;  %v111_v2 = vld [vmem:[#allocation5 + $0x28] sm:$0x33]  ;;  %v2896_v3 = vcombine.high %v110_v1, %v110_v1  ;;  %v2895_v5 = vcombine.low %v110_v1, %v110_v1  ;;  %v3330_v7 = vld [vmem:[#allocation5 + $0x4] ss:$16 sps:$4 sm:$0xff]   ;;  %v3334_v9 = vld [vmem:[#allocation5] ss:$16 sps:$4 sm:$0xff]  }
  0x4e   :  { %v2898_v4 = vcombine.high %v111_v2, %v111_v2  ;;  %v2897_v6 = vcombine.low %v111_v2, %v111_v2  ;;  %v3332_v8 = vld [vmem:[#allocation5 + $0xc] ss:$16 sps:$4 sm:$0xff]   ;;  %v3335_v12 = vld [vmem:[#allocation5 + $0x8] ss:$16 sps:$4 sm:$0xff]   ;;  %vm164_vm1 = vcmask 162816   ;;  %s3563_s10 = smov [#allocation13]  }
  0x4f   :  { %2899 = vmatprep.subr.msk.bf16.mxu0 %vm168_vm0, %v2896_v3  ;;  %v170_v10 = vsel %vm168_vm0, %v2895_v5, 0  ;;  %v104_v13 = vld [vmem:[#allocation2] sm:$0xff]  ;;  %s2879_s11 = sshll.u32 %s3563_s10, 4  ;;  %s2880_s11 = int_to_ptr.vmem [resolvable:$true] %s2879_s11 }
  0x50   :  { %2901 = vmatprep.subr.msk.bf16.mxu1 %vm168_vm0, %v2898_v4  ;;  %v176_v11 = vsel %vm168_vm0, %v2897_v6, 0  ;;  %v327_v14 = vld [vmem:[#allocation8 + $0x1c0] sm:$0xff]  ;;  %194 = vmatpush1.bf16.msra.mxu0 %v170_v10  ;;  %v105_v24 = vpack.c.bf16 %v104_v13, %v104_v13  ;;  %p3525_p3 = scmp.lt.s32.totalorder %s2880_s11, %s2880_s11 }
  0x51   :  { %235 = vmatpush1.bf16.msra.mxu1 %v176_v11  ;;  %v331_v15 = vld [vmem:[#allocation8 + $0x1e0] sm:$0xff]  ;;  %195 = vmatprep.subr.bf16.mxu0 %v3330_v7 }
  0x52   :  { %v455_v16 = vld [vmem:[#allocation8 + $0x5c0] sm:$0xff]  ;;  %236 = vmatprep.subr.bf16.mxu1 %v3332_v8  ;;  %v2960_v18 = vcombine.high %v327_v14, %v331_v15  ;;  %v2959_v25 = vcombine.low %v327_v14, %v331_v15 }
  0x53   :  { %v459_v17 = vld [vmem:[#allocation8 + $0x5e0] sm:$0xff] }
  0x54   :  { %v319_v19 = vld [vmem:[#allocation8 + $0x180] sm:$0xff]  ;;  %v3088_v20 = vcombine.high %v455_v16, %v459_v17  ;;  %196 = vmatpush1.bf16.msra.mxu0 %v3334_v9  ;;  %v3087_v26 = vcombine.low %v455_v16, %v459_v17 }
  0x55   :  { %v323_v21 = vld [vmem:[#allocation8 + $0x1a0] sm:$0xff]  ;;  %237 = vmatpush1.bf16.msra.mxu1 %v3335_v12  ;;  %1849 = vmatprep.subr.bf16.mxu0 %v2960_v18 }
  0x56   :  { %v447_v22 = vld [vmem:[#allocation8 + $0x580] sm:$0xff]  ;;  %1890 = vmatprep.subr.bf16.mxu1 %v3088_v20  ;;  %v2952_v27 = vcombine.high %v319_v19, %v323_v21  ;;  %v2951_v33 = vcombine.low %v319_v19, %v323_v21 }
  0x57   :  { %v451_v23 = vld [vmem:[#allocation8 + $0x5a0] sm:$0xff]  ;;  %2900 = vmatmul.mubr.msk.bf16.vlgmr.msra.gmra.mxu0 %vm164_vm1, %v105_v24 }
  0x58   :  { %v3080_v28 = vcombine.high %v447_v22, %v451_v23  ;;  %v311_v29 = vld [vmem:[#allocation8 + $0x140] sm:$0xff]  ;;  %2902 = vmatmul.mubr.msk.bf16.vlgmr.msra.gmra.mxu1 %vm164_vm1, %v105_v24  ;;  %1850 = vmatpush1.bf16.msra.mxu0 %v2959_v25  ;;  %v3079_v34 = vcombine.low %v447_v22, %v451_v23 }
  0x59   :  { %v315_v30 = vld [vmem:[#allocation8 + $0x160] sm:$0xff]  ;;  %1891 = vmatpush1.bf16.msra.mxu1 %v3087_v26  ;;  %1851 = vmatprep.subr.bf16.mxu0 %v2952_v27 }
  0x5a   :  { %v439_v31 = vld [vmem:[#allocation8 + $0x540] sm:$0xff]  ;;  %1892 = vmatprep.subr.bf16.mxu1 %v3080_v28  ;;  %v2944_v35 = vcombine.high %v311_v29, %v315_v30  ;;  %v2943_v41 = vcombine.low %v311_v29, %v315_v30 }
  0x5b   :  { %v443_v32 = vld [vmem:[#allocation8 + $0x560] sm:$0xff] }
  0x5c   :  { %v3072_v36 = vcombine.high %v439_v31, %v443_v32  ;;  %v303_v37 = vld [vmem:[#allocation8 + $0x100] sm:$0xff]  ;;  %1852 = vmatpush1.bf16.msra.mxu0 %v2951_v33  ;;  %v3071_v42 = vcombine.low %v439_v31, %v443_v32 }
  0x5d   :  { %v307_v38 = vld [vmem:[#allocation8 + $0x120] sm:$0xff]  ;;  %1893 = vmatpush1.bf16.msra.mxu1 %v3079_v34  ;;  %1853 = vmatprep.subr.bf16.mxu0 %v2944_v35 }
  0x5e   :  { %v431_v39 = vld [vmem:[#allocation8 + $0x500] sm:$0xff]  ;;  %1894 = vmatprep.subr.bf16.mxu1 %v3072_v36  ;;  %v2936_v43 = vcombine.high %v303_v37, %v307_v38  ;;  %v2935_v49 = vcombine.low %v303_v37, %v307_v38 }
  0x5f   :  { %v435_v40 = vld [vmem:[#allocation8 + $0x520] sm:$0xff] }
  0x60   :  { %v3064_v44 = vcombine.high %v431_v39, %v435_v40  ;;  %v295_v45 = vld [vmem:[#allocation8 + $0xc0] sm:$0xff]  ;;  %1854 = vmatpush1.bf16.msra.mxu0 %v2943_v41  ;;  %v3063_v50 = vcombine.low %v431_v39, %v435_v40 }
  0x61   :  { %v299_v46 = vld [vmem:[#allocation8 + $0xe0] sm:$0xff]  ;;  %1895 = vmatpush1.bf16.msra.mxu1 %v3071_v42  ;;  %1855 = vmatprep.subr.bf16.mxu0 %v2936_v43 }
  0x62   :  { %v423_v47 = vld [vmem:[#allocation8 + $0x4c0] sm:$0xff]  ;;  %1896 = vmatprep.subr.bf16.mxu1 %v3064_v44  ;;  %v2928_v51 = vcombine.high %v295_v45, %v299_v46  ;;  %v2927_v57 = vcombine.low %v295_v45, %v299_v46 }
  0x63   :  { %v427_v48 = vld [vmem:[#allocation8 + $0x4e0] sm:$0xff] }
  0x64   :  { %v3056_v52 = vcombine.high %v423_v47, %v427_v48  ;;  %v287_v53 = vld [vmem:[#allocation8 + $0x80] sm:$0xff]  ;;  %1856 = vmatpush1.bf16.msra.mxu0 %v2935_v49  ;;  %v3055_v58 = vcombine.low %v423_v47, %v427_v48 }
  0x65   :  { %v291_v54 = vld [vmem:[#allocation8 + $0xa0] sm:$0xff]  ;;  %1897 = vmatpush1.bf16.msra.mxu1 %v3063_v50  ;;  %1857 = vmatprep.subr.bf16.mxu0 %v2928_v51 }
  0x66   :  { %v415_v55 = vld [vmem:[#allocation8 + $0x480] sm:$0xff]  ;;  %1898 = vmatprep.subr.bf16.mxu1 %v3056_v52  ;;  %v2920_v63 = vcombine.high %v287_v53, %v291_v54  ;;  %v2919_v1 = vcombine.low %v287_v53, %v291_v54 }
  0x67   :  { %v419_v56 = vld [vmem:[#allocation8 + $0x4a0] sm:$0xff] }
  0x68   :  { %v279_v59 = vld [vmem:[#allocation8 + $0x40] sm:$0xff]  ;;  %v3048_v0 = vcombine.high %v415_v55, %v419_v56  ;;  %1858 = vmatpush1.bf16.msra.mxu0 %v2927_v57  ;;  %v3047_v2 = vcombine.low %v415_v55, %v419_v56 }
  0x69   :  { %v283_v60 = vld [vmem:[#allocation8 + $0x60] sm:$0xff]  ;;  %1899 = vmatpush1.bf16.msra.mxu1 %v3055_v58  ;;  %1859 = vmatprep.subr.bf16.mxu0 %v2920_v63 }
  0x6a   :  { %v407_v61 = vld [vmem:[#allocation8 + $0x440] sm:$0xff]  ;;  %1900 = vmatprep.subr.bf16.mxu1 %v3048_v0  ;;  %v2912_v7 = vcombine.high %v279_v59, %v283_v60  ;;  %v2911_v9 = vcombine.low %v279_v59, %v283_v60 }
  0x6b   :  { %v411_v62 = vld [vmem:[#allocation8 + $0x460] sm:$0xff] }
  0x6c   :  { %v271_v3 = vld [vmem:[#allocation8] sm:$0xff]  ;;  %v3040_v8 = vcombine.high %v407_v61, %v411_v62  ;;  %1860 = vmatpush1.bf16.msra.mxu0 %v2919_v1  ;;  %v3039_v10 = vcombine.low %v407_v61, %v411_v62 }
  0x6d   :  { %v275_v4 = vld [vmem:[#allocation8 + $0x20] sm:$0xff]  ;;  %1901 = vmatpush1.bf16.msra.mxu1 %v3047_v2  ;;  %1861 = vmatprep.subr.bf16.mxu0 %v2912_v7 }
  0x6e   :  { %v399_v5 = vld [vmem:[#allocation8 + $0x400] sm:$0xff]  ;;  %1902 = vmatprep.subr.bf16.mxu1 %v3040_v8  ;;  %v2904_v15 = vcombine.high %v271_v3, %v275_v4  ;;  %v2903_v17 = vcombine.low %v271_v3, %v275_v4 }
  0x6f   :  { %v403_v6 = vld [vmem:[#allocation8 + $0x420] sm:$0xff] }
  0x70   :  { %v391_v11 = vld [vmem:[#allocation8 + $0x3c0] sm:$0xff]  ;;  %v3032_v16 = vcombine.high %v399_v5, %v403_v6  ;;  %1862 = vmatpush1.bf16.msra.mxu0 %v2911_v9  ;;  %v3031_v18 = vcombine.low %v399_v5, %v403_v6 }
  0x71   :  { %v395_v12 = vld [vmem:[#allocation8 + $0x3e0] sm:$0xff]  ;;  %1903 = vmatpush1.bf16.msra.mxu1 %v3039_v10  ;;  %1863 = vmatprep.subr.bf16.mxu0 %v2904_v15  ;;  %v328_v15 = vld [vmem:[#allocation8 + $0x1c8] sm:$0xff] }
  0x72   :  { %v519_v13 = vld [vmem:[#allocation8 + $0x7c0] sm:$0xff]  ;;  %1904 = vmatprep.subr.bf16.mxu1 %v3032_v16  ;;  %v3024_v23 = vcombine.high %v391_v11, %v395_v12  ;;  %v3023_v25 = vcombine.low %v391_v11, %v395_v12  ;;  %v332_v16 = vld [vmem:[#allocation8 + $0x1e8] sm:$0xff] }
  0x73   :  { %v523_v14 = vld [vmem:[#allocation8 + $0x7e0] sm:$0xff] }
  0x74   :  { %v383_v19 = vld [vmem:[#allocation8 + $0x380] sm:$0xff]  ;;  %v3152_v24 = vcombine.high %v519_v13, %v523_v14  ;;  %1864 = vmatpush1.bf16.msra.mxu0 %v2903_v17  ;;  %v3151_v26 = vcombine.low %v519_v13, %v523_v14  ;;  %v456_v17 = vld [vmem:[#allocation8 + $0x5c8] sm:$0xff] }
  0x75   :  { %v387_v20 = vld [vmem:[#allocation8 + $0x3a0] sm:$0xff]  ;;  %1905 = vmatpush1.bf16.msra.mxu1 %v3031_v18  ;;  %1865 = vmatprep.subr.bf16.mxu0 %v3024_v23  ;;  %v2962_v18 = vcombine.high %v328_v15, %v332_v16  ;;  %v114_v23 = vlaneseq }
  0x76   :  { %v511_v21 = vld [vmem:[#allocation8 + $0x780] sm:$0xff]  ;;  %1906 = vmatprep.subr.bf16.mxu1 %v3152_v24  ;;  %v3016_v31 = vcombine.high %v383_v19, %v387_v20  ;;  %v3015_v33 = vcombine.low %v383_v19, %v387_v20  ;;  %v460_v19 = vld [vmem:[#allocation8 + $0x5e8] sm:$0xff]  ;;  %v2961_v20 = vcombine.low %v328_v15, %v332_v16 }
  0x77   :  { %v515_v22 = vld [vmem:[#allocation8 + $0x7a0] sm:$0xff]  ;;  %v3622_v24 = vshrl.u32 %v114_v23, 7  ;;  %v428_v15 = vld [vmem:[#allocation8 + $0x4e8] sm:$0xff] }
  0x78   :  { %v375_v27 = vld [vmem:[#allocation8 + $0x340] sm:$0xff]  ;;  %v3144_v32 = vcombine.high %v511_v21, %v515_v22  ;;  %1866 = vmatpush2.bf16.msra.mxu0 %v3023_v25  ;;  %v3143_v34 = vcombine.low %v511_v21, %v515_v22  ;;  %v3089_v21 = vcombine.low %v456_v17, %v460_v19  ;;  %v3090_v22 = vcombine.high %v456_v17, %v460_v19  ;;  %v420_v23 = vld [vmem:[#allocation8 + $0x4a8] sm:$0xff] }
  0x79   :  { %v379_v28 = vld [vmem:[#allocation8 + $0x360] sm:$0xff]  ;;  %1907 = vmatpush2.bf16.msra.mxu1 %v3151_v26  ;;  %1867 = vmatprep.subr.bf16.mxu0 %v3016_v31  ;;  %v116_v25 = vsub.s32 0, %v3622_v24  ;;  %v124_v26 = vsub.s32 2, %v3622_v24 }
  0x7a   :  { %v503_v29 = vld [vmem:[#allocation8 + $0x740] sm:$0xff]  ;;  %1908 = vmatprep.subr.bf16.mxu1 %v3144_v32  ;;  %v3008_v39 = vcombine.high %v375_v27, %v379_v28  ;;  %v3007_v41 = vcombine.low %v375_v27, %v379_v28  ;;  %v112_v27 = vld [vmem:[#allocation7] sm:$0xf]  ;;  %v120_v28 = vsub.s32 1, %v3622_v24 }
  0x7b   :  { %v507_v30 = vld [vmem:[#allocation8 + $0x760] sm:$0xff]  ;;  %v125_v31 = vrot.slane %v112_v27, %v124_v26 }
  0x7c   :  { %v367_v35 = vld [vmem:[#allocation8 + $0x300] sm:$0xff]  ;;  %v3136_v40 = vcombine.high %v503_v29, %v507_v30  ;;  %1868 = vmatpush2.bf16.msra.mxu0 %v3015_v33  ;;  %v3135_v42 = vcombine.low %v503_v29, %v507_v30  ;;  %v128_v29 = vsub.s32 3, %v3622_v24  ;;  %v117_v30 = vrot.slane %v112_v27, %v116_v25 }
  0x7d   :  { %v371_v36 = vld [vmem:[#allocation8 + $0x320] sm:$0xff]  ;;  %1909 = vmatpush2.bf16.msra.mxu1 %v3143_v34  ;;  %1869 = vmatprep.subr.bf16.mxu0 %v3008_v39  ;;  %v121_v32 = vrot.slane %v112_v27, %v120_v28 }
  0x7e   :  { %v495_v37 = vld [vmem:[#allocation8 + $0x700] sm:$0xff]  ;;  %1910 = vmatprep.subr.bf16.mxu1 %v3136_v40  ;;  %v3000_v47 = vcombine.high %v367_v35, %v371_v36  ;;  %v2999_v49 = vcombine.low %v367_v35, %v371_v36  ;;  %v129_v33 = vrot.slane %v112_v27, %v128_v29 }
  0x7f   :  { %v499_v38 = vld [vmem:[#allocation8 + $0x720] sm:$0xff] }
  0x80   :  { %v359_v43 = vld [vmem:[#allocation8 + $0x2c0] sm:$0xff]  ;;  %v3128_v48 = vcombine.high %v495_v37, %v499_v38  ;;  %1870 = vmatpush2.bf16.msra.mxu0 %v3007_v41  ;;  %v3127_v50 = vcombine.low %v495_v37, %v499_v38 }
  0x81   :  { %v363_v44 = vld [vmem:[#allocation8 + $0x2e0] sm:$0xff]  ;;  %1911 = vmatpush2.bf16.msra.mxu1 %v3135_v42  ;;  %1871 = vmatprep.subr.bf16.mxu0 %v3000_v47 }
  0x82   :  { %v487_v45 = vld [vmem:[#allocation8 + $0x6c0] sm:$0xff]  ;;  %1912 = vmatprep.subr.bf16.mxu1 %v3128_v48  ;;  %v2992_v55 = vcombine.high %v359_v43, %v363_v44  ;;  %v2991_v57 = vcombine.low %v359_v43, %v363_v44  ;;  %v320_v48 = vld [vmem:[#allocation8 + $0x188] sm:$0xff] }
  0x83   :  { %v491_v46 = vld [vmem:[#allocation8 + $0x6e0] sm:$0xff] }
  0x84   :  { %v351_v51 = vld [vmem:[#allocation8 + $0x280] sm:$0xff]  ;;  %v3120_v56 = vcombine.high %v487_v45, %v491_v46  ;;  %1872 = vmatpush2.bf16.msra.mxu0 %v2999_v49  ;;  %v3119_v58 = vcombine.low %v487_v45, %v491_v46 }
  0x85   :  { %v355_v52 = vld [vmem:[#allocation8 + $0x2a0] sm:$0xff]  ;;  %1913 = vmatpush2.bf16.msra.mxu1 %v3127_v50  ;;  %1873 = vmatprep.subr.bf16.mxu0 %v2992_v55 }
  0x86   :  { %v479_v53 = vld [vmem:[#allocation8 + $0x680] sm:$0xff]  ;;  %1914 = vmatprep.subr.bf16.mxu1 %v3120_v56  ;;  %v2984_v59 = vcombine.high %v351_v51, %v355_v52  ;;  %v2983_v61 = vcombine.low %v351_v51, %v355_v52  ;;  %v324_v52 = vld [vmem:[#allocation8 + $0x1a8] sm:$0xff] }
  0x87   :  { %v483_v54 = vld [vmem:[#allocation8 + $0x6a0] sm:$0xff] }
  0x88   :  { %v3112_v60 = vcombine.high %v479_v53, %v483_v54  ;;  %1874 = vmatpush2.bf16.msra.mxu0 %v2991_v57  ;;  %v3111_v62 = vcombine.low %v479_v53, %v483_v54  ;;  %v343_v63 = vld [vmem:[#allocation8 + $0x240] sm:$0xff]  ;;  %v448_v53 = vld [vmem:[#allocation8 + $0x588] sm:$0xff] }
  0x89   :  { %1915 = vmatpush2.bf16.msra.mxu1 %v3119_v58  ;;  %1875 = vmatprep.subr.bf16.mxu0 %v2984_v59  ;;  %v347_v0 = vld [vmem:[#allocation8 + $0x260] sm:$0xff]  ;;  %v452_v54 = vld [vmem:[#allocation8 + $0x5a8] sm:$0xff]  ;;  %v2954_v59 = vcombine.high %v320_v48, %v324_v52 }
  0x8a   :  { %1916 = vmatprep.subr.bf16.mxu1 %v3112_v60  ;;  %v471_v1 = vld [vmem:[#allocation8 + $0x640] sm:$0xff]  ;;  %v2976_v2 = vcombine.high %v343_v63, %v347_v0  ;;  %v2975_v4 = vcombine.low %v343_v63, %v347_v0  ;;  %v312_v58 = vld [vmem:[#allocation8 + $0x148] sm:$0xff]  ;;  %v3082_v60 = vcombine.high %v448_v53, %v452_v54  ;;  %v2953_v0 = vcombine.low %v320_v48, %v324_v52 }
  0x8b   :  { %v475_v3 = vld [vmem:[#allocation8 + $0x660] sm:$0xff]  ;;  %v444_v63 = vld [vmem:[#allocation8 + $0x568] sm:$0xff] }
  0x8c   :  { %1876 = vmatpush2.bf16.msra.mxu0 %v2983_v61  ;;  %v3103_v5 = vcombine.low %v471_v1, %v475_v3  ;;  %v3104_v6 = vcombine.high %v471_v1, %v475_v3  ;;  %v335_v7 = vld [vmem:[#allocation8 + $0x200] sm:$0xff]  ;;  %v316_v61 = vld [vmem:[#allocation8 + $0x168] sm:$0xff]  ;;  %v3081_v1 = vcombine.low %v448_v53, %v452_v54 }
  0x8d   :  { %1917 = vmatpush2.bf16.msra.mxu1 %v3111_v62  ;;  %1877 = vmatprep.subr.bf16.mxu0 %v2976_v2  ;;  %v339_v8 = vld [vmem:[#allocation8 + $0x220] sm:$0xff]  ;;  %v440_v62 = vld [vmem:[#allocation8 + $0x548] sm:$0xff]  ;;  %v2946_v2 = vcombine.high %v312_v58, %v316_v61 }
  0x8e   :  { %1918 = vmatprep.subr.bf16.mxu1 %v3104_v6  ;;  %v463_v9 = vld [vmem:[#allocation8 + $0x600] sm:$0xff]  ;;  %v2968_v10 = vcombine.high %v335_v7, %v339_v8  ;;  %v2967_v12 = vcombine.low %v335_v7, %v339_v8  ;;  %v3074_v3 = vcombine.high %v440_v62, %v444_v63  ;;  %v432_v6 = vld [vmem:[#allocation8 + $0x508] sm:$0xff]  ;;  %v2945_v8 = vcombine.low %v312_v58, %v316_v61 }
  0x8f   :  { %v467_v11 = vld [vmem:[#allocation8 + $0x620] sm:$0xff]  ;;  %v436_v7 = vld [vmem:[#allocation8 + $0x528] sm:$0xff] }
  0x90   :  { %1878 = vmatpush2.bf16.msra.mxu0 %v2975_v4  ;;  %v3095_v13 = vcombine.low %v463_v9, %v467_v11  ;;  %v3096_v14 = vcombine.high %v463_v9, %v467_v11  ;;  %v304_v4 = vld [vmem:[#allocation8 + $0x108] sm:$0xff]  ;;  %v3073_v9 = vcombine.low %v440_v62, %v444_v63  ;;  %v3066_v11 = vcombine.high %v432_v6, %v436_v7 }
  0x91   :  { %1919 = vmatpush2.bf16.msra.mxu1 %v3103_v5  ;;  %1879 = vmatprep.subr.bf16.mxu0 %v2968_v10  ;;  %v308_v5 = vld [vmem:[#allocation8 + $0x128] sm:$0xff]  ;;  %v3065_v17 = vcombine.low %v432_v6, %v436_v7 }
  0x92   :  { %1920 = vmatprep.subr.bf16.mxu1 %v3096_v14  ;;  %v2938_v10 = vcombine.high %v304_v4, %v308_v5  ;;  %v424_v14 = vld [vmem:[#allocation8 + $0x4c8] sm:$0xff]  ;;  %v2937_v16 = vcombine.low %v304_v4, %v308_v5 }
  0x93   :  { %v3058_v19 = vcombine.high %v424_v14, %v428_v15  ;;  %v520_v52 = vld [vmem:[#allocation8 + $0x7c8] sm:$0xff] }
  0x94   :  { %1880 = vmatpush2.bf16.msra.mxu0 %v2967_v12  ;;  %v296_v12 = vld [vmem:[#allocation8 + $0xc8] sm:$0xff] }
  0x95   :  { %1921 = vmatpush2.bf16.msra.mxu1 %v3095_v13  ;;  %1931 = vmatprep.subr.bf16.mxu0 %v2962_v18  ;;  %v300_v13 = vld [vmem:[#allocation8 + $0xe8] sm:$0xff] }
  0x96   :  { %1972 = vmatprep.subr.bf16.mxu1 %v3090_v22  ;;  %v2930_v18 = vcombine.high %v296_v12, %v300_v13  ;;  %v416_v22 = vld [vmem:[#allocation8 + $0x488] sm:$0xff]  ;;  %v2929_v27 = vcombine.low %v296_v12, %v300_v13 }
  0x97   :  { %v524_v53 = vld [vmem:[#allocation8 + $0x7e8] sm:$0xff] }
  0x98   :  { %v384_v61 = vld [vmem:[#allocation8 + $0x388] sm:$0xff] }
  0x99   :  { %v388_v62 = vld [vmem:[#allocation8 + $0x3a8] sm:$0xff] }
  0x9a   :  { %v512_v63 = vld [vmem:[#allocation8 + $0x788] sm:$0xff] }
  0x9b   :  { %v376_v5 = vld [vmem:[#allocation8 + $0x348] sm:$0xff] }
  0x9c   :  { %v380_v6 = vld [vmem:[#allocation8 + $0x368] sm:$0xff] }
  0x9d   :  { %v504_v7 = vld [vmem:[#allocation8 + $0x748] sm:$0xff] }
  0x9e   :  { %v368_v13 = vld [vmem:[#allocation8 + $0x308] sm:$0xff] }
 0x117   :  { %v215_v34 = vpop.f32.mrf.mxu0 }
 0x118   :  { %v256_v35 = vpop.f32.mrf.mxu1  ;;  %v216_v36 = vadd.f32 %v215_v34, %v117_v30  ;;  %v3057_v30 = vcombine.low %v424_v14, %v428_v15  ;;  %v284_v34 = vld [vmem:[#allocation8 + $0x68] sm:$0xff] }
 0x119   :  { %v257_v37 = vadd.f32 %v256_v35, %v125_v31  ;;  %v217_v38 = vpop.f32.mrf.mxu0  ;;  %v408_v35 = vld [vmem:[#allocation8 + $0x448] sm:$0xff] }
 0x11a   :  { %v258_v39 = vpop.f32.mrf.mxu1  ;;  %v218_v41 = vadd.f32 %v217_v38, %v121_v32  ;;  %v263_v43 = vmax.f32 %v216_v36, 0.0  ;;  %v3050_v32 = vcombine.high %v416_v22, %v420_v23  ;;  %v412_v36 = vld [vmem:[#allocation8 + $0x468] sm:$0xff]  ;;  %v3049_v38 = vcombine.low %v416_v22, %v420_v23 }
 0x11b   :  { %v265_v40 = vmax.f32 %v257_v37, 0.0  ;;  %v259_v42 = vadd.f32 %v258_v39, %v129_v33  ;;  %v219_v44 = vpop.f32.mrf.mxu0  ;;  %v280_v33 = vld [vmem:[#allocation8 + $0x48] sm:$0xff] }
 0x11c   :  { %v260_v45 = vpop.f32.mrf.mxu1  ;;  %v264_v46 = vmax.f32 %v218_v41, 0.0  ;;  %v3642_v57 = vpack.c.bf16 %v263_v43, %v263_v43  ;;  %v2914_v39 = vcombine.high %v280_v33, %v284_v34  ;;  %v272_v41 = vld [vmem:[#allocation8 + $0x8] sm:$0xff] }
 0x11d   :  { %v266_v47 = vmax.f32 %v259_v42, 0.0  ;;  %v3636_v49 = vpack.c.bf16 %v265_v40, %v265_v40  ;;  %v220_v50 = vpop.f32.mrf.mxu0  ;;  %v3042_v40 = vcombine.high %v408_v35, %v412_v36  ;;  %v276_v42 = vld [vmem:[#allocation8 + $0x28] sm:$0xff]  ;;  %v2913_v45 = vcombine.low %v280_v33, %v284_v34 }
 0x11e   :  { %v261_v51 = vpop.f32.mrf.mxu1  ;;  %v3638_v55 = vpack.c.bf16 %v264_v46, %v264_v46  ;;  %v400_v43 = vld [vmem:[#allocation8 + $0x408] sm:$0xff]  ;;  %v3041_v46 = vcombine.low %v408_v35, %v412_v36  ;;  %v2905_v54 = vcombine.low %v272_v41, %v276_v42 }
 0x11f   :  { %v3640_v56 = vpack.c.bf16 %v266_v47, %v266_v47  ;;  %v404_v44 = vld [vmem:[#allocation8 + $0x428] sm:$0xff]  ;;  %v2906_v47 = vcombine.high %v272_v41, %v276_v42 }
 0x120   :  { %1881 = vmatprep.mubr.bf16.mxu0 %v3638_v55  ;;  %v3034_v48 = vcombine.high %v400_v43, %v404_v44  ;;  %v392_v50 = vld [vmem:[#allocation8 + $0x3c8] sm:$0xff]  ;;  %v3033_v58 = vcombine.low %v400_v43, %v404_v44 }
 0x121   :  { %1922 = vmatprep.mubr.bf16.mxu1 %v3640_v56  ;;  %1882 = vmatmul.mubr.bf16.vlgmr.msra.gmra.mxu0 %v3642_v57  ;;  %v396_v51 = vld [vmem:[#allocation8 + $0x3e8] sm:$0xff] }
 0x122   :  { %1923 = vmatmul.mubr.bf16.vlgmr.msra.gmra.mxu1 %v3636_v49  ;;  %1932 = vmatpush1.bf16.msra.mxu0 %v2961_v20  ;;  %v288_v20 = vld [vmem:[#allocation8 + $0x88] sm:$0xff] }
 0x123   :  { %1973 = vmatpush1.bf16.msra.mxu1 %v3089_v21  ;;  %1963 = vmatprep.mubr.bf16.mxu0 %v3638_v55  ;;  %v292_v21 = vld [vmem:[#allocation8 + $0xa8] sm:$0xff] }
 0x124   :  { %2004 = vmatprep.mubr.bf16.mxu1 %v3640_v56  ;;  %1933 = vmatprep.subr.bf16.mxu0 %v2954_v59  ;;  %v2922_v31 = vcombine.high %v288_v20, %v292_v21  ;;  %v2921_v37 = vcombine.low %v288_v20, %v292_v21  ;;  %v3026_v59 = vcombine.high %v392_v50, %v396_v51  ;;  %v372_v14 = vld [vmem:[#allocation8 + $0x328] sm:$0xff] }
 0x125   :  { %1974 = vmatprep.subr.bf16.mxu1 %v3082_v60  ;;  %v3154_v60 = vcombine.high %v520_v52, %v524_v53  ;;  %v496_v15 = vld [vmem:[#allocation8 + $0x708] sm:$0xff] }
 0x126   :  { %1934 = vmatpush1.bf16.msra.mxu0 %v2953_v0  ;;  %v516_v0 = vld [vmem:[#allocation8 + $0x7a8] sm:$0xff] }
 0x127   :  { %1975 = vmatpush1.bf16.msra.mxu1 %v3081_v1  ;;  %1935 = vmatprep.subr.bf16.mxu0 %v2946_v2  ;;  %v3025_v1 = vcombine.low %v392_v50, %v396_v51  ;;  %v3153_v2 = vcombine.low %v520_v52, %v524_v53  ;;  %v3146_v4 = vcombine.high %v512_v63, %v516_v0  ;;  %v360_v21 = vld [vmem:[#allocation8 + $0x2c8] sm:$0xff] }
 0x128   :  { %1976 = vmatprep.subr.bf16.mxu1 %v3074_v3  ;;  %v3018_v3 = vcombine.high %v384_v61, %v388_v62  ;;  %v364_v22 = vld [vmem:[#allocation8 + $0x2e8] sm:$0xff] }
 0x129   :  { %v488_v23 = vld [vmem:[#allocation8 + $0x6c8] sm:$0xff] }
 0x12a   :  { %1936 = vmatpush1.bf16.msra.mxu0 %v2945_v8  ;;  %v508_v8 = vld [vmem:[#allocation8 + $0x768] sm:$0xff] }
 0x12b   :  { %1977 = vmatpush1.bf16.msra.mxu1 %v3073_v9  ;;  %1937 = vmatprep.subr.bf16.mxu0 %v2938_v10  ;;  %v3017_v9 = vcombine.low %v384_v61, %v388_v62  ;;  %v3145_v10 = vcombine.low %v512_v63, %v516_v0  ;;  %v3138_v12 = vcombine.high %v504_v7, %v508_v8  ;;  %v352_v34 = vld [vmem:[#allocation8 + $0x288] sm:$0xff]  ;;  %v329_v62 = vld [vmem:[#allocation8 + $0x1d0] sm:$0xff] }
 0x12c   :  { %1978 = vmatprep.subr.bf16.mxu1 %v3066_v11  ;;  %v3010_v11 = vcombine.high %v376_v5, %v380_v6  ;;  %v356_v35 = vld [vmem:[#allocation8 + $0x2a8] sm:$0xff]  ;;  %v333_v63 = vld [vmem:[#allocation8 + $0x1f0] sm:$0xff] }
 0x12d   :  { %v480_v36 = vld [vmem:[#allocation8 + $0x688] sm:$0xff]  ;;  %v457_v0 = vld [vmem:[#allocation8 + $0x5d0] sm:$0xff] }
 0x12e   :  { %1938 = vmatpush1.bf16.msra.mxu0 %v2937_v16  ;;  %v500_v16 = vld [vmem:[#allocation8 + $0x728] sm:$0xff] }
 0x12f   :  { %1979 = vmatpush1.bf16.msra.mxu1 %v3065_v17  ;;  %1939 = vmatprep.subr.bf16.mxu0 %v2930_v18  ;;  %v3009_v17 = vcombine.low %v376_v5, %v380_v6  ;;  %v3137_v18 = vcombine.low %v504_v7, %v508_v8  ;;  %v3130_v20 = vcombine.high %v496_v15, %v500_v16  ;;  %v344_v42 = vld [vmem:[#allocation8 + $0x248] sm:$0xff]  ;;  %v321_v6 = vld [vmem:[#allocation8 + $0x190] sm:$0xff] }
 0x130   :  { %1980 = vmatprep.subr.bf16.mxu1 %v3058_v19  ;;  %v3002_v19 = vcombine.high %v368_v13, %v372_v14  ;;  %v348_v43 = vld [vmem:[#allocation8 + $0x268] sm:$0xff]  ;;  %v325_v7 = vld [vmem:[#allocation8 + $0x1b0] sm:$0xff] }
 0x131   :  { %v472_v44 = vld [vmem:[#allocation8 + $0x648] sm:$0xff]  ;;  %v449_v8 = vld [vmem:[#allocation8 + $0x590] sm:$0xff] }
 0x132   :  { %1940 = vmatpush1.bf16.msra.mxu0 %v2929_v27  ;;  %v492_v27 = vld [vmem:[#allocation8 + $0x6e8] sm:$0xff] }
 0x133   :  { %1981 = vmatpush1.bf16.msra.mxu1 %v3057_v30  ;;  %1941 = vmatprep.subr.bf16.mxu0 %v2922_v31  ;;  %v3001_v30 = vcombine.low %v368_v13, %v372_v14  ;;  %v3129_v31 = vcombine.low %v496_v15, %v500_v16  ;;  %v3122_v33 = vcombine.high %v488_v23, %v492_v27  ;;  %v336_v51 = vld [vmem:[#allocation8 + $0x208] sm:$0xff]  ;;  %v313_v14 = vld [vmem:[#allocation8 + $0x150] sm:$0xff] }
 0x134   :  { %1982 = vmatprep.subr.bf16.mxu1 %v3050_v32  ;;  %v2994_v32 = vcombine.high %v360_v21, %v364_v22  ;;  %v340_v52 = vld [vmem:[#allocation8 + $0x228] sm:$0xff]  ;;  %v317_v15 = vld [vmem:[#allocation8 + $0x170] sm:$0xff] }
 0x135   :  { %v464_v53 = vld [vmem:[#allocation8 + $0x608] sm:$0xff]  ;;  %v441_v16 = vld [vmem:[#allocation8 + $0x550] sm:$0xff] }
 0x136   :  { %1942 = vmatpush1.bf16.msra.mxu0 %v2921_v37  ;;  %v484_v37 = vld [vmem:[#allocation8 + $0x6a8] sm:$0xff] }
 0x137   :  { %1983 = vmatpush1.bf16.msra.mxu1 %v3049_v38  ;;  %1943 = vmatprep.subr.bf16.mxu0 %v2914_v39  ;;  %v2993_v38 = vcombine.low %v360_v21, %v364_v22  ;;  %v3121_v39 = vcombine.low %v488_v23, %v492_v27  ;;  %v3114_v41 = vcombine.high %v480_v36, %v484_v37  ;;  %v305_v22 = vld [vmem:[#allocation8 + $0x110] sm:$0xff] }
 0x138   :  { %1984 = vmatprep.subr.bf16.mxu1 %v3042_v40  ;;  %v2986_v40 = vcombine.high %v352_v34, %v356_v35  ;;  %v309_v23 = vld [vmem:[#allocation8 + $0x130] sm:$0xff] }
 0x139   :  { %v433_v27 = vld [vmem:[#allocation8 + $0x510] sm:$0xff] }
 0x13a   :  { %1944 = vmatpush1.bf16.msra.mxu0 %v2913_v45  ;;  %v476_v45 = vld [vmem:[#allocation8 + $0x668] sm:$0xff] }
 0x13b   :  { %1985 = vmatpush1.bf16.msra.mxu1 %v3041_v46  ;;  %1945 = vmatprep.subr.bf16.mxu0 %v2906_v47  ;;  %v2985_v46 = vcombine.low %v352_v34, %v356_v35  ;;  %v3113_v47 = vcombine.low %v480_v36, %v484_v37  ;;  %v3106_v50 = vcombine.high %v472_v44, %v476_v45  ;;  %v297_v35 = vld [vmem:[#allocation8 + $0xd0] sm:$0xff] }
 0x13c   :  { %1986 = vmatprep.subr.bf16.mxu1 %v3034_v48  ;;  %v2978_v48 = vcombine.high %v344_v42, %v348_v43  ;;  %v301_v36 = vld [vmem:[#allocation8 + $0xf0] sm:$0xff] }
 0x13d   :  { %v425_v37 = vld [vmem:[#allocation8 + $0x4d0] sm:$0xff] }
 0x13e   :  { %1946 = vmatpush1.bf16.msra.mxu0 %v2905_v54  ;;  %v468_v54 = vld [vmem:[#allocation8 + $0x628] sm:$0xff] }
 0x13f   :  { %1987 = vmatpush1.bf16.msra.mxu1 %v3033_v58  ;;  %1947 = vmatprep.subr.bf16.mxu0 %v3026_v59  ;;  %v2977_v58 = vcombine.low %v344_v42, %v348_v43  ;;  %v3105_v59 = vcombine.low %v472_v44, %v476_v45  ;;  %v3098_v61 = vcombine.high %v464_v53, %v468_v54  ;;  %v289_v43 = vld [vmem:[#allocation8 + $0x90] sm:$0xff] }
 0x140   :  { %1988 = vmatprep.subr.bf16.mxu1 %v3154_v60  ;;  %v2970_v60 = vcombine.high %v336_v51, %v340_v52  ;;  %v293_v44 = vld [vmem:[#allocation8 + $0xb0] sm:$0xff] }
 0x141   :  { %v417_v45 = vld [vmem:[#allocation8 + $0x490] sm:$0xff] }
 0x142   :  { %1948 = vmatpush2.bf16.msra.mxu0 %v3025_v1  ;;  %v461_v1 = vld [vmem:[#allocation8 + $0x5f0] sm:$0xff] }
 0x143   :  { %1989 = vmatpush2.bf16.msra.mxu1 %v3153_v2  ;;  %1949 = vmatprep.subr.bf16.mxu0 %v3018_v3  ;;  %v2969_v2 = vcombine.low %v336_v51, %v340_v52  ;;  %v3097_v3 = vcombine.low %v464_v53, %v468_v54  ;;  %v3092_v5 = vcombine.high %v457_v0, %v461_v1  ;;  %v281_v52 = vld [vmem:[#allocation8 + $0x50] sm:$0xff] }
 0x144   :  { %1990 = vmatprep.subr.bf16.mxu1 %v3146_v4  ;;  %v2964_v4 = vcombine.high %v329_v62, %v333_v63  ;;  %v285_v53 = vld [vmem:[#allocation8 + $0x70] sm:$0xff] }
 0x145   :  { %v409_v54 = vld [vmem:[#allocation8 + $0x450] sm:$0xff] }
 0x146   :  { %1950 = vmatpush2.bf16.msra.mxu0 %v3017_v9  ;;  %v453_v9 = vld [vmem:[#allocation8 + $0x5b0] sm:$0xff] }
 0x147   :  { %1991 = vmatpush2.bf16.msra.mxu1 %v3145_v10  ;;  %1951 = vmatprep.subr.bf16.mxu0 %v3010_v11  ;;  %v2963_v10 = vcombine.low %v329_v62, %v333_v63  ;;  %v3091_v11 = vcombine.low %v457_v0, %v461_v1  ;;  %v3084_v13 = vcombine.high %v449_v8, %v453_v9  ;;  %v273_v63 = vld [vmem:[#allocation8 + $0x10] sm:$0xff] }
 0x148   :  { %1992 = vmatprep.subr.bf16.mxu1 %v3138_v12  ;;  %v2956_v12 = vcombine.high %v321_v6, %v325_v7  ;;  %v277_v0 = vld [vmem:[#allocation8 + $0x30] sm:$0xff] }
 0x149   :  { %v401_v1 = vld [vmem:[#allocation8 + $0x410] sm:$0xff] }
 0x14a   :  { %1952 = vmatpush2.bf16.msra.mxu0 %v3009_v17  ;;  %v445_v17 = vld [vmem:[#allocation8 + $0x570] sm:$0xff] }
 0x14b   :  { %1993 = vmatpush2.bf16.msra.mxu1 %v3137_v18  ;;  %1953 = vmatprep.subr.bf16.mxu0 %v3002_v19  ;;  %v2955_v18 = vcombine.low %v321_v6, %v325_v7  ;;  %v3083_v19 = vcombine.low %v449_v8, %v453_v9  ;;  %v3076_v21 = vcombine.high %v441_v16, %v445_v17  ;;  %v393_v7 = vld [vmem:[#allocation8 + $0x3d0] sm:$0xff] }
 0x14c   :  { %1994 = vmatprep.subr.bf16.mxu1 %v3130_v20  ;;  %v2948_v20 = vcombine.high %v313_v14, %v317_v15  ;;  %v397_v8 = vld [vmem:[#allocation8 + $0x3f0] sm:$0xff] }
 0x14d   :  { %v521_v9 = vld [vmem:[#allocation8 + $0x7d0] sm:$0xff] }
 0x14e   :  { %1954 = vmatpush2.bf16.msra.mxu0 %v3001_v30  ;;  %v437_v30 = vld [vmem:[#allocation8 + $0x530] sm:$0xff] }
 0x14f   :  { %1995 = vmatpush2.bf16.msra.mxu1 %v3129_v31  ;;  %1955 = vmatprep.subr.bf16.mxu0 %v2994_v32  ;;  %v2947_v31 = vcombine.low %v313_v14, %v317_v15  ;;  %v3075_v32 = vcombine.low %v441_v16, %v445_v17  ;;  %v3068_v34 = vcombine.high %v433_v27, %v437_v30  ;;  %v385_v15 = vld [vmem:[#allocation8 + $0x390] sm:$0xff] }
 0x150   :  { %1996 = vmatprep.subr.bf16.mxu1 %v3122_v33  ;;  %v2940_v33 = vcombine.high %v305_v22, %v309_v23  ;;  %v389_v16 = vld [vmem:[#allocation8 + $0x3b0] sm:$0xff] }
 0x151   :  { %v513_v17 = vld [vmem:[#allocation8 + $0x790] sm:$0xff] }
 0x152   :  { %1956 = vmatpush2.bf16.msra.mxu0 %v2993_v38  ;;  %v429_v38 = vld [vmem:[#allocation8 + $0x4f0] sm:$0xff] }
 0x153   :  { %1997 = vmatpush2.bf16.msra.mxu1 %v3121_v39  ;;  %1957 = vmatprep.subr.bf16.mxu0 %v2986_v40  ;;  %v2939_v39 = vcombine.low %v305_v22, %v309_v23  ;;  %v3067_v40 = vcombine.low %v433_v27, %v437_v30  ;;  %v3060_v42 = vcombine.high %v425_v37, %v429_v38  ;;  %v377_v23 = vld [vmem:[#allocation8 + $0x350] sm:$0xff] }
 0x154   :  { %1998 = vmatprep.subr.bf16.mxu1 %v3114_v41  ;;  %v2932_v41 = vcombine.high %v297_v35, %v301_v36  ;;  %v381_v27 = vld [vmem:[#allocation8 + $0x370] sm:$0xff] }
 0x155   :  { %v505_v30 = vld [vmem:[#allocation8 + $0x750] sm:$0xff] }
 0x156   :  { %1958 = vmatpush2.bf16.msra.mxu0 %v2985_v46  ;;  %v421_v46 = vld [vmem:[#allocation8 + $0x4b0] sm:$0xff] }
 0x157   :  { %1999 = vmatpush2.bf16.msra.mxu1 %v3113_v47  ;;  %1959 = vmatprep.subr.bf16.mxu0 %v2978_v48  ;;  %v2931_v47 = vcombine.low %v297_v35, %v301_v36  ;;  %v3059_v48 = vcombine.low %v425_v37, %v429_v38  ;;  %v3052_v51 = vcombine.high %v417_v45, %v421_v46  ;;  %v369_v36 = vld [vmem:[#allocation8 + $0x310] sm:$0xff] }
 0x158   :  { %2000 = vmatprep.subr.bf16.mxu1 %v3106_v50  ;;  %v2924_v50 = vcombine.high %v289_v43, %v293_v44  ;;  %v373_v37 = vld [vmem:[#allocation8 + $0x330] sm:$0xff] }
 0x159   :  { %v497_v38 = vld [vmem:[#allocation8 + $0x710] sm:$0xff] }
 0x15a   :  { %1960 = vmatpush2.bf16.msra.mxu0 %v2977_v58  ;;  %v413_v58 = vld [vmem:[#allocation8 + $0x470] sm:$0xff] }
 0x15b   :  { %2001 = vmatpush2.bf16.msra.mxu1 %v3105_v59  ;;  %1961 = vmatprep.subr.bf16.mxu0 %v2970_v60  ;;  %v2923_v59 = vcombine.low %v289_v43, %v293_v44  ;;  %v3051_v60 = vcombine.low %v417_v45, %v421_v46  ;;  %v3044_v62 = vcombine.high %v409_v54, %v413_v58  ;;  %v361_v44 = vld [vmem:[#allocation8 + $0x2d0] sm:$0xff] }
 0x15c   :  { %2002 = vmatprep.subr.bf16.mxu1 %v3098_v61  ;;  %v2916_v61 = vcombine.high %v281_v52, %v285_v53  ;;  %v365_v45 = vld [vmem:[#allocation8 + $0x2f0] sm:$0xff] }
 0x15d   :  { %v489_v46 = vld [vmem:[#allocation8 + $0x6d0] sm:$0xff] }
 0x15e   :  { %1962 = vmatpush2.bf16.msra.mxu0 %v2969_v2  ;;  %v405_v2 = vld [vmem:[#allocation8 + $0x430] sm:$0xff] }
 0x15f   :  { %2003 = vmatpush2.bf16.msra.mxu1 %v3097_v3  ;;  %2013 = vmatprep.subr.bf16.mxu0 %v2964_v4  ;;  %v2915_v3 = vcombine.low %v281_v52, %v285_v53  ;;  %v3043_v4 = vcombine.low %v409_v54, %v413_v58  ;;  %v3036_v6 = vcombine.high %v401_v1, %v405_v2  ;;  %v353_v53 = vld [vmem:[#allocation8 + $0x290] sm:$0xff] }
 0x160   :  { %2054 = vmatprep.subr.bf16.mxu1 %v3092_v5  ;;  %v2908_v5 = vcombine.high %v273_v63, %v277_v0  ;;  %v357_v54 = vld [vmem:[#allocation8 + $0x2b0] sm:$0xff] }
 0x161   :  { %1964 = vmatmul.mubr.bf16.vlgmr.msra.gmra.mxu0 %v3642_v57  ;;  %v481_v58 = vld [vmem:[#allocation8 + $0x690] sm:$0xff] }
 0x162   :  { %2005 = vmatmul.mubr.bf16.vlgmr.msra.gmra.mxu1 %v3636_v49  ;;  %2014 = vmatpush1.bf16.msra.mxu0 %v2963_v10  ;;  %v525_v10 = vld [vmem:[#allocation8 + $0x7f0] sm:$0xff] }
 0x163   :  { %2045 = vmatprep.mubr.bf16.mxu0 %v3638_v55  ;;  %2055 = vmatpush1.bf16.msra.mxu1 %v3091_v11  ;;  %v2907_v11 = vcombine.low %v273_v63, %v277_v0  ;;  %v3156_v14 = vcombine.high %v521_v9, %v525_v10  ;;  %v345_v0 = vld [vmem:[#allocation8 + $0x250] sm:$0xff] }
 0x164   :  { %2086 = vmatprep.mubr.bf16.mxu1 %v3640_v56  ;;  %2015 = vmatprep.subr.bf16.mxu0 %v2956_v12  ;;  %v3035_v12 = vcombine.low %v401_v1, %v405_v2  ;;  %v349_v1 = vld [vmem:[#allocation8 + $0x270] sm:$0xff] }
 0x165   :  { %2056 = vmatprep.subr.bf16.mxu1 %v3084_v13  ;;  %v3028_v13 = vcombine.high %v393_v7, %v397_v8  ;;  %v473_v2 = vld [vmem:[#allocation8 + $0x650] sm:$0xff] }
 0x166   :  { %2016 = vmatpush1.bf16.msra.mxu0 %v2955_v18  ;;  %v517_v18 = vld [vmem:[#allocation8 + $0x7b0] sm:$0xff] }
 0x167   :  { %2057 = vmatpush1.bf16.msra.mxu1 %v3083_v19  ;;  %2017 = vmatprep.subr.bf16.mxu0 %v2948_v20  ;;  %v3027_v19 = vcombine.low %v393_v7, %v397_v8  ;;  %v3155_v20 = vcombine.low %v521_v9, %v525_v10  ;;  %v3148_v22 = vcombine.high %v513_v17, %v517_v18  ;;  %v337_v8 = vld [vmem:[#allocation8 + $0x210] sm:$0xff] }
 0x168   :  { %2058 = vmatprep.subr.bf16.mxu1 %v3076_v21  ;;  %v3020_v21 = vcombine.high %v385_v15, %v389_v16  ;;  %v341_v9 = vld [vmem:[#allocation8 + $0x230] sm:$0xff] }
 0x169   :  { %v465_v10 = vld [vmem:[#allocation8 + $0x610] sm:$0xff] }
 0x16a   :  { %2018 = vmatpush1.bf16.msra.mxu0 %v2947_v31  ;;  %v509_v31 = vld [vmem:[#allocation8 + $0x770] sm:$0xff] }
 0x16b   :  { %2059 = vmatpush1.bf16.msra.mxu1 %v3075_v32  ;;  %2019 = vmatprep.subr.bf16.mxu0 %v2940_v33  ;;  %v3019_v32 = vcombine.low %v385_v15, %v389_v16  ;;  %v3147_v33 = vcombine.low %v513_v17, %v517_v18  ;;  %v3140_v35 = vcombine.high %v505_v30, %v509_v31  ;;  %v330_v16 = vld [vmem:[#allocation8 + $0x1d8] sm:$0xff] }
 0x16c   :  { %2060 = vmatprep.subr.bf16.mxu1 %v3068_v34  ;;  %v3012_v34 = vcombine.high %v377_v23, %v381_v27  ;;  %v334_v17 = vld [vmem:[#allocation8 + $0x1f8] sm:$0xff] }
 0x16d   :  { %v458_v18 = vld [vmem:[#allocation8 + $0x5d8] sm:$0xff] }
 0x16e   :  { %2020 = vmatpush1.bf16.msra.mxu0 %v2939_v39  ;;  %v501_v39 = vld [vmem:[#allocation8 + $0x730] sm:$0xff] }
 0x16f   :  { %2061 = vmatpush1.bf16.msra.mxu1 %v3067_v40  ;;  %2021 = vmatprep.subr.bf16.mxu0 %v2932_v41  ;;  %v3011_v40 = vcombine.low %v377_v23, %v381_v27  ;;  %v3139_v41 = vcombine.low %v505_v30, %v509_v31  ;;  %v3132_v43 = vcombine.high %v497_v38, %v501_v39  ;;  %v322_v27 = vld [vmem:[#allocation8 + $0x198] sm:$0xff] }
 0x170   :  { %2062 = vmatprep.subr.bf16.mxu1 %v3060_v42  ;;  %v3004_v42 = vcombine.high %v369_v36, %v373_v37  ;;  %v326_v30 = vld [vmem:[#allocation8 + $0x1b8] sm:$0xff]  ;;  %v2965_v31 = vcombine.low %v330_v16, %v334_v17 }
 0x172   :  { %2022 = vmatpush1.bf16.msra.mxu0 %v2931_v47  ;;  %v493_v47 = vld [vmem:[#allocation8 + $0x6f0] sm:$0xff] }
 0x173   :  { %2063 = vmatpush1.bf16.msra.mxu1 %v3059_v48  ;;  %2023 = vmatprep.subr.bf16.mxu0 %v2924_v50  ;;  %v3003_v48 = vcombine.low %v369_v36, %v373_v37  ;;  %v3131_v50 = vcombine.low %v497_v38, %v501_v39  ;;  %v3124_v52 = vcombine.high %v489_v46, %v493_v47  ;;  %v314_v36 = vld [vmem:[#allocation8 + $0x158] sm:$0xff] }
 0x174   :  { %2064 = vmatprep.subr.bf16.mxu1 %v3052_v51  ;;  %v2996_v51 = vcombine.high %v361_v44, %v365_v45  ;;  %v318_v37 = vld [vmem:[#allocation8 + $0x178] sm:$0xff] }
 0x175   :  { %v442_v39 = vld [vmem:[#allocation8 + $0x558] sm:$0xff] }
 0x176   :  { %2024 = vmatpush1.bf16.msra.mxu0 %v2923_v59  ;;  %v485_v59 = vld [vmem:[#allocation8 + $0x6b0] sm:$0xff] }
 0x177   :  { %2065 = vmatpush1.bf16.msra.mxu1 %v3051_v60  ;;  %2025 = vmatprep.subr.bf16.mxu0 %v2916_v61  ;;  %v2995_v60 = vcombine.low %v361_v44, %v365_v45  ;;  %v3123_v61 = vcombine.low %v489_v46, %v493_v47  ;;  %v3116_v63 = vcombine.high %v481_v58, %v485_v59  ;;  %v306_v45 = vld [vmem:[#allocation8 + $0x118] sm:$0xff] }
 0x178   :  { %2066 = vmatprep.subr.bf16.mxu1 %v3044_v62  ;;  %v2988_v62 = vcombine.high %v353_v53, %v357_v54  ;;  %v310_v46 = vld [vmem:[#allocation8 + $0x138] sm:$0xff] }
 0x179   :  { %v434_v47 = vld [vmem:[#allocation8 + $0x518] sm:$0xff] }
 0x17a   :  { %2026 = vmatpush1.bf16.msra.mxu0 %v2915_v3  ;;  %v477_v3 = vld [vmem:[#allocation8 + $0x670] sm:$0xff] }
 0x17b   :  { %2067 = vmatpush1.bf16.msra.mxu1 %v3043_v4  ;;  %2027 = vmatprep.subr.bf16.mxu0 %v2908_v5  ;;  %v2987_v4 = vcombine.low %v353_v53, %v357_v54  ;;  %v3115_v5 = vcombine.low %v481_v58, %v485_v59  ;;  %v3108_v7 = vcombine.high %v473_v2, %v477_v3  ;;  %v298_v53 = vld [vmem:[#allocation8 + $0xd8] sm:$0xff] }
 0x17c   :  { %2068 = vmatprep.subr.bf16.mxu1 %v3036_v6  ;;  %v2980_v6 = vcombine.high %v345_v0, %v349_v1  ;;  %v302_v54 = vld [vmem:[#allocation8 + $0xf8] sm:$0xff] }
 0x17d   :  { %v426_v58 = vld [vmem:[#allocation8 + $0x4d8] sm:$0xff] }
 0x17e   :  { %2028 = vmatpush1.bf16.msra.mxu0 %v2907_v11  ;;  %v469_v11 = vld [vmem:[#allocation8 + $0x630] sm:$0xff]  ;;  %v430_v59 = vld [vmem:[#allocation8 + $0x4f8] sm:$0xff] }
 0x17f   :  { %2069 = vmatpush1.bf16.msra.mxu1 %v3035_v12  ;;  %2029 = vmatprep.subr.bf16.mxu0 %v3028_v13  ;;  %v2979_v12 = vcombine.low %v345_v0, %v349_v1  ;;  %v3107_v13 = vcombine.low %v473_v2, %v477_v3  ;;  %v3100_v15 = vcombine.high %v465_v10, %v469_v11  ;;  %v294_v0 = vld [vmem:[#allocation8 + $0xb8] sm:$0xff] }
 0x180   :  { %2070 = vmatprep.subr.bf16.mxu1 %v3156_v14  ;;  %v2972_v14 = vcombine.high %v337_v8, %v341_v9  ;;  %v418_v1 = vld [vmem:[#allocation8 + $0x498] sm:$0xff]  ;;  %v2933_v3 = vcombine.low %v298_v53, %v302_v54 }
 0x181   :  { %v422_v2 = vld [vmem:[#allocation8 + $0x4b8] sm:$0xff] }
 0x182   :  { %2030 = vmatpush2.bf16.msra.mxu0 %v3027_v19  ;;  %v462_v19 = vld [vmem:[#allocation8 + $0x5f8] sm:$0xff] }
 0x183   :  { %2071 = vmatpush2.bf16.msra.mxu1 %v3155_v20  ;;  %2031 = vmatprep.subr.bf16.mxu0 %v3020_v21  ;;  %v2971_v20 = vcombine.low %v337_v8, %v341_v9  ;;  %v3099_v21 = vcombine.low %v465_v10, %v469_v11  ;;  %v3094_v23 = vcombine.high %v458_v18, %v462_v19  ;;  %v286_v8 = vld [vmem:[#allocation8 + $0x78] sm:$0xff] }
 0x184   :  { %2072 = vmatprep.subr.bf16.mxu1 %v3148_v22  ;;  %v2966_v22 = vcombine.high %v330_v16, %v334_v17  ;;  %v410_v9 = vld [vmem:[#allocation8 + $0x458] sm:$0xff] }
 0x185   :  { %v414_v10 = vld [vmem:[#allocation8 + $0x478] sm:$0xff] }
 0x186   :  { %2032 = vmatpush2.bf16.msra.mxu0 %v3019_v32  ;;  %v450_v32 = vld [vmem:[#allocation8 + $0x598] sm:$0xff] }
 0x187   :  { %2073 = vmatpush2.bf16.msra.mxu1 %v3147_v33  ;;  %2033 = vmatprep.subr.bf16.mxu0 %v3012_v34  ;;  %v454_v33 = vld [vmem:[#allocation8 + $0x5b8] sm:$0xff]  ;;  %v3093_v34 = vcombine.low %v458_v18, %v462_v19 }
 0x188   :  { %2074 = vmatprep.subr.bf16.mxu1 %v3140_v35  ;;  %v2958_v35 = vcombine.high %v322_v27, %v326_v30  ;;  %v3086_v38 = vcombine.high %v450_v32, %v454_v33  ;;  %v278_v16 = vld [vmem:[#allocation8 + $0x38] sm:$0xff] }
 0x189   :  { %v402_v17 = vld [vmem:[#allocation8 + $0x418] sm:$0xff] }
 0x18a   :  { %2034 = vmatpush2.bf16.msra.mxu0 %v3011_v40  ;;  %v446_v40 = vld [vmem:[#allocation8 + $0x578] sm:$0xff] }
 0x18b   :  { %2075 = vmatpush2.bf16.msra.mxu1 %v3139_v41  ;;  %2035 = vmatprep.subr.bf16.mxu0 %v3004_v42  ;;  %v2957_v41 = vcombine.low %v322_v27, %v326_v30  ;;  %v3085_v42 = vcombine.low %v450_v32, %v454_v33  ;;  %v3078_v44 = vcombine.high %v442_v39, %v446_v40  ;;  %v406_v18 = vld [vmem:[#allocation8 + $0x438] sm:$0xff] }
 0x18c   :  { %2076 = vmatprep.subr.bf16.mxu1 %v3132_v43  ;;  %v2950_v43 = vcombine.high %v314_v36, %v318_v37  ;;  %v398_v27 = vld [vmem:[#allocation8 + $0x3f8] sm:$0xff]  ;;  %v3037_v33 = vcombine.low %v402_v17, %v406_v18 }
 0x18d   :  { %v522_v30 = vld [vmem:[#allocation8 + $0x7d8] sm:$0xff] }
 0x18e   :  { %2036 = vmatpush2.bf16.msra.mxu0 %v3003_v48  ;;  %v438_v48 = vld [vmem:[#allocation8 + $0x538] sm:$0xff] }
 0x18f   :  { %2077 = vmatpush2.bf16.msra.mxu1 %v3131_v50  ;;  %2037 = vmatprep.subr.bf16.mxu0 %v2996_v51  ;;  %v2949_v50 = vcombine.low %v314_v36, %v318_v37  ;;  %v3077_v51 = vcombine.low %v442_v39, %v446_v40  ;;  %v386_v36 = vld [vmem:[#allocation8 + $0x398] sm:$0xff] }
 0x190   :  { %2078 = vmatprep.subr.bf16.mxu1 %v3124_v52  ;;  %v2942_v52 = vcombine.high %v306_v45, %v310_v46  ;;  %v390_v37 = vld [vmem:[#allocation8 + $0x3b8] sm:$0xff] }
 0x191   :  { %v518_v39 = vld [vmem:[#allocation8 + $0x7b8] sm:$0xff] }
 0x192   :  { %2038 = vmatpush2.bf16.msra.mxu0 %v2995_v60  ;;  %v3069_v60 = vcombine.low %v434_v47, %v438_v48 }
 0x193   :  { %2079 = vmatpush2.bf16.msra.mxu1 %v3123_v61  ;;  %2039 = vmatprep.subr.bf16.mxu0 %v2988_v62  ;;  %v2934_v61 = vcombine.high %v298_v53, %v302_v54  ;;  %v3062_v62 = vcombine.high %v426_v58, %v430_v59  ;;  %v374_v53 = vld [vmem:[#allocation8 + $0x338] sm:$0xff] }
 0x194   :  { %2080 = vmatprep.subr.bf16.mxu1 %v3116_v63  ;;  %v290_v63 = vld [vmem:[#allocation8 + $0x98] sm:$0xff] }
 0x195   :  { %v2925_v11 = vcombine.low %v290_v63, %v294_v0  ;;  %v498_v54 = vld [vmem:[#allocation8 + $0x718] sm:$0xff] }
 0x196   :  { %2040 = vmatpush2.bf16.msra.mxu0 %v2987_v4  ;;  %v3061_v4 = vcombine.low %v426_v58, %v430_v59  ;;  %v502_v58 = vld [vmem:[#allocation8 + $0x738] sm:$0xff] }
 0x197   :  { %2081 = vmatpush2.bf16.msra.mxu1 %v3115_v5  ;;  %2041 = vmatprep.subr.bf16.mxu0 %v2980_v6  ;;  %v2926_v5 = vcombine.high %v290_v63, %v294_v0  ;;  %v3054_v6 = vcombine.high %v418_v1, %v422_v2  ;;  %v366_v63 = vld [vmem:[#allocation8 + $0x2f8] sm:$0xff] }
 0x198   :  { %2082 = vmatprep.subr.bf16.mxu1 %v3108_v7  ;;  %v282_v7 = vld [vmem:[#allocation8 + $0x58] sm:$0xff] }
 0x199   :  { %v2917_v19 = vcombine.low %v282_v7, %v286_v8  ;;  %v490_v0 = vld [vmem:[#allocation8 + $0x6d8] sm:$0xff] }
 0x19a   :  { %2042 = vmatpush2.bf16.msra.mxu0 %v2979_v12  ;;  %v3053_v12 = vcombine.low %v418_v1, %v422_v2  ;;  %v494_v1 = vld [vmem:[#allocation8 + $0x6f8] sm:$0xff] }
 0x19b   :  { %2083 = vmatpush2.bf16.msra.mxu1 %v3107_v13  ;;  %2043 = vmatprep.subr.bf16.mxu0 %v2972_v14  ;;  %v2918_v13 = vcombine.high %v282_v7, %v286_v8  ;;  %v3046_v14 = vcombine.high %v410_v9, %v414_v10  ;;  %v358_v7 = vld [vmem:[#allocation8 + $0x2b8] sm:$0xff] }
 0x19c   :  { %2084 = vmatprep.subr.bf16.mxu1 %v3100_v15  ;;  %v274_v15 = vld [vmem:[#allocation8 + $0x18] sm:$0xff] }
 0x19d   :  { %v2909_v32 = vcombine.low %v274_v15, %v278_v16  ;;  %v482_v8 = vld [vmem:[#allocation8 + $0x698] sm:$0xff] }
 0x19e   :  { %2044 = vmatpush2.bf16.msra.mxu0 %v2971_v20  ;;  %v3045_v20 = vcombine.low %v410_v9, %v414_v10  ;;  %v486_v9 = vld [vmem:[#allocation8 + $0x6b8] sm:$0xff] }
 0x19f   :  { %2085 = vmatpush2.bf16.msra.mxu1 %v3099_v21  ;;  %2095 = vmatprep.subr.bf16.mxu0 %v2966_v22  ;;  %v2910_v21 = vcombine.high %v274_v15, %v278_v16  ;;  %v3038_v22 = vcombine.high %v402_v17, %v406_v18  ;;  %v350_v15 = vld [vmem:[#allocation8 + $0x278] sm:$0xff] }
 0x1a0   :  { %2136 = vmatprep.subr.bf16.mxu1 %v3094_v23  ;;  %v394_v23 = vld [vmem:[#allocation8 + $0x3d8] sm:$0xff] }
 0x1a1   :  { %2046 = vmatmul.mubr.bf16.vlgmr.msra.gmra.mxu0 %v3642_v57  ;;  %v3029_v40 = vcombine.low %v394_v23, %v398_v27  ;;  %v474_v16 = vld [vmem:[#allocation8 + $0x658] sm:$0xff] }
 0x1a2   :  { %2087 = vmatmul.mubr.bf16.vlgmr.msra.gmra.mxu1 %v3636_v49  ;;  %2096 = vmatpush1.bf16.msra.mxu0 %v2965_v31  ;;  %v526_v31 = vld [vmem:[#allocation8 + $0x7f8] sm:$0xff] }
 0x1a3   :  { %2127 = vmatprep.mubr.bf16.mxu0 %v3638_v55  ;;  %2137 = vmatpush1.bf16.msra.mxu1 %v3093_v34  ;;  %v3070_v55 = vcombine.high %v434_v47, %v438_v48  ;;  %v3030_v34 = vcombine.high %v394_v23, %v398_v27  ;;  %v510_v47 = vld [vmem:[#allocation8 + $0x778] sm:$0xff]  ;;  %v3021_v48 = vcombine.low %v386_v36, %v390_v37 }
 0x1a4   :  { %2168 = vmatprep.mubr.bf16.mxu1 %v3640_v56  ;;  %2097 = vmatprep.subr.bf16.mxu0 %v2958_v35  ;;  %v2941_v56 = vcombine.low %v306_v45, %v310_v46  ;;  %v3158_v35 = vcombine.high %v522_v30, %v526_v31  ;;  %v382_v45 = vld [vmem:[#allocation8 + $0x378] sm:$0xff] }
 0x1a5   :  { %2138 = vmatprep.subr.bf16.mxu1 %v3086_v38  ;;  %v514_v38 = vld [vmem:[#allocation8 + $0x798] sm:$0xff] }
 0x1a6   :  { %2098 = vmatpush1.bf16.msra.mxu0 %v2957_v41  ;;  %v3157_v41 = vcombine.low %v522_v30, %v526_v31  ;;  %v506_v46 = vld [vmem:[#allocation8 + $0x758] sm:$0xff] }
 0x1a7   :  { %2139 = vmatpush1.bf16.msra.mxu1 %v3085_v42  ;;  %2099 = vmatprep.subr.bf16.mxu0 %v2950_v43  ;;  %v3022_v42 = vcombine.high %v386_v36, %v390_v37  ;;  %v3150_v43 = vcombine.high %v514_v38, %v518_v39  ;;  %v478_v17 = vld [vmem:[#allocation8 + $0x678] sm:$0xff]  ;;  %v3336_v37 = vld [vmem:[#allocation11 + $0x78] sm:$0xff]  }
 0x1a8   :  { %2140 = vmatprep.subr.bf16.mxu1 %v3078_v44  ;;  %v378_v44 = vld [vmem:[#allocation8 + $0x358] sm:$0xff] }
 0x1a9   :  { %v3013_v59 = vcombine.low %v378_v44, %v382_v45  ;;  %v342_v23 = vld [vmem:[#allocation8 + $0x238] sm:$0xff] }
 0x1aa   :  { %2100 = vmatpush1.bf16.msra.mxu0 %v2949_v50  ;;  %v3149_v50 = vcombine.low %v514_v38, %v518_v39  ;;  %v466_v27 = vld [vmem:[#allocation8 + $0x618] sm:$0xff]  ;;  %v3352_v38 = vld [vmem:[#allocation11 + $0xf8] sm:$0xff]  }
 0x1ab   :  { %2141 = vmatpush1.bf16.msra.mxu1 %v3077_v51  ;;  %2101 = vmatprep.subr.bf16.mxu0 %v2942_v52  ;;  %v3014_v51 = vcombine.high %v378_v44, %v382_v45  ;;  %v3142_v52 = vcombine.high %v506_v46, %v510_v47  ;;  %v470_v30 = vld [vmem:[#allocation8 + $0x638] sm:$0xff]  ;;  %v3337_v39 = vld [vmem:[#allocation11 + $0x38] sm:$0xff]  }
 0x1ac   :  { %2142 = vmatprep.subr.bf16.mxu1 %v3070_v55  ;;  %v370_v55 = vld [vmem:[#allocation8 + $0x318] sm:$0xff]  ;;  %v3101_v36 = vcombine.low %v466_v27, %v470_v30 }
 0x1ad   :  { %v3005_v2 = vcombine.low %v370_v55, %v374_v53  ;;  %v3354_v44 = vld [vmem:[#allocation11 + $0xf0] sm:$0xff]  }
 0x1ae   :  { %2102 = vmatpush1.bf16.msra.mxu0 %v2941_v56  ;;  %v3141_v56 = vcombine.low %v506_v46, %v510_v47  ;;  %v3339_v47 = vld [vmem:[#allocation11 + $0x30] sm:$0xff]  }
 0x1af   :  { %2143 = vmatpush1.bf16.msra.mxu1 %v3069_v60  ;;  %2103 = vmatprep.subr.bf16.mxu0 %v2934_v61  ;;  %v3006_v60 = vcombine.high %v370_v55, %v374_v53  ;;  %v3134_v61 = vcombine.high %v498_v54, %v502_v58  ;;  %v3356_v53 = vld [vmem:[#allocation11 + $0xe8] sm:$0xff]  }
 0x1b0   :  { %2144 = vmatprep.subr.bf16.mxu1 %v3062_v62  ;;  %v362_v62 = vld [vmem:[#allocation8 + $0x2d8] sm:$0xff] }
 0x1b1   :  { %v2997_v10 = vcombine.low %v362_v62, %v366_v63 }
 0x1b2   :  { %2104 = vmatpush1.bf16.msra.mxu0 %v2933_v3  ;;  %v3133_v3 = vcombine.low %v498_v54, %v502_v58 }
 0x1b3   :  { %2145 = vmatpush1.bf16.msra.mxu1 %v3061_v4  ;;  %2105 = vmatprep.subr.bf16.mxu0 %v2926_v5  ;;  %v2998_v4 = vcombine.high %v362_v62, %v366_v63  ;;  %v3126_v5 = vcombine.high %v490_v0, %v494_v1  ;;  %v3358_v62 = vld [vmem:[#allocation11 + $0xe0] sm:$0xff]  }
 0x1b4   :  { %2146 = vmatprep.subr.bf16.mxu1 %v3054_v6  ;;  %v354_v6 = vld [vmem:[#allocation8 + $0x298] sm:$0xff] }
 0x1b5   :  { %v2989_v18 = vcombine.low %v354_v6, %v358_v7 }
 0x1b6   :  { %2106 = vmatpush1.bf16.msra.mxu0 %v2925_v11  ;;  %v3125_v11 = vcombine.low %v490_v0, %v494_v1  ;;  %v3343_v0 = vld [vmem:[#allocation11 + $0x20] sm:$0xff]   ;;  %v3344_v1 = vld [vmem:[#allocation11 + $0x58] sm:$0xff]  }
 0x1b7   :  { %2147 = vmatpush1.bf16.msra.mxu1 %v3053_v12  ;;  %2107 = vmatprep.subr.bf16.mxu0 %v2918_v13  ;;  %v2990_v12 = vcombine.high %v354_v6, %v358_v7  ;;  %v3118_v13 = vcombine.high %v482_v8, %v486_v9  ;;  %v3346_v6 = vld [vmem:[#allocation11 + $0x50] sm:$0xff]   ;;  %v3361_v7 = vld [vmem:[#allocation11 + $0x98] sm:$0xff]  }
 0x1b8   :  { %2148 = vmatprep.subr.bf16.mxu1 %v3046_v14  ;;  %v346_v14 = vld [vmem:[#allocation8 + $0x258] sm:$0xff] }
 0x1b9   :  { %v2981_v31 = vcombine.low %v346_v14, %v350_v15 }
 0x1ba   :  { %2108 = vmatpush1.bf16.msra.mxu0 %v2917_v19  ;;  %v3117_v19 = vcombine.low %v482_v8, %v486_v9  ;;  %v3362_v8 = vld [vmem:[#allocation11 + $0xd0] sm:$0xff]  }
 0x1bb   :  { %2149 = vmatpush1.bf16.msra.mxu1 %v3045_v20  ;;  %2109 = vmatprep.subr.bf16.mxu0 %v2910_v21  ;;  %v2982_v20 = vcombine.high %v346_v14, %v350_v15  ;;  %v3110_v21 = vcombine.high %v474_v16, %v478_v17  ;;  %v3347_v9 = vld [vmem:[#allocation11 + $0x10] sm:$0xff]   ;;  %v3349_v14 = vld [vmem:[#allocation11 + $0x8] sm:$0xff]  }
 0x1bc   :  { %2150 = vmatprep.subr.bf16.mxu1 %v3038_v22  ;;  %v338_v22 = vld [vmem:[#allocation8 + $0x218] sm:$0xff] }
 0x1be   :  { %2110 = vmatpush1.bf16.msra.mxu0 %v2909_v32  ;;  %v3109_v32 = vcombine.low %v474_v16, %v478_v17  ;;  %v3365_v16 = vld [vmem:[#allocation11 + $0x88] sm:$0xff]   ;;  %v3366_v17 = vld [vmem:[#allocation11 + $0xc0] sm:$0xff]  }
 0x1bf   :  { %2151 = vmatpush1.bf16.msra.mxu1 %v3037_v33  ;;  %2111 = vmatprep.subr.bf16.mxu0 %v3030_v34  ;;  %v2974_v33 = vcombine.high %v338_v22, %v342_v23  ;;  %v3102_v34 = vcombine.high %v466_v27, %v470_v30  ;;  %v3370_v30 = vld [vmem:[#allocation11 + $0x170] sm:$0xff]  }
 0x1c0   :  { %2152 = vmatprep.subr.bf16.mxu1 %v3158_v35  ;;  %v2973_v35 = vcombine.low %v338_v22, %v342_v23  ;;  %v3384_v22 = vld [vmem:[#allocation11 + $0x1f8] sm:$0xff]  }
 0x1c1   :  { %v3369_v23 = vld [vmem:[#allocation11 + $0x138] sm:$0xff]  }
 0x1c2   :  { %2112 = vmatpush2.bf16.msra.mxu0 %v3029_v40  ;;  %v3658_v40 = vld [vmem:[#allocation10] sm:$0xff] }
 0x1c3   :  { %2153 = vmatpush2.bf16.msra.mxu1 %v3157_v41  ;;  %2113 = vmatprep.subr.bf16.mxu0 %v3022_v42  ;;  %v3338_v41 = vld [vmem:[#allocation11 + $0x70] sm:$0xff]   ;;  %v3353_v42 = vld [vmem:[#allocation11 + $0xb8] sm:$0xff]  }
 0x1c4   :  { %2154 = vmatprep.subr.bf16.mxu1 %v3150_v43  ;;  %v536_v43 = vrot.slane %v3658_v40, %v120_v28 }
 0x1c6   :  { %2114 = vmatpush2.bf16.msra.mxu0 %v3021_v48 }
 0x1c7   :  { %2155 = vmatpush2.bf16.msra.mxu1 %v3149_v50  ;;  %2115 = vmatprep.subr.bf16.mxu0 %v3014_v51  ;;  %v3340_v51 = vld [vmem:[#allocation11 + $0x68] sm:$0xff]  }
 0x1c8   :  { %2156 = vmatprep.subr.bf16.mxu1 %v3142_v52  ;;  %v3355_v52 = vld [vmem:[#allocation11 + $0xb0] sm:$0xff]  }
 0x1ca   :  { %2116 = vmatpush2.bf16.msra.mxu0 %v3013_v59 }
 0x1cb   :  { %2157 = vmatpush2.bf16.msra.mxu1 %v3141_v56  ;;  %2117 = vmatprep.subr.bf16.mxu0 %v3006_v60  ;;  %v3357_v60 = vld [vmem:[#allocation11 + $0xa8] sm:$0xff]  }
 0x1cc   :  { %2158 = vmatprep.subr.bf16.mxu1 %v3134_v61 }
 0x1ce   :  { %2118 = vmatpush2.bf16.msra.mxu0 %v3005_v2  ;;  %v3359_v2 = vld [vmem:[#allocation11 + $0xa0] sm:$0xff]  }
 0x1cf   :  { %2159 = vmatpush2.bf16.msra.mxu1 %v3133_v3  ;;  %2119 = vmatprep.subr.bf16.mxu0 %v2998_v4  ;;  %v3360_v3 = vld [vmem:[#allocation11 + $0xd8] sm:$0xff]  }
 0x1d0   :  { %2160 = vmatprep.subr.bf16.mxu1 %v3126_v5  ;;  %v3345_v4 = vld [vmem:[#allocation11 + $0x18] sm:$0xff]   ;;  %v532_v5 = vrot.slane %v3658_v40, %v116_v25  ;;  %v3350_v25 = vld [vmem:[#allocation11 + $0x40] sm:$0xff]  }
 0x1d2   :  { %2120 = vmatpush2.bf16.msra.mxu0 %v2997_v10 }
 0x1d3   :  { %2161 = vmatpush2.bf16.msra.mxu1 %v3125_v11  ;;  %2121 = vmatprep.subr.bf16.mxu0 %v2990_v12  ;;  %v3348_v11 = vld [vmem:[#allocation11 + $0x48] sm:$0xff]   ;;  %v3363_v12 = vld [vmem:[#allocation11 + $0x90] sm:$0xff]  }
 0x1d4   :  { %2162 = vmatprep.subr.bf16.mxu1 %v3118_v13  ;;  %v3364_v13 = vld [vmem:[#allocation11 + $0xc8] sm:$0xff]  }
 0x1d6   :  { %2122 = vmatpush2.bf16.msra.mxu0 %v2989_v18  ;;  %v3351_v18 = vld [vmem:[#allocation11] sm:$0xff]  }
 0x1d7   :  { %2163 = vmatpush2.bf16.msra.mxu1 %v3117_v19  ;;  %2123 = vmatprep.subr.bf16.mxu0 %v2982_v20  ;;  %v3367_v20 = vld [vmem:[#allocation11 + $0x80] sm:$0xff]  }
 0x1d8   :  { %2164 = vmatprep.subr.bf16.mxu1 %v3110_v21  ;;  %v3368_v21 = vld [vmem:[#allocation11 + $0x178] sm:$0xff]  }
 0x1da   :  { %2124 = vmatpush2.bf16.msra.mxu0 %v2981_v31  ;;  %v3371_v31 = vld [vmem:[#allocation11 + $0x130] sm:$0xff]  }
 0x1db   :  { %2165 = vmatpush2.bf16.msra.mxu1 %v3109_v32  ;;  %2125 = vmatprep.subr.bf16.mxu0 %v2974_v33  ;;  %v3372_v32 = vld [vmem:[#allocation11 + $0x168] sm:$0xff]  }
 0x1dc   :  { %2166 = vmatprep.subr.bf16.mxu1 %v3102_v34  ;;  %v3373_v33 = vld [vmem:[#allocation11 + $0x128] sm:$0xff]   ;;  %v3374_v34 = vld [vmem:[#allocation11 + $0x160] sm:$0xff]  }
 0x1de   :  { %2126 = vmatpush2.bf16.msra.mxu0 %v2973_v35  ;;  %v3375_v35 = vld [vmem:[#allocation11 + $0x120] sm:$0xff]  }
 0x1df   :  { %2167 = vmatpush2.bf16.msra.mxu1 %v3101_v36  ;;  %3224 = vmatprep.subr.bf16.mxu0 %v3336_v37  ;;  %v3376_v36 = vld [vmem:[#allocation11 + $0x158] sm:$0xff]  }
 0x1e0   :  { %3246 = vmatprep.subr.bf16.mxu1 %v3352_v38  ;;  %v3377_v37 = vld [vmem:[#allocation11 + $0x118] sm:$0xff]   ;;  %v3378_v38 = vld [vmem:[#allocation11 + $0x150] sm:$0xff]  }
 0x1e1   :  { %2128 = vmatmul.mubr.bf16.vlgmr.msra.gmra.mxu0 %v3642_v57  ;;  %v1883_v45 = vpop.f32.mrf.mxu0  ;;  %v3341_v57 = vld [vmem:[#allocation11 + $0x28] sm:$0xff]  }
 0x1e2   :  { %v1924_v46 = vpop.f32.mrf.mxu1  ;;  %2169 = vmatmul.mubr.bf16.vlgmr.msra.gmra.mxu1 %v3636_v49  ;;  %3225 = vmatpush3.bf16.msra.mxu0 %v3337_v39  ;;  %v3342_v49 = vld [vmem:[#allocation11 + $0x60] sm:$0xff]   ;;  %v1884_v10 = vadd.f32 %v1883_v45, %v532_v5  ;;  %v3379_v39 = vld [vmem:[#allocation11 + $0x110] sm:$0xff]   ;;  %v540_v45 = vrot.slane %v3658_v40, %v124_v26 }
 0x1e3   :  { %v1885_v48 = vpop.f32.mrf.mxu0  ;;  %3226 = vmatprep.subr.bf16.mxu0 %v3338_v41  ;;  %3247 = vmatpush3.bf16.msra.mxu1 %v3353_v42  ;;  %v3380_v41 = vld [vmem:[#allocation11 + $0x148] sm:$0xff]   ;;  %v3394_v5 = vld [vmem:[#allocation11 + $0x1d0] sm:$0xff]  }
 0x1e4   :  { %v1926_v50 = vpop.f32.mrf.mxu1  ;;  %v1886_v55 = vadd.f32 %v1885_v48, %v536_v43  ;;  %3248 = vmatprep.subr.bf16.mxu1 %v3354_v44  ;;  %v1925_v15 = vadd.f32 %v1924_v46, %v1884_v10  ;;  %v3381_v42 = vld [vmem:[#allocation11 + $0x108] sm:$0xff]   ;;  %v3382_v43 = vld [vmem:[#allocation11 + $0x140] sm:$0xff]   ;;  %v544_v46 = vrot.slane %v3658_v40, %v128_v29  ;;  %v3387_v29 = vld [vmem:[#allocation11 + $0x1b0] sm:$0xff]  }
 0x1e5   :  { %v1887_v28 = vpop.f32.mrf.mxu0  ;;  %v3383_v44 = vld [vmem:[#allocation11 + $0x100] sm:$0xff]  }
 0x1e6   :  { %v1928_v54 = vpop.f32.mrf.mxu1  ;;  %v1927_v58 = vadd.f32 %v1926_v50, %v1886_v55  ;;  %3227 = vmatpush3.bf16.msra.mxu0 %v3339_v47  ;;  %v2177_v19 = vmax.f32 %v1925_v15, 0.0  ;;  %v3399_v10 = vld [vmem:[#allocation11 + $0x180] sm:$0xff]  }
 0x1e7   :  { %v1888_v59 = vpop.f32.mrf.mxu0  ;;  %3228 = vmatprep.subr.bf16.mxu0 %v3340_v51  ;;  %3249 = vmatpush3.bf16.msra.mxu1 %v3355_v52 }
 0x1e8   :  { %v1929_v56 = vpop.f32.mrf.mxu1  ;;  %v2178_v61 = vmax.f32 %v1927_v58, 0.0  ;;  %3250 = vmatprep.subr.bf16.mxu1 %v3356_v53  ;;  %v2185_v27 = vpack.c.bf16 %v2177_v19, %v2177_v19 }
 0x1ea   :  { %v2186_v63 = vpack.c.bf16 %v2178_v61, %v2178_v61  ;;  %3229 = vmatpush3.bf16.msra.mxu0 %v3341_v57 }
 0x1eb   :  { %3230 = vmatprep.subr.bf16.mxu0 %v3342_v49  ;;  %3251 = vmatpush3.bf16.msra.mxu1 %v3357_v60  ;;  %v3385_v60 = vld [vmem:[#allocation11 + $0x1b8] sm:$0xff]  }
 0x1ec   :  { %2744 = vmatprep.mubr.bf16.mxu0 %v2186_v63  ;;  %3252 = vmatprep.subr.bf16.mxu1 %v3358_v62  ;;  %v3386_v62 = vld [vmem:[#allocation11 + $0x1f0] sm:$0xff]   ;;  %v3388_v63 = vld [vmem:[#allocation11 + $0x1e8] sm:$0xff]  }
 0x1ee   :  { %3231 = vmatpush3.bf16.msra.mxu0 %v3343_v0  ;;  %v3389_v0 = vld [vmem:[#allocation11 + $0x1a8] sm:$0xff]  }
 0x1ef   :  { %3232 = vmatprep.subr.bf16.mxu0 %v3344_v1  ;;  %3253 = vmatpush3.bf16.msra.mxu1 %v3359_v2  ;;  %v3390_v1 = vld [vmem:[#allocation11 + $0x1e0] sm:$0xff]  }
 0x1f0   :  { %3254 = vmatprep.subr.bf16.mxu1 %v3360_v3  ;;  %v3391_v2 = vld [vmem:[#allocation11 + $0x1a0] sm:$0xff]   ;;  %v3392_v3 = vld [vmem:[#allocation11 + $0x1d8] sm:$0xff]  }
 0x1f2   :  { %3233 = vmatpush3.bf16.msra.mxu0 %v3345_v4  ;;  %v3393_v4 = vld [vmem:[#allocation11 + $0x198] sm:$0xff]  }
 0x1f3   :  { %3234 = vmatprep.subr.bf16.mxu0 %v3346_v6  ;;  %3255 = vmatpush3.bf16.msra.mxu1 %v3361_v7  ;;  %v3395_v6 = vld [vmem:[#allocation11 + $0x190] sm:$0xff]   ;;  %v3396_v7 = vld [vmem:[#allocation11 + $0x1c8] sm:$0xff]  }
 0x1f4   :  { %3256 = vmatprep.subr.bf16.mxu1 %v3362_v8  ;;  %v3397_v8 = vld [vmem:[#allocation11 + $0x188] sm:$0xff]  }
 0x1f6   :  { %3235 = vmatpush3.bf16.msra.mxu0 %v3347_v9  ;;  %v3398_v9 = vld [vmem:[#allocation11 + $0x1c0] sm:$0xff]  }
 0x1f7   :  { %3236 = vmatprep.subr.bf16.mxu0 %v3348_v11  ;;  %3257 = vmatpush3.bf16.msra.mxu1 %v3363_v12  ;;  %v547_v11 = vsub.s32 4, %v3622_v24  ;;  %v551_v12 = vsub.s32 5, %v3622_v24 }
 0x1f8   :  { %3258 = vmatprep.subr.bf16.mxu1 %v3364_v13 }
 0x1f9   :  { %v548_v13 = vrot.slane %v3658_v40, %v547_v11 }
 0x1fa   :  { %3237 = vmatpush3.bf16.msra.mxu0 %v3349_v14  ;;  %v552_v14 = vrot.slane %v3658_v40, %v551_v12 }
 0x1fb   :  { %3238 = vmatprep.subr.bf16.mxu0 %v3350_v25  ;;  %3259 = vmatpush3.bf16.msra.mxu1 %v3365_v16 }
 0x1fc   :  { %3260 = vmatprep.subr.bf16.mxu1 %v3366_v17 }
 0x1fe   :  { %3239 = vmatpush3.bf16.msra.mxu0 %v3351_v18 }
 0x1ff   :  { %3261 = vmatpush3.bf16.msra.mxu1 %v3367_v20  ;;  %3268 = vmatprep.subr.bf16.mxu0 %v3368_v21 }
 0x200   :  { %3290 = vmatprep.subr.bf16.mxu1 %v3384_v22 }
 0x201   :  { %2745 = vmatmul.mubr.bf16.vlgmr.msra.gmra.mxu0 %v2185_v27 }
 0x202   :  { %3269 = vmatpush3.bf16.msra.mxu0 %v3369_v23 }
 0x203   :  { %3270 = vmatprep.subr.bf16.mxu0 %v3370_v30 }
 0x206   :  { %3271 = vmatpush3.bf16.msra.mxu0 %v3371_v31 }
 0x207   :  { %3272 = vmatprep.subr.bf16.mxu0 %v3372_v32 }
 0x20a   :  { %3273 = vmatpush3.bf16.msra.mxu0 %v3373_v33 }
 0x20b   :  { %3274 = vmatprep.subr.bf16.mxu0 %v3374_v34 }
 0x20e   :  { %3275 = vmatpush3.bf16.msra.mxu0 %v3375_v35  ;;  %v555_v35 = vsub.s32 6, %v3622_v24 }
 0x20f   :  { %3276 = vmatprep.subr.bf16.mxu0 %v3376_v36  ;;  %v559_v36 = vsub.s32 7, %v3622_v24 }
 0x212   :  { %3277 = vmatpush3.bf16.msra.mxu0 %v3377_v37  ;;  %v556_v37 = vrot.slane %v3658_v40, %v555_v35 }
 0x213   :  { %3278 = vmatprep.subr.bf16.mxu0 %v3378_v38  ;;  %v560_v38 = vrot.slane %v3658_v40, %v559_v36 }
 0x216   :  { %3279 = vmatpush3.bf16.msra.mxu0 %v3379_v39 }
 0x217   :  { %3280 = vmatprep.subr.bf16.mxu0 %v3380_v41 }
 0x21a   :  { %3281 = vmatpush3.bf16.msra.mxu0 %v3381_v42 }
 0x21b   :  { %3282 = vmatprep.subr.bf16.mxu0 %v3382_v43 }
 0x21e   :  { %3283 = vmatpush3.bf16.msra.mxu0 %v3383_v44 }
 0x221   :  { %v1965_v47 = vpop.f32.mrf.mxu0 }
 0x222   :  { %v2006_v48 = vpop.f32.mrf.mxu1  ;;  %v1966_v50 = vadd.f32 %v1965_v47, %v540_v45 }
 0x223   :  { %v1967_v51 = vpop.f32.mrf.mxu0 }
 0x224   :  { %v2008_v52 = vpop.f32.mrf.mxu1  ;;  %v2007_v55 = vadd.f32 %v2006_v48, %v1966_v50  ;;  %v1968_v53 = vadd.f32 %v1967_v51, %v544_v46 }
 0x225   :  { %v1969_v28 = vpop.f32.mrf.mxu0 }
 0x226   :  { %v2010_v54 = vpop.f32.mrf.mxu1  ;;  %v2009_v58 = vadd.f32 %v2008_v52, %v1968_v53  ;;  %v2179_v57 = vmax.f32 %v2007_v55, 0.0 }
 0x227   :  { %v1970_v59 = vpop.f32.mrf.mxu0 }
 0x228   :  { %v2011_v56 = vpop.f32.mrf.mxu1  ;;  %v2180_v49 = vmax.f32 %v2009_v58, 0.0  ;;  %v2187_v61 = vpack.c.bf16 %v2179_v57, %v2179_v57 }
 0x229   :  { %v3159_v56 = vld [vmem:[%s3694_s6] ss:$0 sm:$0xff]  ;;  %s3520_s6 = scalar_lea.vmem %s2880_s11, 128 }
 0x22a   :  { %v2188_v26 = vpack.c.bf16 %v2180_v49, %v2180_v49  ;;  %p3521_p2 = scmp.ne.s32.totalorder %s2880_s11, %s3520_s6  ;;  %p3526_p4 = scmp.lt.s32.totalorder %s3520_s6, %s3520_s6 }
 0x22c   :  { %2784 = vmatprep.mubr.bf16.mxu1 %v2188_v26  ;;  %p3527_p5 = por %p3526_p4, %p3525_p3 }
 0x22d   :  { %2785 = vmatmul.mubr.bf16.vlgmr.msra.gmra.mxu1 %v2187_v61 }
 0x22e   :  { %3291 = vmatpush3.bf16.msra.mxu1 %v3385_v60  ;;  %p3528_p6 = pnand %p3527_p5, %p3521_p2 }
 0x22f   :  { %3292 = vmatprep.subr.bf16.mxu1 %v3386_v62 }
 0x232   :  { %3293 = vmatpush3.bf16.msra.mxu1 %v3387_v29 }
 0x233   :  { %3294 = vmatprep.subr.bf16.mxu1 %v3388_v63 }
 0x236   :  { %3295 = vmatpush3.bf16.msra.mxu1 %v3389_v0 }
 0x237   :  { %3296 = vmatprep.subr.bf16.mxu1 %v3390_v1 }
 0x23a   :  { %3297 = vmatpush3.bf16.msra.mxu1 %v3391_v2 }
 0x23b   :  { %3298 = vmatprep.subr.bf16.mxu1 %v3392_v3 }
 0x23e   :  { %3299 = vmatpush3.bf16.msra.mxu1 %v3393_v4 }
 0x23f   :  { %3300 = vmatprep.subr.bf16.mxu1 %v3394_v5 }
 0x242   :  { %3301 = vmatpush3.bf16.msra.mxu1 %v3395_v6 }
 0x243   :  { %3302 = vmatprep.subr.bf16.mxu1 %v3396_v7 }
 0x246   :  { %3303 = vmatpush3.bf16.msra.mxu1 %v3397_v8 }
 0x247   :  { %3304 = vmatprep.subr.bf16.mxu1 %v3398_v9 }
 0x24a   :  { %3305 = vmatpush3.bf16.msra.mxu1 %v3399_v10 }
 0x261   :  { %v2047_v15 = vpop.f32.mrf.mxu0 }
 0x262   :  { %v2048_v25 = vadd.f32 %v2047_v15, %v548_v13  ;;  %v2088_v16 = vpop.f32.mrf.mxu1 }
 0x263   :  { %v2049_v17 = vpop.f32.mrf.mxu0 }
 0x264   :  { %v2089_v18 = vadd.f32 %v2088_v16, %v2048_v25  ;;  %v2050_v19 = vadd.f32 %v2049_v17, %v552_v14  ;;  %v2090_v20 = vpop.f32.mrf.mxu1 }
 0x265   :  { %v2051_v21 = vpop.f32.mrf.mxu0 }
 0x266   :  { %v2091_v22 = vadd.f32 %v2090_v20, %v2050_v19  ;;  %v2092_v23 = vpop.f32.mrf.mxu1  ;;  %v2181_v27 = vmax.f32 %v2089_v18, 0.0 }
 0x267   :  { %v2052_v30 = vpop.f32.mrf.mxu0 }
 0x268   :  { %v2182_v31 = vmax.f32 %v2091_v22, 0.0  ;;  %v2093_v32 = vpop.f32.mrf.mxu1  ;;  %v2189_v34 = vpack.c.bf16 %v2181_v27, %v2181_v27 }
 0x26a   :  { %v2190_v33 = vpack.c.bf16 %v2182_v31, %v2182_v31 }
 0x26c   :  { %2824 = vmatprep.mubr.bf16.mxu0 %v2190_v33 }
 0x26d   :  { %2825 = vmatmul.mubr.bf16.vlgmr.msra.gmra.mxu0 %v2189_v34 }
 0x2a1   :  { %v2129_v39 = vpop.f32.mrf.mxu0 }
 0x2a2   :  { %v2130_v41 = vadd.f32 %v2129_v39, %v556_v37  ;;  %v2170_v42 = vpop.f32.mrf.mxu1 }
 0x2a3   :  { %v2131_v43 = vpop.f32.mrf.mxu0 }
 0x2a4   :  { %v2171_v44 = vadd.f32 %v2170_v42, %v2130_v41  ;;  %v2132_v45 = vadd.f32 %v2131_v43, %v560_v38  ;;  %v2172_v46 = vpop.f32.mrf.mxu1 }
 0x2a5   :  { %v2133_v47 = vpop.f32.mrf.mxu0 }
 0x2a6   :  { %v2173_v48 = vadd.f32 %v2172_v46, %v2132_v45  ;;  %v2174_v50 = vpop.f32.mrf.mxu1  ;;  %v2183_v51 = vmax.f32 %v2171_v44, 0.0 }
 0x2a7   :  { %v2134_v52 = vpop.f32.mrf.mxu0 }
 0x2a8   :  { %v2184_v55 = vmax.f32 %v2173_v48, 0.0  ;;  %v2175_v53 = vpop.f32.mrf.mxu1  ;;  %v2191_v24 = vpack.c.bf16 %v2183_v51, %v2183_v51 }
 0x2aa   :  { %v2192_v28 = vpack.c.bf16 %v2184_v55, %v2184_v55 }
 0x2ac   :  { %2864 = vmatprep.mubr.bf16.mxu1 %v2192_v28 }
 0x2ad   :  { %2865 = vmatmul.mubr.bf16.vlgmr.msra.gmra.mxu1 %v2191_v24 }
 0x2c1   :  { %v3240_v54 = vpop.f32.mrf.mxu0 }
 0x2c3   :  { %v3241_v40 = vpop.f32.mrf.mxu0 }
 0x2c4   :  { %v3242_v58 = vadd.f32 %v3241_v40, %v3240_v54 }
 0x2c5   :  { %v3243_v57 = vpop.f32.mrf.mxu0 }
 0x2c6   :  { %v2747_v60 = vadd.f32 %v3242_v58, %v3159_v56 }
 0x2c7   :  { %v3244_v59 = vpop.f32.mrf.mxu0 }
 0x2ed   :  { %v3262_v49 = vpop.f32.mrf.mxu1 }
 0x2ef   :  { %v3263_v26 = vpop.f32.mrf.mxu1 }
 0x2f0   :  { %v3264_v61 = vadd.f32 %v3263_v26, %v3262_v49 }
 0x2f1   :  { %v3265_v62 = vpop.f32.mrf.mxu1 }
 0x2f2   :  { %v2787_v29 = vadd.f32 %v3264_v61, %v2747_v60 }
 0x2f3   :  { %v3266_v63 = vpop.f32.mrf.mxu1 }
 0x32d   :  { %v3284_v0 = vpop.f32.mrf.mxu0 }
 0x32f   :  { %v3285_v1 = vpop.f32.mrf.mxu0 }
 0x330   :  { %v3286_v2 = vadd.f32 %v3285_v1, %v3284_v0 }
 0x331   :  { %v3287_v3 = vpop.f32.mrf.mxu0 }
 0x332   :  { %v2827_v4 = vadd.f32 %v3286_v2, %v2787_v29 }
 0x333   :  { %v3288_v5 = vpop.f32.mrf.mxu0 }
 0x36d   :  { %v3306_v6 = vpop.f32.mrf.mxu1 }
 0x36f   :  { %v3307_v7 = vpop.f32.mrf.mxu1 }
 0x370   :  { %v3308_v8 = vadd.f32 %v3307_v7, %v3306_v6 }
 0x371   :  { %v3309_v9 = vpop.f32.mrf.mxu1 }
 0x372   :  { %v2867_v10 = vadd.f32 %v3308_v8, %v2827_v4 }
 0x373   :  { %v3310_v11 = vpop.f32.mrf.mxu1 }
 0x374   :  { %2872 = vst [vmem:[#allocation13] sm:$0xff] %v2867_v10 }
 0x375   :  { %3531 = shalt.err (!%p3528_p6)
}
 0x376   :  { %2882 = dma.vmem_to_hbm [thread:$0]  %s2880_s11, 128, %s3695_s7, [#allocation4]  }
 0x377   :  { %3548 = dma.done.wait [#allocation4], 128  }
 0x378   :  { %3549 = vsyncadd [#allocation4], 4294967168 }
 0x379   :  { %2886 = vsyncpa [#allocation3], 1 }
 0x37a   :  { %2887 = vsyncpa [#allocation6], 1 }
 0x37b   :  { %2888 = vsyncpa [#allocation9], 1 }
 0x37c   :  { %2889 = vsyncpa [#allocation12], 1 }
 0x37d   :  { %2890 = vsyncpa [#allocation4], 1 }

</bundles_post_ra>
